<compile_context>
chip_gen: v6e
topology: v6e:2x2x1
jax: 0.10.0
libtpu: 0.0.40
codegen_flags: <defaults>
</compile_context>

<pallas_src>
from functools import partial

import jax
import jax.numpy as jnp
from jax.experimental import pallas as pl
from jax.experimental.pallas import tpu as pltpu

BN_EPS = 1e-5
VMEM_LIMIT = 32 * 1024 * 1024   # safe scoped limit on v5e/v6e/v7x
LANE = 128
TILE_M_MAX = 512                # per-buffer budget sized for v7x's 64 MiB VMEM


def _round_up(x, m):
    return (x + m - 1) // m * m


# ----------------------------- Pallas kernels ------------------------------ #

def matmul_stats_kernel(p_ref, w_ref, y_ref, stats_ref):
    """Tiled im2col matmul (bf16 MXU, f32 acc) + per-channel sum / sumsq accumulation.

    p_ref:     (TILE_M, K)  bf16 im2col patches tile
    w_ref:     (K, C)       bf16 flattened conv weights (grid-resident)
    y_ref:     (TILE_M, C)  f32 conv output tile
    stats_ref: (2, C)       f32 accumulator: row 0 = sum(y), row 1 = sum(y*y)
    """
    @pl.when(pl.program_id(0) == 0)
    def _():
        stats_ref[...] = jnp.zeros_like(stats_ref)

    y = jnp.dot(p_ref[...], w_ref[...], preferred_element_type=jnp.float32)
    y_ref[...] = y
    stats_ref[...] += jnp.concatenate(
        [jnp.sum(y, axis=0, keepdims=True),
         jnp.sum(y * y, axis=0, keepdims=True)], axis=0)


def bn_relu_kernel(y_ref, scale_ref, shift_ref, o_ref):
    """o = relu(y * scale + shift); scale/shift fold the global batch statistics."""
    o_ref[...] = jnp.maximum(y_ref[...] * scale_ref[...] + shift_ref[...], 0.0)


def maxpool_kernel(x_ref, o_ref, *, k):
    """Stride-1 k*k max pooling of one padded image: (1, Hp, Wp, C) -> (1, Hf, Wf, C)."""
    x = x_ref[...]
    hf, wf = o_ref.shape[1], o_ref.shape[2]
    acc = x[:, 0:hf, 0:wf, :]
    for i in range(k):
        for j in range(k):
            if i == 0 and j == 0:
                continue
            acc = jnp.maximum(acc, x[:, i:i + hf, j:j + wf, :])
    o_ref[...] = acc


# ----------------------------- host-side glue ------------------------------ #

def conv_bn_relu(x, w, gamma, beta, stride, padding):
    """x: NHWC f32, w: OIHW (PyTorch layout).  Conv (no bias) + train-mode BN + ReLU."""
    N, H, W_, Cin = x.shape
    Cout, _, kh, kw = w.shape
    sh, sw = stride
    ph, pw = padding
    Ho = (H + 2 * ph - kh) // sh + 1
    Wo = (W_ + 2 * pw - kw) // sw + 1
    M = N * Ho * Wo
    K = kh * kw * Cin

    # im2col without the big stack+transpose: channel-concat the shifted strided views.
    x_pad = jnp.pad(x, ((0, 0), (ph, ph), (pw, pw), (0, 0))) if (ph or pw) else x
    wins = [
        x_pad[:, i:i + (Ho - 1) * sh + 1:sh, j:j + (Wo - 1) * sw + 1:sw, :]
        for i in range(kh) for j in range(kw)
    ]
    patches = wins[0] if len(wins) == 1 else jnp.concatenate(wins, axis=-1)
    patches = patches.reshape(M, K)
    w_mat = jnp.transpose(w, (2, 3, 1, 0)).reshape(K, Cout)   # (kh, kw, cin) row order

    # Lane-pad narrow output channels to 128 for dense (unmasked) stores.
    Cp = Cout if Cout >= LANE else LANE
    if Cp != Cout:
        w_mat = jnp.pad(w_mat, ((0, 0), (0, Cp - Cout)))
        gamma = jnp.pad(gamma, (0, Cp - Cout))
        beta = jnp.pad(beta, (0, Cp - Cout))

    # Tile M (zero-padded rows contribute 0 to sum/sumsq -> global stats stay exact).
    tile_m = TILE_M_MAX if M >= TILE_M_MAX else _round_up(M, 8)
    Mp = _round_up(M, tile_m)
    if Mp != M:
        patches = jnp.pad(patches, ((0, Mp - M), (0, 0)))
    n_tiles = Mp // tile_m

    patches_bf = patches.astype(jnp.bfloat16)
    w_bf = w_mat.astype(jnp.bfloat16)

    mm_cost = pl.CostEstimate(
        flops=2 * Mp * K * Cp,
        transcendentals=0,
        bytes_accessed=patches_bf.size * 2 + w_bf.size * 2 + Mp * Cp * 4,
    )
    y, stats = pl.pallas_call(
        matmul_stats_kernel,
        out_shape=(jax.ShapeDtypeStruct((Mp, Cp), jnp.float32),
                   jax.ShapeDtypeStruct((2, Cp), jnp.float32)),
        grid=(n_tiles,),
        in_specs=[pl.BlockSpec((tile_m, K), lambda i: (i, 0)),
                  pl.BlockSpec((K, Cp), lambda i: (0, 0))],
        out_specs=(pl.BlockSpec((tile_m, Cp), lambda i: (i, 0)),
                   pl.BlockSpec((2, Cp), lambda i: (0, 0))),
        compiler_params=pltpu.CompilerParams(
            dimension_semantics=("arbitrary",),        # stats accumulate across M tiles
            vmem_limit_bytes=VMEM_LIMIT),
        cost_estimate=mm_cost,
    )(patches_bf, w_bf)

    # Fold global batch statistics (true M, biased variance as PyTorch train-mode BN)
    # into a per-channel affine; applied + ReLU'd in a second tiled ("parallel") kernel.
    mean = stats[0, :] / M
    var = jnp.maximum(stats[1, :] / M - mean * mean, 0.0)
    g_inv = gamma * jax.lax.rsqrt(var + BN_EPS)
    scale = g_inv.reshape(1, Cp)
    shift = (beta - mean * g_inv).reshape(1, Cp)

    bn_cost = pl.CostEstimate(flops=3 * Mp * Cp, transcendentals=0,
                              bytes_accessed=2 * Mp * Cp * 4)
    out = pl.pallas_call(
        bn_relu_kernel,
        out_shape=jax.ShapeDtypeStruct((Mp, Cp), jnp.float32),
        grid=(n_tiles,),
        in_specs=[pl.BlockSpec((tile_m, Cp), lambda i: (i, 0)),
                  pl.BlockSpec((1, Cp), lambda i: (0, 0)),
                  pl.BlockSpec((1, Cp), lambda i: (0, 0))],
        out_specs=pl.BlockSpec((tile_m, Cp), lambda i: (i, 0)),
        compiler_params=pltpu.CompilerParams(
            dimension_semantics=("parallel",),         # megacore shard on v7x
            vmem_limit_bytes=VMEM_LIMIT),
        cost_estimate=bn_cost,
    )(y, scale, shift)

    return out[:M, :Cout].reshape(N, Ho, Wo, Cout)


def maxpool2d(x, k, s, p):
    """NHWC max pool, square kernel, floor mode (PyTorch default)."""
    N, H, W_, C = x.shape
    Hp, Wp = H + 2 * p, W_ + 2 * p
    Hf, Wf = Hp - k + 1, Wp - k + 1            # stride-1 pooled size
    x_pad = (jnp.pad(x, ((0, 0), (p, p), (p, p), (0, 0)), constant_values=-3.0e38)
             if p else x)

    cost = pl.CostEstimate(flops=k * k * N * Hf * Wf * C, transcendentals=0,
                           bytes_accessed=(x_pad.size + N * Hf * Wf * C) * 4)
    out = pl.pallas_call(
        partial(maxpool_kernel, k=k),
        out_shape=jax.ShapeDtypeStruct((N, Hf, Wf, C), jnp.float32),
        grid=(N,),
        in_specs=[pl.BlockSpec((1, Hp, Wp, C), lambda n: (n, 0, 0, 0))],
        out_specs=pl.BlockSpec((1, Hf, Wf, C), lambda n: (n, 0, 0, 0)),
        compiler_params=pltpu.CompilerParams(
            dimension_semantics=("parallel",),
            vmem_limit_bytes=VMEM_LIMIT),
        cost_estimate=cost,
    )(x_pad)
    if s > 1:
        out = out[:, ::s, ::s, :]              # stride-s pool == subsampled stride-1 pool
    return out


# ------------------------------- parameters -------------------------------- #

_LAYER_SPECS = (
    ("s1_c1",    3,  32, (3, 3)),
    ("s1_c2",   32,  64, (3, 3)),
    ("s2_conv", 64,  96, (3, 3)),
    ("s3_1_c1", 160, 64, (1, 1)),
    ("s3_1_c2", 64,  96, (3, 3)),
    ("s3_2_c1", 160, 64, (1, 1)),
    ("s3_2_c2", 64,  64, (7, 1)),
    ("s3_2_c3", 64,  64, (1, 7)),
    ("s3_2_c4", 64,  96, (3, 3)),
    ("s4_conv", 192, 192, (3, 3)),
)


def init_params(key):
    params = {}
    keys = jax.random.split(key, len(_LAYER_SPECS))
    for k_, (name, cin, cout, (kh, kw)) in zip(keys, _LAYER_SPECS):
        params[name] = dict(
            w=jax.random.normal(k_, (cout, cin, kh, kw), jnp.float32) * 0.1,  # bias=False
            gamma=jnp.ones((cout,), jnp.float32),   # BN default init
            beta=jnp.zeros((cout,), jnp.float32),
        )
    return params


# --------------------------------- forward --------------------------------- #

def stem_v4_res2_forward(x_nchw, params):
    x = jnp.transpose(x_nchw, (0, 2, 3, 1)).astype(jnp.float32)      # NCHW -> NHWC

    def bcr(name, x, stride, padding):
        p = params[name]
        return conv_bn_relu(x, p["w"], p["gamma"], p["beta"], stride, padding)

    # step1
    out = bcr("s1_c1", x, (1, 1), (0, 0))
    out = bcr("s1_c2", out, (1, 1), (1, 1))

    # step2: maxpool(3,2,0) || conv(64->96, 3, s2, p0)
    tmp1 = maxpool2d(out, 3, 2, 0)
    tmp2 = bcr("s2_conv", out, (2, 2), (0, 0))
    out = jnp.concatenate([tmp1, tmp2], axis=-1)                      # -> 160 ch

    # step3: fuse the two 160->64 1x1 branch heads into one Cout=128 matmul
    # (BN is per-channel, so the fused result is identical to the separate convs).
    p1, p2 = params["s3_1_c1"], params["s3_2_c1"]
    heads = conv_bn_relu(
        out,
        jnp.concatenate([p1["w"], p2["w"]], axis=0),
        jnp.concatenate([p1["gamma"], p2["gamma"]]),
        jnp.concatenate([p1["beta"], p2["beta"]]),
        (1, 1), (0, 0))
    t1 = bcr("s3_1_c2", heads[..., :64], (1, 1), (0, 0))
    t2 = heads[..., 64:]
    t2 = bcr("s3_2_c2", t2, (1, 1), (3, 0))                           # (7,1) conv, pad (3,0)
    t2 = bcr("s3_2_c3", t2, (1, 1), (0, 3))                           # (1,7) conv, pad (0,3)
    t2 = bcr("s3_2_c4", t2, (1, 1), (0, 0))
    out = jnp.concatenate([t1, t2], axis=-1)                          # -> 192 ch

    # step4: maxpool(3,1,1) || conv(192->192, 3, s1, p1)
    tmp1 = maxpool2d(out, 3, 1, 1)
    tmp2 = bcr("s4_conv", out, (1, 1), (1, 1))
    out = jnp.concatenate([tmp1, tmp2], axis=-1)                      # -> 384 ch
    # TODO(synk): step2/3/4 branch outputs could write straight into their channel
    # slot of the concat buffer via out_spec channel offsets to drop the concat copies.

    return jnp.transpose(out, (0, 3, 1, 2))                           # NHWC -> NCHW


if __name__ == "__main__":
    key = jax.random.PRNGKey(0)
    kx, kp = jax.random.split(key)
    x = jax.random.normal(kx, (2, 3, 15, 15), jnp.float32)            # small NCHW input
    params = init_params(kp)

    out = jax.jit(stem_v4_res2_forward)(x, params)
    out = jax.block_until_ready(out)
    assert out.shape == (2, 384, 4, 4), out.shape
    assert out.dtype == jnp.float32
    print("KERNEL_OK")
</pallas_src>

<mosaic_0001>
module attributes {stable_mosaic.version = 11 : i64} {
  func.func @matmul_stats_kernel(%arg0: i32, %arg1: memref<344x27xbf16, #tpu.memory_space<vmem>>, %arg2: memref<27x128xbf16, #tpu.memory_space<vmem>>, %arg3: memref<344x128xf32, #tpu.memory_space<vmem>>, %arg4: memref<2x128xf32, #tpu.memory_space<vmem>>) attributes {dimension_semantics = [#tpu.dimension_semantics<arbitrary>], iteration_bounds = array<i64: 1>, scalar_prefetch = 0 : i64, scratch_operands = 0 : i64, tpu.core_type = #tpu.core_type<tc>, window_params = [{transform_indices = @transform_0, window_bounds = array<i64: 344, 27>}, {pipeline_mode = #tpu.pipeline_mode<synchronous>, transform_indices = @transform_1, window_bounds = array<i64: 27, 128>}, {transform_indices = @transform_2, window_bounds = array<i64: 344, 128>}, {pipeline_mode = #tpu.pipeline_mode<synchronous>, transform_indices = @transform_3, window_bounds = array<i64: 2, 128>}]} {
    %c0_i32 = arith.constant 0 : i32
    %0 = arith.cmpi eq, %arg0, %c0_i32 : i32
    %1 = arith.extui %0 : i1 to i32
    %c0_i32_0 = arith.constant 0 : i32
    %2 = arith.cmpi ne, %1, %c0_i32_0 : i32
    scf.if %2 {
      %cst_12 = arith.constant 0.000000e+00 : f32
      %16 = vector.broadcast %cst_12 : f32 to vector<2x128xf32>
      %c0_13 = arith.constant 0 : index
      %c0_14 = arith.constant 0 : index
      %17 = vector.load %arg4[%c0_13, %c0_14] : memref<2x128xf32, #tpu.memory_space<vmem>>, vector<2x128xf32>
      tpu.vector_store %arg4[%c0_13, %c0_14], %16 {strides = array<i32>} : memref<2x128xf32, #tpu.memory_space<vmem>>, vector<2x128xf32>,
    } else {
    }
    %c0 = arith.constant 0 : index
    %c0_1 = arith.constant 0 : index
    %3 = vector.load %arg1[%c0, %c0_1] : memref<344x27xbf16, #tpu.memory_space<vmem>>, vector<344x27xbf16>
    %c0_2 = arith.constant 0 : index
    %c0_3 = arith.constant 0 : index
    %4 = vector.load %arg2[%c0_2, %c0_3] : memref<27x128xbf16, #tpu.memory_space<vmem>>, vector<27x128xbf16>
    %cst = arith.constant dense<0.000000e+00> : vector<344x128xf32>
    %5 = tpu.matmul %3, %4, %cst {dimension_numbers = #tpu.dot_dimension_numbers<[1], [0], [0], [1], [0, 0, 1, 1], [], []>} : vector<344x27xbf16>, vector<27x128xbf16>, vector<344x128xf32> -> vector<344x128xf32>
    %c0_4 = arith.constant 0 : index
    %c0_5 = arith.constant 0 : index
    %6 = vector.load %arg3[%c0_4, %c0_5] : memref<344x128xf32, #tpu.memory_space<vmem>>, vector<344x128xf32>
    tpu.vector_store %arg3[%c0_4, %c0_5], %5 {strides = array<i32>} : memref<344x128xf32, #tpu.memory_space<vmem>>, vector<344x128xf32>,
    %c0_6 = arith.constant 0 : index
    %c0_7 = arith.constant 0 : index
    %7 = vector.load %arg4[%c0_6, %c0_7] : memref<2x128xf32, #tpu.memory_space<vmem>>, vector<2x128xf32>
    %cst_8 = arith.constant dense<0.000000e+00> : vector<128xf32>
    %8 = vector.multi_reduction <add>, %5, %cst_8 [0] : vector<344x128xf32> to vector<128xf32>
    %9 = vector.shape_cast %8 : vector<128xf32> to vector<1x128xf32>
    %10 = arith.mulf %5, %5 : vector<344x128xf32>
    %cst_9 = arith.constant dense<0.000000e+00> : vector<128xf32>
    %11 = vector.multi_reduction <add>, %10, %cst_9 [0] : vector<344x128xf32> to vector<128xf32>
    %12 = vector.shape_cast %11 : vector<128xf32> to vector<1x128xf32>
    %13 = tpu.concatenate %9, %12 in 0 : vector<1x128xf32>, vector<1x128xf32> -> vector<2x128xf32>
    %14 = arith.addf %7, %13 : vector<2x128xf32>
    %c0_10 = arith.constant 0 : index
    %c0_11 = arith.constant 0 : index
    %15 = vector.load %arg4[%c0_10, %c0_11] : memref<2x128xf32, #tpu.memory_space<vmem>>, vector<2x128xf32>
    tpu.vector_store %arg4[%c0_10, %c0_11], %14 {strides = array<i32>} : memref<2x128xf32, #tpu.memory_space<vmem>>, vector<2x128xf32>,
    return
  }
  func.func @transform_0(%arg0: i32) -> (i32, i32) {
    %c0_i32 = arith.constant 0 : i32
    %c0_i32_0 = arith.constant 0 : i32
    return %arg0, %c0_i32 : i32, i32
  }
  func.func @transform_1(%arg0: i32) -> (i32, i32) {
    %c0_i32 = arith.constant 0 : i32
    %c0_i32_0 = arith.constant 0 : i32
    %c0_i32_1 = arith.constant 0 : i32
    return %c0_i32, %c0_i32_0 : i32, i32
  }
  func.func @transform_2(%arg0: i32) -> (i32, i32) {
    %c0_i32 = arith.constant 0 : i32
    %c0_i32_0 = arith.constant 0 : i32
    return %arg0, %c0_i32 : i32, i32
  }
  func.func @transform_3(%arg0: i32) -> (i32, i32) {
    %c0_i32 = arith.constant 0 : i32
    %c0_i32_0 = arith.constant 0 : i32
    %c0_i32_1 = arith.constant 0 : i32
    return %c0_i32, %c0_i32_0 : i32, i32
  }
}

module attributes {stable_mosaic.version = 11 : i64} {
  func.func @bn_relu_kernel(%arg0: i32, %arg1: memref<344x128xf32, #tpu.memory_space<vmem>>, %arg2: memref<1x128xf32, #tpu.memory_space<vmem>>, %arg3: memref<1x128xf32, #tpu.memory_space<vmem>>, %arg4: memref<344x128xf32, #tpu.memory_space<vmem>>) attributes {dimension_semantics = [#tpu.dimension_semantics<parallel>], iteration_bounds = array<i64: 1>, scalar_prefetch = 0 : i64, scratch_operands = 0 : i64, tpu.core_type = #tpu.core_type<tc>, window_params = [{transform_indices = @transform_0, window_bounds = array<i64: 344, 128>}, {pipeline_mode = #tpu.pipeline_mode<synchronous>, transform_indices = @transform_1, window_bounds = array<i64: 1, 128>}, {pipeline_mode = #tpu.pipeline_mode<synchronous>, transform_indices = @transform_2, window_bounds = array<i64: 1, 128>}, {transform_indices = @transform_3, window_bounds = array<i64: 344, 128>}]} {
    %c0 = arith.constant 0 : index
    %c0_0 = arith.constant 0 : index
    %0 = vector.load %arg1[%c0, %c0_0] : memref<344x128xf32, #tpu.memory_space<vmem>>, vector<344x128xf32>
    %c0_1 = arith.constant 0 : index
    %c0_2 = arith.constant 0 : index
    %1 = vector.load %arg2[%c0_1, %c0_2] : memref<1x128xf32, #tpu.memory_space<vmem>>, vector<1x128xf32>
    %2 = vector.broadcast %1 : vector<1x128xf32> to vector<344x128xf32>
    %3 = arith.mulf %0, %2 : vector<344x128xf32>
    %c0_3 = arith.constant 0 : index
    %c0_4 = arith.constant 0 : index
    %4 = vector.load %arg3[%c0_3, %c0_4] : memref<1x128xf32, #tpu.memory_space<vmem>>, vector<1x128xf32>
    %5 = vector.broadcast %4 : vector<1x128xf32> to vector<344x128xf32>
    %6 = arith.addf %3, %5 : vector<344x128xf32>
    %cst = arith.constant 0.000000e+00 : f32
    %7 = vector.broadcast %cst : f32 to vector<344x128xf32>
    %8 = arith.maximumf %6, %7 : vector<344x128xf32>
    %c0_5 = arith.constant 0 : index
    %c0_6 = arith.constant 0 : index
    %9 = vector.load %arg4[%c0_5, %c0_6] : memref<344x128xf32, #tpu.memory_space<vmem>>, vector<344x128xf32>
    tpu.vector_store %arg4[%c0_5, %c0_6], %8 {strides = array<i32>} : memref<344x128xf32, #tpu.memory_space<vmem>>, vector<344x128xf32>,
    return
  }
  func.func @transform_0(%arg0: i32) -> (i32, i32) {
    %c0_i32 = arith.constant 0 : i32
    %c0_i32_0 = arith.constant 0 : i32
    return %arg0, %c0_i32 : i32, i32
  }
  func.func @transform_1(%arg0: i32) -> (i32, i32) {
    %c0_i32 = arith.constant 0 : i32
    %c0_i32_0 = arith.constant 0 : i32
    %c0_i32_1 = arith.constant 0 : i32
    return %c0_i32, %c0_i32_0 : i32, i32
  }
  func.func @transform_2(%arg0: i32) -> (i32, i32) {
    %c0_i32 = arith.constant 0 : i32
    %c0_i32_0 = arith.constant 0 : i32
    %c0_i32_1 = arith.constant 0 : i32
    return %c0_i32, %c0_i32_0 : i32, i32
  }
  func.func @transform_3(%arg0: i32) -> (i32, i32) {
    %c0_i32 = arith.constant 0 : i32
    %c0_i32_0 = arith.constant 0 : i32
    return %arg0, %c0_i32 : i32, i32
  }
}

module attributes {stable_mosaic.version = 11 : i64} {
  func.func @matmul_stats_kernel(%arg0: i32, %arg1: memref<344x288xbf16, #tpu.memory_space<vmem>>, %arg2: memref<288x128xbf16, #tpu.memory_space<vmem>>, %arg3: memref<344x128xf32, #tpu.memory_space<vmem>>, %arg4: memref<2x128xf32, #tpu.memory_space<vmem>>) attributes {dimension_semantics = [#tpu.dimension_semantics<arbitrary>], iteration_bounds = array<i64: 1>, scalar_prefetch = 0 : i64, scratch_operands = 0 : i64, tpu.core_type = #tpu.core_type<tc>, window_params = [{transform_indices = @transform_0, window_bounds = array<i64: 344, 288>}, {pipeline_mode = #tpu.pipeline_mode<synchronous>, transform_indices = @transform_1, window_bounds = array<i64: 288, 128>}, {transform_indices = @transform_2, window_bounds = array<i64: 344, 128>}, {pipeline_mode = #tpu.pipeline_mode<synchronous>, transform_indices = @transform_3, window_bounds = array<i64: 2, 128>}]} {
    %c0_i32 = arith.constant 0 : i32
    %0 = arith.cmpi eq, %arg0, %c0_i32 : i32
    %1 = arith.extui %0 : i1 to i32
    %c0_i32_0 = arith.constant 0 : i32
    %2 = arith.cmpi ne, %1, %c0_i32_0 : i32
    scf.if %2 {
      %cst_12 = arith.constant 0.000000e+00 : f32
      %16 = vector.broadcast %cst_12 : f32 to vector<2x128xf32>
      %c0_13 = arith.constant 0 : index
      %c0_14 = arith.constant 0 : index
      %17 = vector.load %arg4[%c0_13, %c0_14] : memref<2x128xf32, #tpu.memory_space<vmem>>, vector<2x128xf32>
      tpu.vector_store %arg4[%c0_13, %c0_14], %16 {strides = array<i32>} : memref<2x128xf32, #tpu.memory_space<vmem>>, vector<2x128xf32>,
    } else {
    }
    %c0 = arith.constant 0 : index
    %c0_1 = arith.constant 0 : index
    %3 = vector.load %arg1[%c0, %c0_1] : memref<344x288xbf16, #tpu.memory_space<vmem>>, vector<344x288xbf16>
    %c0_2 = arith.constant 0 : index
    %c0_3 = arith.constant 0 : index
    %4 = vector.load %arg2[%c0_2, %c0_3] : memref<288x128xbf16, #tpu.memory_space<vmem>>, vector<288x128xbf16>
    %cst = arith.constant dense<0.000000e+00> : vector<344x128xf32>
    %5 = tpu.matmul %3, %4, %cst {dimension_numbers = #tpu.dot_dimension_numbers<[1], [0], [0], [1], [0, 0, 1, 1], [], []>} : vector<344x288xbf16>, vector<288x128xbf16>, vector<344x128xf32> -> vector<344x128xf32>
    %c0_4 = arith.constant 0 : index
    %c0_5 = arith.constant 0 : index
    %6 = vector.load %arg3[%c0_4, %c0_5] : memref<344x128xf32, #tpu.memory_space<vmem>>, vector<344x128xf32>
    tpu.vector_store %arg3[%c0_4, %c0_5], %5 {strides = array<i32>} : memref<344x128xf32, #tpu.memory_space<vmem>>, vector<344x128xf32>,
    %c0_6 = arith.constant 0 : index
    %c0_7 = arith.constant 0 : index
    %7 = vector.load %arg4[%c0_6, %c0_7] : memref<2x128xf32, #tpu.memory_space<vmem>>, vector<2x128xf32>
    %cst_8 = arith.constant dense<0.000000e+00> : vector<128xf32>
    %8 = vector.multi_reduction <add>, %5, %cst_8 [0] : vector<344x128xf32> to vector<128xf32>
    %9 = vector.shape_cast %8 : vector<128xf32> to vector<1x128xf32>
    %10 = arith.mulf %5, %5 : vector<344x128xf32>
    %cst_9 = arith.constant dense<0.000000e+00> : vector<128xf32>
    %11 = vector.multi_reduction <add>, %10, %cst_9 [0] : vector<344x128xf32> to vector<128xf32>
    %12 = vector.shape_cast %11 : vector<128xf32> to vector<1x128xf32>
    %13 = tpu.concatenate %9, %12 in 0 : vector<1x128xf32>, vector<1x128xf32> -> vector<2x128xf32>
    %14 = arith.addf %7, %13 : vector<2x128xf32>
    %c0_10 = arith.constant 0 : index
    %c0_11 = arith.constant 0 : index
    %15 = vector.load %arg4[%c0_10, %c0_11] : memref<2x128xf32, #tpu.memory_space<vmem>>, vector<2x128xf32>
    tpu.vector_store %arg4[%c0_10, %c0_11], %14 {strides = array<i32>} : memref<2x128xf32, #tpu.memory_space<vmem>>, vector<2x128xf32>,
    return
  }
  func.func @transform_0(%arg0: i32) -> (i32, i32) {
    %c0_i32 = arith.constant 0 : i32
    %c0_i32_0 = arith.constant 0 : i32
    return %arg0, %c0_i32 : i32, i32
  }
  func.func @transform_1(%arg0: i32) -> (i32, i32) {
    %c0_i32 = arith.constant 0 : i32
    %c0_i32_0 = arith.constant 0 : i32
    %c0_i32_1 = arith.constant 0 : i32
    return %c0_i32, %c0_i32_0 : i32, i32
  }
  func.func @transform_2(%arg0: i32) -> (i32, i32) {
    %c0_i32 = arith.constant 0 : i32
    %c0_i32_0 = arith.constant 0 : i32
    return %arg0, %c0_i32 : i32, i32
  }
  func.func @transform_3(%arg0: i32) -> (i32, i32) {
    %c0_i32 = arith.constant 0 : i32
    %c0_i32_0 = arith.constant 0 : i32
    %c0_i32_1 = arith.constant 0 : i32
    return %c0_i32, %c0_i32_0 : i32, i32
  }
}

module attributes {stable_mosaic.version = 11 : i64} {
  func.func @maxpool_kernel(%arg0: i32, %arg1: memref<1x13x13x64xf32, #tpu.memory_space<vmem>>, %arg2: memref<1x11x11x64xf32, #tpu.memory_space<vmem>>) attributes {dimension_semantics = [#tpu.dimension_semantics<parallel>], iteration_bounds = array<i64: 2>, scalar_prefetch = 0 : i64, scratch_operands = 0 : i64, tpu.core_type = #tpu.core_type<tc>, window_params = [{transform_indices = @transform_0, window_bounds = array<i64: 1, 13, 13, 64>}, {transform_indices = @transform_1, window_bounds = array<i64: 1, 11, 11, 64>}]} {
    %c0 = arith.constant 0 : index
    %c0_0 = arith.constant 0 : index
    %c0_1 = arith.constant 0 : index
    %c0_2 = arith.constant 0 : index
    %0 = vector.load %arg1[%c0, %c0_0, %c0_1, %c0_2] : memref<1x13x13x64xf32, #tpu.memory_space<vmem>>, vector<1x13x13x64xf32>
    %1 = vector.extract_strided_slice %0 {offsets = [0, 0, 0, 0], sizes = [1, 11, 11, 64], strides = [1, 1, 1, 1]} : vector<1x13x13x64xf32> to vector<1x11x11x64xf32>
    %2 = vector.extract_strided_slice %0 {offsets = [0, 0, 1, 0], sizes = [1, 11, 11, 64], strides = [1, 1, 1, 1]} : vector<1x13x13x64xf32> to vector<1x11x11x64xf32>
    %3 = arith.maximumf %1, %2 : vector<1x11x11x64xf32>
    %4 = vector.extract_strided_slice %0 {offsets = [0, 0, 2, 0], sizes = [1, 11, 11, 64], strides = [1, 1, 1, 1]} : vector<1x13x13x64xf32> to vector<1x11x11x64xf32>
    %5 = arith.maximumf %3, %4 : vector<1x11x11x64xf32>
    %6 = vector.extract_strided_slice %0 {offsets = [0, 1, 0, 0], sizes = [1, 11, 11, 64], strides = [1, 1, 1, 1]} : vector<1x13x13x64xf32> to vector<1x11x11x64xf32>
    %7 = arith.maximumf %5, %6 : vector<1x11x11x64xf32>
    %8 = vector.extract_strided_slice %0 {offsets = [0, 1, 1, 0], sizes = [1, 11, 11, 64], strides = [1, 1, 1, 1]} : vector<1x13x13x64xf32> to vector<1x11x11x64xf32>
    %9 = arith.maximumf %7, %8 : vector<1x11x11x64xf32>
    %10 = vector.extract_strided_slice %0 {offsets = [0, 1, 2, 0], sizes = [1, 11, 11, 64], strides = [1, 1, 1, 1]} : vector<1x13x13x64xf32> to vector<1x11x11x64xf32>
    %11 = arith.maximumf %9, %10 : vector<1x11x11x64xf32>
    %12 = vector.extract_strided_slice %0 {offsets = [0, 2, 0, 0], sizes = [1, 11, 11, 64], strides = [1, 1, 1, 1]} : vector<1x13x13x64xf32> to vector<1x11x11x64xf32>
    %13 = arith.maximumf %11, %12 : vector<1x11x11x64xf32>
    %14 = vector.extract_strided_slice %0 {offsets = [0, 2, 1, 0], sizes = [1, 11, 11, 64], strides = [1, 1, 1, 1]} : vector<1x13x13x64xf32> to vector<1x11x11x64xf32>
    %15 = arith.maximumf %13, %14 : vector<1x11x11x64xf32>
    %16 = vector.extract_strided_slice %0 {offsets = [0, 2, 2, 0], sizes = [1, 11, 11, 64], strides = [1, 1, 1, 1]} : vector<1x13x13x64xf32> to vector<1x11x11x64xf32>
    %17 = arith.maximumf %15, %16 : vector<1x11x11x64xf32>
    %c0_3 = arith.constant 0 : index
    %c0_4 = arith.constant 0 : index
    %c0_5 = arith.constant 0 : index
    %c0_6 = arith.constant 0 : index
    %18 = vector.load %arg2[%c0_3, %c0_4, %c0_5, %c0_6] : memref<1x11x11x64xf32, #tpu.memory_space<vmem>>, vector<1x11x11x64xf32>
    tpu.vector_store %arg2[%c0_3, %c0_4, %c0_5, %c0_6], %17 {strides = array<i32>} : memref<1x11x11x64xf32, #tpu.memory_space<vmem>>, vector<1x11x11x64xf32>,
    return
  }
  func.func @transform_0(%arg0: i32) -> (i32, i32, i32, i32) {
    %c0_i32 = arith.constant 0 : i32
    %c0_i32_0 = arith.constant 0 : i32
    %c0_i32_1 = arith.constant 0 : i32
    %c0_i32_2 = arith.constant 0 : i32
    return %arg0, %c0_i32, %c0_i32_0, %c0_i32_1 : i32, i32, i32, i32
  }
  func.func @transform_1(%arg0: i32) -> (i32, i32, i32, i32) {
    %c0_i32 = arith.constant 0 : i32
    %c0_i32_0 = arith.constant 0 : i32
    %c0_i32_1 = arith.constant 0 : i32
    %c0_i32_2 = arith.constant 0 : i32
    return %arg0, %c0_i32, %c0_i32_0, %c0_i32_1 : i32, i32, i32, i32
  }
}

module attributes {stable_mosaic.version = 11 : i64} {
  func.func @matmul_stats_kernel(%arg0: i32, %arg1: memref<72x576xbf16, #tpu.memory_space<vmem>>, %arg2: memref<576x128xbf16, #tpu.memory_space<vmem>>, %arg3: memref<72x128xf32, #tpu.memory_space<vmem>>, %arg4: memref<2x128xf32, #tpu.memory_space<vmem>>) attributes {dimension_semantics = [#tpu.dimension_semantics<arbitrary>], iteration_bounds = array<i64: 1>, scalar_prefetch = 0 : i64, scratch_operands = 0 : i64, tpu.core_type = #tpu.core_type<tc>, window_params = [{transform_indices = @transform_0, window_bounds = array<i64: 72, 576>}, {pipeline_mode = #tpu.pipeline_mode<synchronous>, transform_indices = @transform_1, window_bounds = array<i64: 576, 128>}, {transform_indices = @transform_2, window_bounds = array<i64: 72, 128>}, {pipeline_mode = #tpu.pipeline_mode<synchronous>, transform_indices = @transform_3, window_bounds = array<i64: 2, 128>}]} {
    %c0_i32 = arith.constant 0 : i32
    %0 = arith.cmpi eq, %arg0, %c0_i32 : i32
    %1 = arith.extui %0 : i1 to i32
    %c0_i32_0 = arith.constant 0 : i32
    %2 = arith.cmpi ne, %1, %c0_i32_0 : i32
    scf.if %2 {
      %cst_12 = arith.constant 0.000000e+00 : f32
      %16 = vector.broadcast %cst_12 : f32 to vector<2x128xf32>
      %c0_13 = arith.constant 0 : index
      %c0_14 = arith.constant 0 : index
      %17 = vector.load %arg4[%c0_13, %c0_14] : memref<2x128xf32, #tpu.memory_space<vmem>>, vector<2x128xf32>
      tpu.vector_store %arg4[%c0_13, %c0_14], %16 {strides = array<i32>} : memref<2x128xf32, #tpu.memory_space<vmem>>, vector<2x128xf32>,
    } else {
    }
    %c0 = arith.constant 0 : index
    %c0_1 = arith.constant 0 : index
    %3 = vector.load %arg1[%c0, %c0_1] : memref<72x576xbf16, #tpu.memory_space<vmem>>, vector<72x576xbf16>
    %c0_2 = arith.constant 0 : index
    %c0_3 = arith.constant 0 : index
    %4 = vector.load %arg2[%c0_2, %c0_3] : memref<576x128xbf16, #tpu.memory_space<vmem>>, vector<576x128xbf16>
    %cst = arith.constant dense<0.000000e+00> : vector<72x128xf32>
    %5 = tpu.matmul %3, %4, %cst {dimension_numbers = #tpu.dot_dimension_numbers<[1], [0], [0], [1], [0, 0, 1, 1], [], []>} : vector<72x576xbf16>, vector<576x128xbf16>, vector<72x128xf32> -> vector<72x128xf32>
    %c0_4 = arith.constant 0 : index
    %c0_5 = arith.constant 0 : index
    %6 = vector.load %arg3[%c0_4, %c0_5] : memref<72x128xf32, #tpu.memory_space<vmem>>, vector<72x128xf32>
    tpu.vector_store %arg3[%c0_4, %c0_5], %5 {strides = array<i32>} : memref<72x128xf32, #tpu.memory_space<vmem>>, vector<72x128xf32>,
    %c0_6 = arith.constant 0 : index
    %c0_7 = arith.constant 0 : index
    %7 = vector.load %arg4[%c0_6, %c0_7] : memref<2x128xf32, #tpu.memory_space<vmem>>, vector<2x128xf32>
    %cst_8 = arith.constant dense<0.000000e+00> : vector<128xf32>
    %8 = vector.multi_reduction <add>, %5, %cst_8 [0] : vector<72x128xf32> to vector<128xf32>
    %9 = vector.shape_cast %8 : vector<128xf32> to vector<1x128xf32>
    %10 = arith.mulf %5, %5 : vector<72x128xf32>
    %cst_9 = arith.constant dense<0.000000e+00> : vector<128xf32>
    %11 = vector.multi_reduction <add>, %10, %cst_9 [0] : vector<72x128xf32> to vector<128xf32>
    %12 = vector.shape_cast %11 : vector<128xf32> to vector<1x128xf32>
    %13 = tpu.concatenate %9, %12 in 0 : vector<1x128xf32>, vector<1x128xf32> -> vector<2x128xf32>
    %14 = arith.addf %7, %13 : vector<2x128xf32>
    %c0_10 = arith.constant 0 : index
    %c0_11 = arith.constant 0 : index
    %15 = vector.load %arg4[%c0_10, %c0_11] : memref<2x128xf32, #tpu.memory_space<vmem>>, vector<2x128xf32>
    tpu.vector_store %arg4[%c0_10, %c0_11], %14 {strides = array<i32>} : memref<2x128xf32, #tpu.memory_space<vmem>>, vector<2x128xf32>,
    return
  }
  func.func @transform_0(%arg0: i32) -> (i32, i32) {
    %c0_i32 = arith.constant 0 : i32
    %c0_i32_0 = arith.constant 0 : i32
    return %arg0, %c0_i32 : i32, i32
  }
  func.func @transform_1(%arg0: i32) -> (i32, i32) {
    %c0_i32 = arith.constant 0 : i32
    %c0_i32_0 = arith.constant 0 : i32
    %c0_i32_1 = arith.constant 0 : i32
    return %c0_i32, %c0_i32_0 : i32, i32
  }
  func.func @transform_2(%arg0: i32) -> (i32, i32) {
    %c0_i32 = arith.constant 0 : i32
    %c0_i32_0 = arith.constant 0 : i32
    return %arg0, %c0_i32 : i32, i32
  }
  func.func @transform_3(%arg0: i32) -> (i32, i32) {
    %c0_i32 = arith.constant 0 : i32
    %c0_i32_0 = arith.constant 0 : i32
    %c0_i32_1 = arith.constant 0 : i32
    return %c0_i32, %c0_i32_0 : i32, i32
  }
}

module attributes {stable_mosaic.version = 11 : i64} {
  func.func @bn_relu_kernel(%arg0: i32, %arg1: memref<72x128xf32, #tpu.memory_space<vmem>>, %arg2: memref<1x128xf32, #tpu.memory_space<vmem>>, %arg3: memref<1x128xf32, #tpu.memory_space<vmem>>, %arg4: memref<72x128xf32, #tpu.memory_space<vmem>>) attributes {dimension_semantics = [#tpu.dimension_semantics<parallel>], iteration_bounds = array<i64: 1>, scalar_prefetch = 0 : i64, scratch_operands = 0 : i64, tpu.core_type = #tpu.core_type<tc>, window_params = [{transform_indices = @transform_0, window_bounds = array<i64: 72, 128>}, {pipeline_mode = #tpu.pipeline_mode<synchronous>, transform_indices = @transform_1, window_bounds = array<i64: 1, 128>}, {pipeline_mode = #tpu.pipeline_mode<synchronous>, transform_indices = @transform_2, window_bounds = array<i64: 1, 128>}, {transform_indices = @transform_3, window_bounds = array<i64: 72, 128>}]} {
    %c0 = arith.constant 0 : index
    %c0_0 = arith.constant 0 : index
    %0 = vector.load %arg1[%c0, %c0_0] : memref<72x128xf32, #tpu.memory_space<vmem>>, vector<72x128xf32>
    %c0_1 = arith.constant 0 : index
    %c0_2 = arith.constant 0 : index
    %1 = vector.load %arg2[%c0_1, %c0_2] : memref<1x128xf32, #tpu.memory_space<vmem>>, vector<1x128xf32>
    %2 = vector.broadcast %1 : vector<1x128xf32> to vector<72x128xf32>
    %3 = arith.mulf %0, %2 : vector<72x128xf32>
    %c0_3 = arith.constant 0 : index
    %c0_4 = arith.constant 0 : index
    %4 = vector.load %arg3[%c0_3, %c0_4] : memref<1x128xf32, #tpu.memory_space<vmem>>, vector<1x128xf32>
    %5 = vector.broadcast %4 : vector<1x128xf32> to vector<72x128xf32>
    %6 = arith.addf %3, %5 : vector<72x128xf32>
    %cst = arith.constant 0.000000e+00 : f32
    %7 = vector.broadcast %cst : f32 to vector<72x128xf32>
    %8 = arith.maximumf %6, %7 : vector<72x128xf32>
    %c0_5 = arith.constant 0 : index
    %c0_6 = arith.constant 0 : index
    %9 = vector.load %arg4[%c0_5, %c0_6] : memref<72x128xf32, #tpu.memory_space<vmem>>, vector<72x128xf32>
    tpu.vector_store %arg4[%c0_5, %c0_6], %8 {strides = array<i32>} : memref<72x128xf32, #tpu.memory_space<vmem>>, vector<72x128xf32>,
    return
  }
  func.func @transform_0(%arg0: i32) -> (i32, i32) {
    %c0_i32 = arith.constant 0 : i32
    %c0_i32_0 = arith.constant 0 : i32
    return %arg0, %c0_i32 : i32, i32
  }
  func.func @transform_1(%arg0: i32) -> (i32, i32) {
    %c0_i32 = arith.constant 0 : i32
    %c0_i32_0 = arith.constant 0 : i32
    %c0_i32_1 = arith.constant 0 : i32
    return %c0_i32, %c0_i32_0 : i32, i32
  }
  func.func @transform_2(%arg0: i32) -> (i32, i32) {
    %c0_i32 = arith.constant 0 : i32
    %c0_i32_0 = arith.constant 0 : i32
    %c0_i32_1 = arith.constant 0 : i32
    return %c0_i32, %c0_i32_0 : i32, i32
  }
  func.func @transform_3(%arg0: i32) -> (i32, i32) {
    %c0_i32 = arith.constant 0 : i32
    %c0_i32_0 = arith.constant 0 : i32
    return %arg0, %c0_i32 : i32, i32
  }
}

module attributes {stable_mosaic.version = 11 : i64} {
  func.func @matmul_stats_kernel(%arg0: i32, %arg1: memref<72x160xbf16, #tpu.memory_space<vmem>>, %arg2: memref<160x128xbf16, #tpu.memory_space<vmem>>, %arg3: memref<72x128xf32, #tpu.memory_space<vmem>>, %arg4: memref<2x128xf32, #tpu.memory_space<vmem>>) attributes {dimension_semantics = [#tpu.dimension_semantics<arbitrary>], iteration_bounds = array<i64: 1>, scalar_prefetch = 0 : i64, scratch_operands = 0 : i64, tpu.core_type = #tpu.core_type<tc>, window_params = [{transform_indices = @transform_0, window_bounds = array<i64: 72, 160>}, {pipeline_mode = #tpu.pipeline_mode<synchronous>, transform_indices = @transform_1, window_bounds = array<i64: 160, 128>}, {transform_indices = @transform_2, window_bounds = array<i64: 72, 128>}, {pipeline_mode = #tpu.pipeline_mode<synchronous>, transform_indices = @transform_3, window_bounds = array<i64: 2, 128>}]} {
    %c0_i32 = arith.constant 0 : i32
    %0 = arith.cmpi eq, %arg0, %c0_i32 : i32
    %1 = arith.extui %0 : i1 to i32
    %c0_i32_0 = arith.constant 0 : i32
    %2 = arith.cmpi ne, %1, %c0_i32_0 : i32
    scf.if %2 {
      %cst_12 = arith.constant 0.000000e+00 : f32
      %16 = vector.broadcast %cst_12 : f32 to vector<2x128xf32>
      %c0_13 = arith.constant 0 : index
      %c0_14 = arith.constant 0 : index
      %17 = vector.load %arg4[%c0_13, %c0_14] : memref<2x128xf32, #tpu.memory_space<vmem>>, vector<2x128xf32>
      tpu.vector_store %arg4[%c0_13, %c0_14], %16 {strides = array<i32>} : memref<2x128xf32, #tpu.memory_space<vmem>>, vector<2x128xf32>,
    } else {
    }
    %c0 = arith.constant 0 : index
    %c0_1 = arith.constant 0 : index
    %3 = vector.load %arg1[%c0, %c0_1] : memref<72x160xbf16, #tpu.memory_space<vmem>>, vector<72x160xbf16>
    %c0_2 = arith.constant 0 : index
    %c0_3 = arith.constant 0 : index
    %4 = vector.load %arg2[%c0_2, %c0_3] : memref<160x128xbf16, #tpu.memory_space<vmem>>, vector<160x128xbf16>
    %cst = arith.constant dense<0.000000e+00> : vector<72x128xf32>
    %5 = tpu.matmul %3, %4, %cst {dimension_numbers = #tpu.dot_dimension_numbers<[1], [0], [0], [1], [0, 0, 1, 1], [], []>} : vector<72x160xbf16>, vector<160x128xbf16>, vector<72x128xf32> -> vector<72x128xf32>
    %c0_4 = arith.constant 0 : index
    %c0_5 = arith.constant 0 : index
    %6 = vector.load %arg3[%c0_4, %c0_5] : memref<72x128xf32, #tpu.memory_space<vmem>>, vector<72x128xf32>
    tpu.vector_store %arg3[%c0_4, %c0_5], %5 {strides = array<i32>} : memref<72x128xf32, #tpu.memory_space<vmem>>, vector<72x128xf32>,
    %c0_6 = arith.constant 0 : index
    %c0_7 = arith.constant 0 : index
    %7 = vector.load %arg4[%c0_6, %c0_7] : memref<2x128xf32, #tpu.memory_space<vmem>>, vector<2x128xf32>
    %cst_8 = arith.constant dense<0.000000e+00> : vector<128xf32>
    %8 = vector.multi_reduction <add>, %5, %cst_8 [0] : vector<72x128xf32> to vector<128xf32>
    %9 = vector.shape_cast %8 : vector<128xf32> to vector<1x128xf32>
    %10 = arith.mulf %5, %5 : vector<72x128xf32>
    %cst_9 = arith.constant dense<0.000000e+00> : vector<128xf32>
    %11 = vector.multi_reduction <add>, %10, %cst_9 [0] : vector<72x128xf32> to vector<128xf32>
    %12 = vector.shape_cast %11 : vector<128xf32> to vector<1x128xf32>
    %13 = tpu.concatenate %9, %12 in 0 : vector<1x128xf32>, vector<1x128xf32> -> vector<2x128xf32>
    %14 = arith.addf %7, %13 : vector<2x128xf32>
    %c0_10 = arith.constant 0 : index
    %c0_11 = arith.constant 0 : index
    %15 = vector.load %arg4[%c0_10, %c0_11] : memref<2x128xf32, #tpu.memory_space<vmem>>, vector<2x128xf32>
    tpu.vector_store %arg4[%c0_10, %c0_11], %14 {strides = array<i32>} : memref<2x128xf32, #tpu.memory_space<vmem>>, vector<2x128xf32>,
    return
  }
  func.func @transform_0(%arg0: i32) -> (i32, i32) {
    %c0_i32 = arith.constant 0 : i32
    %c0_i32_0 = arith.constant 0 : i32
    return %arg0, %c0_i32 : i32, i32
  }
  func.func @transform_1(%arg0: i32) -> (i32, i32) {
    %c0_i32 = arith.constant 0 : i32
    %c0_i32_0 = arith.constant 0 : i32
    %c0_i32_1 = arith.constant 0 : i32
    return %c0_i32, %c0_i32_0 : i32, i32
  }
  func.func @transform_2(%arg0: i32) -> (i32, i32) {
    %c0_i32 = arith.constant 0 : i32
    %c0_i32_0 = arith.constant 0 : i32
    return %arg0, %c0_i32 : i32, i32
  }
  func.func @transform_3(%arg0: i32) -> (i32, i32) {
    %c0_i32 = arith.constant 0 : i32
    %c0_i32_0 = arith.constant 0 : i32
    %c0_i32_1 = arith.constant 0 : i32
    return %c0_i32, %c0_i32_0 : i32, i32
  }
}

module attributes {stable_mosaic.version = 11 : i64} {
  func.func @matmul_stats_kernel(%arg0: i32, %arg1: memref<32x576xbf16, #tpu.memory_space<vmem>>, %arg2: memref<576x128xbf16, #tpu.memory_space<vmem>>, %arg3: memref<32x128xf32, #tpu.memory_space<vmem>>, %arg4: memref<2x128xf32, #tpu.memory_space<vmem>>) attributes {dimension_semantics = [#tpu.dimension_semantics<arbitrary>], iteration_bounds = array<i64: 1>, scalar_prefetch = 0 : i64, scratch_operands = 0 : i64, tpu.core_type = #tpu.core_type<tc>, window_params = [{transform_indices = @transform_0, window_bounds = array<i64: 32, 576>}, {pipeline_mode = #tpu.pipeline_mode<synchronous>, transform_indices = @transform_1, window_bounds = array<i64: 576, 128>}, {transform_indices = @transform_2, window_bounds = array<i64: 32, 128>}, {pipeline_mode = #tpu.pipeline_mode<synchronous>, transform_indices = @transform_3, window_bounds = array<i64: 2, 128>}]} {
    %c0_i32 = arith.constant 0 : i32
    %0 = arith.cmpi eq, %arg0, %c0_i32 : i32
    %1 = arith.extui %0 : i1 to i32
    %c0_i32_0 = arith.constant 0 : i32
    %2 = arith.cmpi ne, %1, %c0_i32_0 : i32
    scf.if %2 {
      %cst_12 = arith.constant 0.000000e+00 : f32
      %16 = vector.broadcast %cst_12 : f32 to vector<2x128xf32>
      %c0_13 = arith.constant 0 : index
      %c0_14 = arith.constant 0 : index
      %17 = vector.load %arg4[%c0_13, %c0_14] : memref<2x128xf32, #tpu.memory_space<vmem>>, vector<2x128xf32>
      tpu.vector_store %arg4[%c0_13, %c0_14], %16 {strides = array<i32>} : memref<2x128xf32, #tpu.memory_space<vmem>>, vector<2x128xf32>,
    } else {
    }
    %c0 = arith.constant 0 : index
    %c0_1 = arith.constant 0 : index
    %3 = vector.load %arg1[%c0, %c0_1] : memref<32x576xbf16, #tpu.memory_space<vmem>>, vector<32x576xbf16>
    %c0_2 = arith.constant 0 : index
    %c0_3 = arith.constant 0 : index
    %4 = vector.load %arg2[%c0_2, %c0_3] : memref<576x128xbf16, #tpu.memory_space<vmem>>, vector<576x128xbf16>
    %cst = arith.constant dense<0.000000e+00> : vector<32x128xf32>
    %5 = tpu.matmul %3, %4, %cst {dimension_numbers = #tpu.dot_dimension_numbers<[1], [0], [0], [1], [0, 0, 1, 1], [], []>} : vector<32x576xbf16>, vector<576x128xbf16>, vector<32x128xf32> -> vector<32x128xf32>
    %c0_4 = arith.constant 0 : index
    %c0_5 = arith.constant 0 : index
    %6 = vector.load %arg3[%c0_4, %c0_5] : memref<32x128xf32, #tpu.memory_space<vmem>>, vector<32x128xf32>
    tpu.vector_store %arg3[%c0_4, %c0_5], %5 {strides = array<i32>} : memref<32x128xf32, #tpu.memory_space<vmem>>, vector<32x128xf32>,
    %c0_6 = arith.constant 0 : index
    %c0_7 = arith.constant 0 : index
    %7 = vector.load %arg4[%c0_6, %c0_7] : memref<2x128xf32, #tpu.memory_space<vmem>>, vector<2x128xf32>
    %cst_8 = arith.constant dense<0.000000e+00> : vector<128xf32>
    %8 = vector.multi_reduction <add>, %5, %cst_8 [0] : vector<32x128xf32> to vector<128xf32>
    %9 = vector.shape_cast %8 : vector<128xf32> to vector<1x128xf32>
    %10 = arith.mulf %5, %5 : vector<32x128xf32>
    %cst_9 = arith.constant dense<0.000000e+00> : vector<128xf32>
    %11 = vector.multi_reduction <add>, %10, %cst_9 [0] : vector<32x128xf32> to vector<128xf32>
    %12 = vector.shape_cast %11 : vector<128xf32> to vector<1x128xf32>
    %13 = tpu.concatenate %9, %12 in 0 : vector<1x128xf32>, vector<1x128xf32> -> vector<2x128xf32>
    %14 = arith.addf %7, %13 : vector<2x128xf32>
    %c0_10 = arith.constant 0 : index
    %c0_11 = arith.constant 0 : index
    %15 = vector.load %arg4[%c0_10, %c0_11] : memref<2x128xf32, #tpu.memory_space<vmem>>, vector<2x128xf32>
    tpu.vector_store %arg4[%c0_10, %c0_11], %14 {strides = array<i32>} : memref<2x128xf32, #tpu.memory_space<vmem>>, vector<2x128xf32>,
    return
  }
  func.func @transform_0(%arg0: i32) -> (i32, i32) {
    %c0_i32 = arith.constant 0 : i32
    %c0_i32_0 = arith.constant 0 : i32
    return %arg0, %c0_i32 : i32, i32
  }
  func.func @transform_1(%arg0: i32) -> (i32, i32) {
    %c0_i32 = arith.constant 0 : i32
    %c0_i32_0 = arith.constant 0 : i32
    %c0_i32_1 = arith.constant 0 : i32
    return %c0_i32, %c0_i32_0 : i32, i32
  }
  func.func @transform_2(%arg0: i32) -> (i32, i32) {
    %c0_i32 = arith.constant 0 : i32
    %c0_i32_0 = arith.constant 0 : i32
    return %arg0, %c0_i32 : i32, i32
  }
  func.func @transform_3(%arg0: i32) -> (i32, i32) {
    %c0_i32 = arith.constant 0 : i32
    %c0_i32_0 = arith.constant 0 : i32
    %c0_i32_1 = arith.constant 0 : i32
    return %c0_i32, %c0_i32_0 : i32, i32
  }
}

module attributes {stable_mosaic.version = 11 : i64} {
  func.func @bn_relu_kernel(%arg0: i32, %arg1: memref<32x128xf32, #tpu.memory_space<vmem>>, %arg2: memref<1x128xf32, #tpu.memory_space<vmem>>, %arg3: memref<1x128xf32, #tpu.memory_space<vmem>>, %arg4: memref<32x128xf32, #tpu.memory_space<vmem>>) attributes {dimension_semantics = [#tpu.dimension_semantics<parallel>], iteration_bounds = array<i64: 1>, scalar_prefetch = 0 : i64, scratch_operands = 0 : i64, tpu.core_type = #tpu.core_type<tc>, window_params = [{transform_indices = @transform_0, window_bounds = array<i64: 32, 128>}, {pipeline_mode = #tpu.pipeline_mode<synchronous>, transform_indices = @transform_1, window_bounds = array<i64: 1, 128>}, {pipeline_mode = #tpu.pipeline_mode<synchronous>, transform_indices = @transform_2, window_bounds = array<i64: 1, 128>}, {transform_indices = @transform_3, window_bounds = array<i64: 32, 128>}]} {
    %c0 = arith.constant 0 : index
    %c0_0 = arith.constant 0 : index
    %0 = vector.load %arg1[%c0, %c0_0] : memref<32x128xf32, #tpu.memory_space<vmem>>, vector<32x128xf32>
    %c0_1 = arith.constant 0 : index
    %c0_2 = arith.constant 0 : index
    %1 = vector.load %arg2[%c0_1, %c0_2] : memref<1x128xf32, #tpu.memory_space<vmem>>, vector<1x128xf32>
    %2 = vector.broadcast %1 : vector<1x128xf32> to vector<32x128xf32>
    %3 = arith.mulf %0, %2 : vector<32x128xf32>
    %c0_3 = arith.constant 0 : index
    %c0_4 = arith.constant 0 : index
    %4 = vector.load %arg3[%c0_3, %c0_4] : memref<1x128xf32, #tpu.memory_space<vmem>>, vector<1x128xf32>
    %5 = vector.broadcast %4 : vector<1x128xf32> to vector<32x128xf32>
    %6 = arith.addf %3, %5 : vector<32x128xf32>
    %cst = arith.constant 0.000000e+00 : f32
    %7 = vector.broadcast %cst : f32 to vector<32x128xf32>
    %8 = arith.maximumf %6, %7 : vector<32x128xf32>
    %c0_5 = arith.constant 0 : index
    %c0_6 = arith.constant 0 : index
    %9 = vector.load %arg4[%c0_5, %c0_6] : memref<32x128xf32, #tpu.memory_space<vmem>>, vector<32x128xf32>
    tpu.vector_store %arg4[%c0_5, %c0_6], %8 {strides = array<i32>} : memref<32x128xf32, #tpu.memory_space<vmem>>, vector<32x128xf32>,
    return
  }
  func.func @transform_0(%arg0: i32) -> (i32, i32) {
    %c0_i32 = arith.constant 0 : i32
    %c0_i32_0 = arith.constant 0 : i32
    return %arg0, %c0_i32 : i32, i32
  }
  func.func @transform_1(%arg0: i32) -> (i32, i32) {
    %c0_i32 = arith.constant 0 : i32
    %c0_i32_0 = arith.constant 0 : i32
    %c0_i32_1 = arith.constant 0 : i32
    return %c0_i32, %c0_i32_0 : i32, i32
  }
  func.func @transform_2(%arg0: i32) -> (i32, i32) {
    %c0_i32 = arith.constant 0 : i32
    %c0_i32_0 = arith.constant 0 : i32
    %c0_i32_1 = arith.constant 0 : i32
    return %c0_i32, %c0_i32_0 : i32, i32
  }
  func.func @transform_3(%arg0: i32) -> (i32, i32) {
    %c0_i32 = arith.constant 0 : i32
    %c0_i32_0 = arith.constant 0 : i32
    return %arg0, %c0_i32 : i32, i32
  }
}

module attributes {stable_mosaic.version = 11 : i64} {
  func.func @matmul_stats_kernel(%arg0: i32, %arg1: memref<72x448xbf16, #tpu.memory_space<vmem>>, %arg2: memref<448x128xbf16, #tpu.memory_space<vmem>>, %arg3: memref<72x128xf32, #tpu.memory_space<vmem>>, %arg4: memref<2x128xf32, #tpu.memory_space<vmem>>) attributes {dimension_semantics = [#tpu.dimension_semantics<arbitrary>], iteration_bounds = array<i64: 1>, scalar_prefetch = 0 : i64, scratch_operands = 0 : i64, tpu.core_type = #tpu.core_type<tc>, window_params = [{transform_indices = @transform_0, window_bounds = array<i64: 72, 448>}, {pipeline_mode = #tpu.pipeline_mode<synchronous>, transform_indices = @transform_1, window_bounds = array<i64: 448, 128>}, {transform_indices = @transform_2, window_bounds = array<i64: 72, 128>}, {pipeline_mode = #tpu.pipeline_mode<synchronous>, transform_indices = @transform_3, window_bounds = array<i64: 2, 128>}]} {
    %c0_i32 = arith.constant 0 : i32
    %0 = arith.cmpi eq, %arg0, %c0_i32 : i32
    %1 = arith.extui %0 : i1 to i32
    %c0_i32_0 = arith.constant 0 : i32
    %2 = arith.cmpi ne, %1, %c0_i32_0 : i32
    scf.if %2 {
      %cst_12 = arith.constant 0.000000e+00 : f32
      %16 = vector.broadcast %cst_12 : f32 to vector<2x128xf32>
      %c0_13 = arith.constant 0 : index
      %c0_14 = arith.constant 0 : index
      %17 = vector.load %arg4[%c0_13, %c0_14] : memref<2x128xf32, #tpu.memory_space<vmem>>, vector<2x128xf32>
      tpu.vector_store %arg4[%c0_13, %c0_14], %16 {strides = array<i32>} : memref<2x128xf32, #tpu.memory_space<vmem>>, vector<2x128xf32>,
    } else {
    }
    %c0 = arith.constant 0 : index
    %c0_1 = arith.constant 0 : index
    %3 = vector.load %arg1[%c0, %c0_1] : memref<72x448xbf16, #tpu.memory_space<vmem>>, vector<72x448xbf16>
    %c0_2 = arith.constant 0 : index
    %c0_3 = arith.constant 0 : index
    %4 = vector.load %arg2[%c0_2, %c0_3] : memref<448x128xbf16, #tpu.memory_space<vmem>>, vector<448x128xbf16>
    %cst = arith.constant dense<0.000000e+00> : vector<72x128xf32>
    %5 = tpu.matmul %3, %4, %cst {dimension_numbers = #tpu.dot_dimension_numbers<[1], [0], [0], [1], [0, 0, 1, 1], [], []>} : vector<72x448xbf16>, vector<448x128xbf16>, vector<72x128xf32> -> vector<72x128xf32>
    %c0_4 = arith.constant 0 : index
    %c0_5 = arith.constant 0 : index
    %6 = vector.load %arg3[%c0_4, %c0_5] : memref<72x128xf32, #tpu.memory_space<vmem>>, vector<72x128xf32>
    tpu.vector_store %arg3[%c0_4, %c0_5], %5 {strides = array<i32>} : memref<72x128xf32, #tpu.memory_space<vmem>>, vector<72x128xf32>,
    %c0_6 = arith.constant 0 : index
    %c0_7 = arith.constant 0 : index
    %7 = vector.load %arg4[%c0_6, %c0_7] : memref<2x128xf32, #tpu.memory_space<vmem>>, vector<2x128xf32>
    %cst_8 = arith.constant dense<0.000000e+00> : vector<128xf32>
    %8 = vector.multi_reduction <add>, %5, %cst_8 [0] : vector<72x128xf32> to vector<128xf32>
    %9 = vector.shape_cast %8 : vector<128xf32> to vector<1x128xf32>
    %10 = arith.mulf %5, %5 : vector<72x128xf32>
    %cst_9 = arith.constant dense<0.000000e+00> : vector<128xf32>
    %11 = vector.multi_reduction <add>, %10, %cst_9 [0] : vector<72x128xf32> to vector<128xf32>
    %12 = vector.shape_cast %11 : vector<128xf32> to vector<1x128xf32>
    %13 = tpu.concatenate %9, %12 in 0 : vector<1x128xf32>, vector<1x128xf32> -> vector<2x128xf32>
    %14 = arith.addf %7, %13 : vector<2x128xf32>
    %c0_10 = arith.constant 0 : index
    %c0_11 = arith.constant 0 : index
    %15 = vector.load %arg4[%c0_10, %c0_11] : memref<2x128xf32, #tpu.memory_space<vmem>>, vector<2x128xf32>
    tpu.vector_store %arg4[%c0_10, %c0_11], %14 {strides = array<i32>} : memref<2x128xf32, #tpu.memory_space<vmem>>, vector<2x128xf32>,
    return
  }
  func.func @transform_0(%arg0: i32) -> (i32, i32) {
    %c0_i32 = arith.constant 0 : i32
    %c0_i32_0 = arith.constant 0 : i32
    return %arg0, %c0_i32 : i32, i32
  }
  func.func @transform_1(%arg0: i32) -> (i32, i32) {
    %c0_i32 = arith.constant 0 : i32
    %c0_i32_0 = arith.constant 0 : i32
    %c0_i32_1 = arith.constant 0 : i32
    return %c0_i32, %c0_i32_0 : i32, i32
  }
  func.func @transform_2(%arg0: i32) -> (i32, i32) {
    %c0_i32 = arith.constant 0 : i32
    %c0_i32_0 = arith.constant 0 : i32
    return %arg0, %c0_i32 : i32, i32
  }
  func.func @transform_3(%arg0: i32) -> (i32, i32) {
    %c0_i32 = arith.constant 0 : i32
    %c0_i32_0 = arith.constant 0 : i32
    %c0_i32_1 = arith.constant 0 : i32
    return %c0_i32, %c0_i32_0 : i32, i32
  }
}

module attributes {stable_mosaic.version = 11 : i64} {
  func.func @maxpool_kernel(%arg0: i32, %arg1: memref<1x6x6x192xf32, #tpu.memory_space<vmem>>, %arg2: memref<1x4x4x192xf32, #tpu.memory_space<vmem>>) attributes {dimension_semantics = [#tpu.dimension_semantics<parallel>], iteration_bounds = array<i64: 2>, scalar_prefetch = 0 : i64, scratch_operands = 0 : i64, tpu.core_type = #tpu.core_type<tc>, window_params = [{transform_indices = @transform_0, window_bounds = array<i64: 1, 6, 6, 192>}, {transform_indices = @transform_1, window_bounds = array<i64: 1, 4, 4, 192>}]} {
    %c0 = arith.constant 0 : index
    %c0_0 = arith.constant 0 : index
    %c0_1 = arith.constant 0 : index
    %c0_2 = arith.constant 0 : index
    %0 = vector.load %arg1[%c0, %c0_0, %c0_1, %c0_2] : memref<1x6x6x192xf32, #tpu.memory_space<vmem>>, vector<1x6x6x192xf32>
    %1 = vector.extract_strided_slice %0 {offsets = [0, 0, 0, 0], sizes = [1, 4, 4, 192], strides = [1, 1, 1, 1]} : vector<1x6x6x192xf32> to vector<1x4x4x192xf32>
    %2 = vector.extract_strided_slice %0 {offsets = [0, 0, 1, 0], sizes = [1, 4, 4, 192], strides = [1, 1, 1, 1]} : vector<1x6x6x192xf32> to vector<1x4x4x192xf32>
    %3 = arith.maximumf %1, %2 : vector<1x4x4x192xf32>
    %4 = vector.extract_strided_slice %0 {offsets = [0, 0, 2, 0], sizes = [1, 4, 4, 192], strides = [1, 1, 1, 1]} : vector<1x6x6x192xf32> to vector<1x4x4x192xf32>
    %5 = arith.maximumf %3, %4 : vector<1x4x4x192xf32>
    %6 = vector.extract_strided_slice %0 {offsets = [0, 1, 0, 0], sizes = [1, 4, 4, 192], strides = [1, 1, 1, 1]} : vector<1x6x6x192xf32> to vector<1x4x4x192xf32>
    %7 = arith.maximumf %5, %6 : vector<1x4x4x192xf32>
    %8 = vector.extract_strided_slice %0 {offsets = [0, 1, 1, 0], sizes = [1, 4, 4, 192], strides = [1, 1, 1, 1]} : vector<1x6x6x192xf32> to vector<1x4x4x192xf32>
    %9 = arith.maximumf %7, %8 : vector<1x4x4x192xf32>
    %10 = vector.extract_strided_slice %0 {offsets = [0, 1, 2, 0], sizes = [1, 4, 4, 192], strides = [1, 1, 1, 1]} : vector<1x6x6x192xf32> to vector<1x4x4x192xf32>
    %11 = arith.maximumf %9, %10 : vector<1x4x4x192xf32>
    %12 = vector.extract_strided_slice %0 {offsets = [0, 2, 0, 0], sizes = [1, 4, 4, 192], strides = [1, 1, 1, 1]} : vector<1x6x6x192xf32> to vector<1x4x4x192xf32>
    %13 = arith.maximumf %11, %12 : vector<1x4x4x192xf32>
    %14 = vector.extract_strided_slice %0 {offsets = [0, 2, 1, 0], sizes = [1, 4, 4, 192], strides = [1, 1, 1, 1]} : vector<1x6x6x192xf32> to vector<1x4x4x192xf32>
    %15 = arith.maximumf %13, %14 : vector<1x4x4x192xf32>
    %16 = vector.extract_strided_slice %0 {offsets = [0, 2, 2, 0], sizes = [1, 4, 4, 192], strides = [1, 1, 1, 1]} : vector<1x6x6x192xf32> to vector<1x4x4x192xf32>
    %17 = arith.maximumf %15, %16 : vector<1x4x4x192xf32>
    %c0_3 = arith.constant 0 : index
    %c0_4 = arith.constant 0 : index
    %c0_5 = arith.constant 0 : index
    %c0_6 = arith.constant 0 : index
    %18 = vector.load %arg2[%c0_3, %c0_4, %c0_5, %c0_6] : memref<1x4x4x192xf32, #tpu.memory_space<vmem>>, vector<1x4x4x192xf32>
    tpu.vector_store %arg2[%c0_3, %c0_4, %c0_5, %c0_6], %17 {strides = array<i32>} : memref<1x4x4x192xf32, #tpu.memory_space<vmem>>, vector<1x4x4x192xf32>,
    return
  }
  func.func @transform_0(%arg0: i32) -> (i32, i32, i32, i32) {
    %c0_i32 = arith.constant 0 : i32
    %c0_i32_0 = arith.constant 0 : i32
    %c0_i32_1 = arith.constant 0 : i32
    %c0_i32_2 = arith.constant 0 : i32
    return %arg0, %c0_i32, %c0_i32_0, %c0_i32_1 : i32, i32, i32, i32
  }
  func.func @transform_1(%arg0: i32) -> (i32, i32, i32, i32) {
    %c0_i32 = arith.constant 0 : i32
    %c0_i32_0 = arith.constant 0 : i32
    %c0_i32_1 = arith.constant 0 : i32
    %c0_i32_2 = arith.constant 0 : i32
    return %arg0, %c0_i32, %c0_i32_0, %c0_i32_1 : i32, i32, i32, i32
  }
}

module attributes {stable_mosaic.version = 11 : i64} {
  func.func @matmul_stats_kernel(%arg0: i32, %arg1: memref<32x1728xbf16, #tpu.memory_space<vmem>>, %arg2: memref<1728x192xbf16, #tpu.memory_space<vmem>>, %arg3: memref<32x192xf32, #tpu.memory_space<vmem>>, %arg4: memref<2x192xf32, #tpu.memory_space<vmem>>) attributes {dimension_semantics = [#tpu.dimension_semantics<arbitrary>], iteration_bounds = array<i64: 1>, scalar_prefetch = 0 : i64, scratch_operands = 0 : i64, tpu.core_type = #tpu.core_type<tc>, window_params = [{transform_indices = @transform_0, window_bounds = array<i64: 32, 1728>}, {pipeline_mode = #tpu.pipeline_mode<synchronous>, transform_indices = @transform_1, window_bounds = array<i64: 1728, 192>}, {transform_indices = @transform_2, window_bounds = array<i64: 32, 192>}, {pipeline_mode = #tpu.pipeline_mode<synchronous>, transform_indices = @transform_3, window_bounds = array<i64: 2, 192>}]} {
    %c0_i32 = arith.constant 0 : i32
    %0 = arith.cmpi eq, %arg0, %c0_i32 : i32
    %1 = arith.extui %0 : i1 to i32
    %c0_i32_0 = arith.constant 0 : i32
    %2 = arith.cmpi ne, %1, %c0_i32_0 : i32
    scf.if %2 {
      %cst_12 = arith.constant 0.000000e+00 : f32
      %16 = vector.broadcast %cst_12 : f32 to vector<2x192xf32>
      %c0_13 = arith.constant 0 : index
      %c0_14 = arith.constant 0 : index
      %17 = vector.load %arg4[%c0_13, %c0_14] : memref<2x192xf32, #tpu.memory_space<vmem>>, vector<2x192xf32>
      tpu.vector_store %arg4[%c0_13, %c0_14], %16 {strides = array<i32>} : memref<2x192xf32, #tpu.memory_space<vmem>>, vector<2x192xf32>,
    } else {
    }
    %c0 = arith.constant 0 : index
    %c0_1 = arith.constant 0 : index
    %3 = vector.load %arg1[%c0, %c0_1] : memref<32x1728xbf16, #tpu.memory_space<vmem>>, vector<32x1728xbf16>
    %c0_2 = arith.constant 0 : index
    %c0_3 = arith.constant 0 : index
    %4 = vector.load %arg2[%c0_2, %c0_3] : memref<1728x192xbf16, #tpu.memory_space<vmem>>, vector<1728x192xbf16>
    %cst = arith.constant dense<0.000000e+00> : vector<32x192xf32>
    %5 = tpu.matmul %3, %4, %cst {dimension_numbers = #tpu.dot_dimension_numbers<[1], [0], [0], [1], [0, 0, 1, 1], [], []>} : vector<32x1728xbf16>, vector<1728x192xbf16>, vector<32x192xf32> -> vector<32x192xf32>
    %c0_4 = arith.constant 0 : index
    %c0_5 = arith.constant 0 : index
    %6 = vector.load %arg3[%c0_4, %c0_5] : memref<32x192xf32, #tpu.memory_space<vmem>>, vector<32x192xf32>
    tpu.vector_store %arg3[%c0_4, %c0_5], %5 {strides = array<i32>} : memref<32x192xf32, #tpu.memory_space<vmem>>, vector<32x192xf32>,
    %c0_6 = arith.constant 0 : index
    %c0_7 = arith.constant 0 : index
    %7 = vector.load %arg4[%c0_6, %c0_7] : memref<2x192xf32, #tpu.memory_space<vmem>>, vector<2x192xf32>
    %cst_8 = arith.constant dense<0.000000e+00> : vector<192xf32>
    %8 = vector.multi_reduction <add>, %5, %cst_8 [0] : vector<32x192xf32> to vector<192xf32>
    %9 = vector.shape_cast %8 : vector<192xf32> to vector<1x192xf32>
    %10 = arith.mulf %5, %5 : vector<32x192xf32>
    %cst_9 = arith.constant dense<0.000000e+00> : vector<192xf32>
    %11 = vector.multi_reduction <add>, %10, %cst_9 [0] : vector<32x192xf32> to vector<192xf32>
    %12 = vector.shape_cast %11 : vector<192xf32> to vector<1x192xf32>
    %13 = tpu.concatenate %9, %12 in 0 : vector<1x192xf32>, vector<1x192xf32> -> vector<2x192xf32>
    %14 = arith.addf %7, %13 : vector<2x192xf32>
    %c0_10 = arith.constant 0 : index
    %c0_11 = arith.constant 0 : index
    %15 = vector.load %arg4[%c0_10, %c0_11] : memref<2x192xf32, #tpu.memory_space<vmem>>, vector<2x192xf32>
    tpu.vector_store %arg4[%c0_10, %c0_11], %14 {strides = array<i32>} : memref<2x192xf32, #tpu.memory_space<vmem>>, vector<2x192xf32>,
    return
  }
  func.func @transform_0(%arg0: i32) -> (i32, i32) {
    %c0_i32 = arith.constant 0 : i32
    %c0_i32_0 = arith.constant 0 : i32
    return %arg0, %c0_i32 : i32, i32
  }
  func.func @transform_1(%arg0: i32) -> (i32, i32) {
    %c0_i32 = arith.constant 0 : i32
    %c0_i32_0 = arith.constant 0 : i32
    %c0_i32_1 = arith.constant 0 : i32
    return %c0_i32, %c0_i32_0 : i32, i32
  }
  func.func @transform_2(%arg0: i32) -> (i32, i32) {
    %c0_i32 = arith.constant 0 : i32
    %c0_i32_0 = arith.constant 0 : i32
    return %arg0, %c0_i32 : i32, i32
  }
  func.func @transform_3(%arg0: i32) -> (i32, i32) {
    %c0_i32 = arith.constant 0 : i32
    %c0_i32_0 = arith.constant 0 : i32
    %c0_i32_1 = arith.constant 0 : i32
    return %c0_i32, %c0_i32_0 : i32, i32
  }
}

module attributes {stable_mosaic.version = 11 : i64} {
  func.func @bn_relu_kernel(%arg0: i32, %arg1: memref<32x192xf32, #tpu.memory_space<vmem>>, %arg2: memref<1x192xf32, #tpu.memory_space<vmem>>, %arg3: memref<1x192xf32, #tpu.memory_space<vmem>>, %arg4: memref<32x192xf32, #tpu.memory_space<vmem>>) attributes {dimension_semantics = [#tpu.dimension_semantics<parallel>], iteration_bounds = array<i64: 1>, scalar_prefetch = 0 : i64, scratch_operands = 0 : i64, tpu.core_type = #tpu.core_type<tc>, window_params = [{transform_indices = @transform_0, window_bounds = array<i64: 32, 192>}, {pipeline_mode = #tpu.pipeline_mode<synchronous>, transform_indices = @transform_1, window_bounds = array<i64: 1, 192>}, {pipeline_mode = #tpu.pipeline_mode<synchronous>, transform_indices = @transform_2, window_bounds = array<i64: 1, 192>}, {transform_indices = @transform_3, window_bounds = array<i64: 32, 192>}]} {
    %c0 = arith.constant 0 : index
    %c0_0 = arith.constant 0 : index
    %0 = vector.load %arg1[%c0, %c0_0] : memref<32x192xf32, #tpu.memory_space<vmem>>, vector<32x192xf32>
    %c0_1 = arith.constant 0 : index
    %c0_2 = arith.constant 0 : index
    %1 = vector.load %arg2[%c0_1, %c0_2] : memref<1x192xf32, #tpu.memory_space<vmem>>, vector<1x192xf32>
    %2 = vector.broadcast %1 : vector<1x192xf32> to vector<32x192xf32>
    %3 = arith.mulf %0, %2 : vector<32x192xf32>
    %c0_3 = arith.constant 0 : index
    %c0_4 = arith.constant 0 : index
    %4 = vector.load %arg3[%c0_3, %c0_4] : memref<1x192xf32, #tpu.memory_space<vmem>>, vector<1x192xf32>
    %5 = vector.broadcast %4 : vector<1x192xf32> to vector<32x192xf32>
    %6 = arith.addf %3, %5 : vector<32x192xf32>
    %cst = arith.constant 0.000000e+00 : f32
    %7 = vector.broadcast %cst : f32 to vector<32x192xf32>
    %8 = arith.maximumf %6, %7 : vector<32x192xf32>
    %c0_5 = arith.constant 0 : index
    %c0_6 = arith.constant 0 : index
    %9 = vector.load %arg4[%c0_5, %c0_6] : memref<32x192xf32, #tpu.memory_space<vmem>>, vector<32x192xf32>
    tpu.vector_store %arg4[%c0_5, %c0_6], %8 {strides = array<i32>} : memref<32x192xf32, #tpu.memory_space<vmem>>, vector<32x192xf32>,
    return
  }
  func.func @transform_0(%arg0: i32) -> (i32, i32) {
    %c0_i32 = arith.constant 0 : i32
    %c0_i32_0 = arith.constant 0 : i32
    return %arg0, %c0_i32 : i32, i32
  }
  func.func @transform_1(%arg0: i32) -> (i32, i32) {
    %c0_i32 = arith.constant 0 : i32
    %c0_i32_0 = arith.constant 0 : i32
    %c0_i32_1 = arith.constant 0 : i32
    return %c0_i32, %c0_i32_0 : i32, i32
  }
  func.func @transform_2(%arg0: i32) -> (i32, i32) {
    %c0_i32 = arith.constant 0 : i32
    %c0_i32_0 = arith.constant 0 : i32
    %c0_i32_1 = arith.constant 0 : i32
    return %c0_i32, %c0_i32_0 : i32, i32
  }
  func.func @transform_3(%arg0: i32) -> (i32, i32) {
    %c0_i32 = arith.constant 0 : i32
    %c0_i32_0 = arith.constant 0 : i32
    return %arg0, %c0_i32 : i32, i32
  }
}

</mosaic_0001>

<bundles_post_ra>
// kernel: stem_v4_res2_forward.21
= control target key start
LH: loop header
LB: loop body
LE: loop exit
PB: predicated region body
PF: predicated region fallthrough
CT: control target
= control target key end

     0   :  { %s623_s0 = inlined_call_operand.vmem [shape: f32[344,128], index: 0, kind: input, shape index: {}]   ;;  %s624_s1 = inlined_call_operand.vmem [shape: f32[1,128], index: 1, kind: input, shape index: {}]   ;;  %s625_s2 = inlined_call_operand.vmem [shape: f32[1,128], index: 2, kind: input, shape index: {}]   ;;  %s626_s3 = inlined_call_operand.vmem [shape: f32[344,128], index: 3, kind: output, shape index: {}]  }
   0x1   :  { %v14_v0 = vld [vmem:[%s623_s0] sm:$0xff]  ;;  %v15_v4 = vld [vmem:[%s623_s0 + $0x8] sm:$0xff]  ;;  %v16_v5 = vld [vmem:[%s623_s0 + $0x10] sm:$0xff] }
   0x2   :  { %v275_v1 = vld [vmem:[%s624_s1] ss:$0 sm:$0xff]  ;;  %v17_v6 = vld [vmem:[%s623_s0 + $0x18] sm:$0xff]  ;;  %v19_v11 = vld [vmem:[%s623_s0 + $0x28] sm:$0xff] }
   0x3   :  { %v280_v2 = vld [vmem:[%s625_s2] ss:$0 sm:$0xff]  ;;  %v64_v3 = vmul.f32 %v275_v1, %v14_v0  ;;  %v65_v7 = vmul.f32 %v275_v1, %v15_v4  ;;  %v66_v8 = vmul.f32 %v275_v1, %v16_v5  ;;  %v67_v9 = vmul.f32 %v275_v1, %v17_v6  ;;  %v20_v12 = vld [vmem:[%s623_s0 + $0x30] sm:$0xff]  ;;  %v21_v17 = vld [vmem:[%s623_s0 + $0x38] sm:$0xff] }
   0x4   :  { %v18_v10 = vld [vmem:[%s623_s0 + $0x20] sm:$0xff]  ;;  %v69_v15 = vmul.f32 %v275_v1, %v19_v11  ;;  %v70_v16 = vmul.f32 %v275_v1, %v20_v12  ;;  %v71_v21 = vmul.f32 %v275_v1, %v21_v17  ;;  %v23_v27 = vld [vmem:[%s623_s0 + $0x48] sm:$0xff]  ;;  %v24_v28 = vld [vmem:[%s623_s0 + $0x50] sm:$0xff] }
   0x5   :  { %v114_v13 = vadd.f32 %v280_v2, %v64_v3  ;;  %v68_v14 = vmul.f32 %v275_v1, %v18_v10  ;;  %v115_v18 = vadd.f32 %v280_v2, %v65_v7  ;;  %v116_v19 = vadd.f32 %v280_v2, %v66_v8  ;;  %v22_v22 = vld [vmem:[%s623_s0 + $0x40] sm:$0xff]  ;;  %v25_v29 = vld [vmem:[%s623_s0 + $0x58] sm:$0xff]  ;;  %v27_v35 = vld [vmem:[%s623_s0 + $0x68] sm:$0xff] }
   0x6   :  { %v117_v20 = vadd.f32 %v280_v2, %v67_v9  ;;  %v119_v25 = vadd.f32 %v280_v2, %v69_v15  ;;  %v120_v26 = vadd.f32 %v280_v2, %v70_v16  ;;  %v121_v33 = vadd.f32 %v280_v2, %v71_v21  ;;  %v26_v34 = vld [vmem:[%s623_s0 + $0x60] sm:$0xff]  ;;  %v28_v36 = vld [vmem:[%s623_s0 + $0x70] sm:$0xff]  ;;  %v29_v41 = vld [vmem:[%s623_s0 + $0x78] sm:$0xff] }
   0x7   :  { %v157_v23 = vmax.f32 %v114_v13, 0.0  ;;  %v118_v24 = vadd.f32 %v280_v2, %v68_v14  ;;  %v158_v30 = vmax.f32 %v115_v18, 0.0  ;;  %v159_v31 = vmax.f32 %v116_v19, 0.0  ;;  %v30_v54 = vld [vmem:[%s623_s0 + $0x80] sm:$0xff]  ;;  %v31_v59 = vld [vmem:[%s623_s0 + $0x88] sm:$0xff]  ;;  %v32_v60 = vld [vmem:[%s623_s0 + $0x90] sm:$0xff] }
   0x8   :  { %v160_v32 = vmax.f32 %v117_v20, 0.0  ;;  %v162_v38 = vmax.f32 %v119_v25, 0.0  ;;  %v163_v39 = vmax.f32 %v120_v26, 0.0  ;;  %v72_v40 = vmul.f32 %v275_v1, %v22_v22  ;;  %v33_v61 = vld [vmem:[%s623_s0 + $0x98] sm:$0xff]  ;;  %v34_v4 = vld [vmem:[%s623_s0 + $0xa0] sm:$0xff]  ;;  %v35_v5 = vld [vmem:[%s623_s0 + $0xa8] sm:$0xff] }
   0x9   :  { %200 = vst [vmem:[%s626_s3] sm:$0xff] %v157_v23  ;;  %v161_v37 = vmax.f32 %v118_v24, 0.0  ;;  %201 = vst [vmem:[%s626_s3 + $0x8] sm:$0xff] %v158_v30  ;;  %v164_v42 = vmax.f32 %v121_v33, 0.0  ;;  %v73_v43 = vmul.f32 %v275_v1, %v23_v27  ;;  %v74_v44 = vmul.f32 %v275_v1, %v24_v28  ;;  %v36_v6 = vld [vmem:[%s623_s0 + $0xb0] sm:$0xff]  ;;  %v37_v11 = vld [vmem:[%s623_s0 + $0xb8] sm:$0xff] }
   0xa   :  { %202 = vst [vmem:[%s626_s3 + $0x10] sm:$0xff] %v159_v31  ;;  %203 = vst [vmem:[%s626_s3 + $0x18] sm:$0xff] %v160_v32  ;;  %v75_v45 = vmul.f32 %v275_v1, %v25_v29  ;;  %v122_v46 = vadd.f32 %v280_v2, %v72_v40  ;;  %v76_v47 = vmul.f32 %v275_v1, %v26_v34  ;;  %v38_v24 = vld [vmem:[%s623_s0 + $0xc0] sm:$0xff]  ;;  %v39_v29 = vld [vmem:[%s623_s0 + $0xc8] sm:$0xff] }
   0xb   :  { %204 = vst [vmem:[%s626_s3 + $0x20] sm:$0xff] %v161_v37  ;;  %205 = vst [vmem:[%s626_s3 + $0x28] sm:$0xff] %v162_v38  ;;  %v77_v48 = vmul.f32 %v275_v1, %v27_v35  ;;  %v78_v49 = vmul.f32 %v275_v1, %v28_v36  ;;  %v123_v50 = vadd.f32 %v280_v2, %v73_v43  ;;  %v40_v30 = vld [vmem:[%s623_s0 + $0xd0] sm:$0xff]  ;;  %v41_v31 = vld [vmem:[%s623_s0 + $0xd8] sm:$0xff] }
   0xc   :  { %206 = vst [vmem:[%s626_s3 + $0x30] sm:$0xff] %v163_v39  ;;  %207 = vst [vmem:[%s626_s3 + $0x38] sm:$0xff] %v164_v42  ;;  %v124_v51 = vadd.f32 %v280_v2, %v74_v44  ;;  %v125_v52 = vadd.f32 %v280_v2, %v75_v45  ;;  %v79_v53 = vmul.f32 %v275_v1, %v29_v41  ;;  %v165_v55 = vmax.f32 %v122_v46, 0.0  ;;  %v42_v36 = vld [vmem:[%s623_s0 + $0xe0] sm:$0xff]  ;;  %v43_v37 = vld [vmem:[%s623_s0 + $0xe8] sm:$0xff] }
   0xd   :  { %v126_v56 = vadd.f32 %v280_v2, %v76_v47  ;;  %v127_v57 = vadd.f32 %v280_v2, %v77_v48  ;;  %v128_v58 = vadd.f32 %v280_v2, %v78_v49  ;;  %v166_v62 = vmax.f32 %v123_v50, 0.0  ;;  %v44_v38 = vld [vmem:[%s623_s0 + $0xf0] sm:$0xff]  ;;  %v45_v43 = vld [vmem:[%s623_s0 + $0xf8] sm:$0xff] }
   0xe   :  { %v167_v63 = vmax.f32 %v124_v51, 0.0  ;;  %v168_v0 = vmax.f32 %v125_v52, 0.0  ;;  %v129_v3 = vadd.f32 %v280_v2, %v79_v53  ;;  %208 = vst [vmem:[%s626_s3 + $0x40] sm:$0xff] %v165_v55  ;;  %v80_v10 = vmul.f32 %v275_v1, %v30_v54 }
   0xf   :  { %v169_v7 = vmax.f32 %v126_v56, 0.0  ;;  %v170_v8 = vmax.f32 %v127_v57, 0.0  ;;  %v171_v9 = vmax.f32 %v128_v58, 0.0  ;;  %209 = vst [vmem:[%s626_s3 + $0x48] sm:$0xff] %v166_v62  ;;  %v81_v13 = vmul.f32 %v275_v1, %v31_v59  ;;  %v46_v56 = vld [vmem:[%s623_s0 + $0x100] sm:$0xff]  ;;  %v48_v62 = vld [vmem:[%s623_s0 + $0x110] sm:$0xff] }
  0x10   :  { %210 = vst [vmem:[%s626_s3 + $0x50] sm:$0xff] %v167_v63  ;;  %211 = vst [vmem:[%s626_s3 + $0x58] sm:$0xff] %v168_v0  ;;  %v172_v12 = vmax.f32 %v129_v3, 0.0  ;;  %v82_v14 = vmul.f32 %v275_v1, %v32_v60  ;;  %v83_v15 = vmul.f32 %v275_v1, %v33_v61  ;;  %v130_v16 = vadd.f32 %v280_v2, %v80_v10  ;;  %v47_v61 = vld [vmem:[%s623_s0 + $0x108] sm:$0xff]  ;;  %v49_v63 = vld [vmem:[%s623_s0 + $0x118] sm:$0xff] }
  0x11   :  { %212 = vst [vmem:[%s626_s3 + $0x60] sm:$0xff] %v169_v7  ;;  %213 = vst [vmem:[%s626_s3 + $0x68] sm:$0xff] %v170_v8  ;;  %v84_v17 = vmul.f32 %v275_v1, %v34_v4  ;;  %v85_v18 = vmul.f32 %v275_v1, %v35_v5  ;;  %v86_v19 = vmul.f32 %v275_v1, %v36_v6  ;;  %v50_v6 = vld [vmem:[%s623_s0 + $0x120] sm:$0xff]  ;;  %v51_v7 = vld [vmem:[%s623_s0 + $0x128] sm:$0xff] }
  0x12   :  { %214 = vst [vmem:[%s626_s3 + $0x70] sm:$0xff] %v171_v9  ;;  %215 = vst [vmem:[%s626_s3 + $0x78] sm:$0xff] %v172_v12  ;;  %v131_v20 = vadd.f32 %v280_v2, %v81_v13  ;;  %v132_v21 = vadd.f32 %v280_v2, %v82_v14  ;;  %v133_v22 = vadd.f32 %v280_v2, %v83_v15  ;;  %v173_v25 = vmax.f32 %v130_v16, 0.0  ;;  %v52_v8 = vld [vmem:[%s623_s0 + $0x130] sm:$0xff]  ;;  %v53_v13 = vld [vmem:[%s623_s0 + $0x138] sm:$0xff] }
  0x13   :  { %v87_v23 = vmul.f32 %v275_v1, %v37_v11  ;;  %v134_v26 = vadd.f32 %v280_v2, %v84_v17  ;;  %v135_v27 = vadd.f32 %v280_v2, %v85_v18  ;;  %v136_v28 = vadd.f32 %v280_v2, %v86_v19 }
  0x14   :  { %v174_v32 = vmax.f32 %v131_v20, 0.0  ;;  %v175_v33 = vmax.f32 %v132_v21, 0.0  ;;  %v176_v34 = vmax.f32 %v133_v22, 0.0  ;;  %216 = vst [vmem:[%s626_s3 + $0x80] sm:$0xff] %v173_v25  ;;  %v88_v42 = vmul.f32 %v275_v1, %v38_v24 }
  0x15   :  { %v137_v35 = vadd.f32 %v280_v2, %v87_v23  ;;  %v177_v39 = vmax.f32 %v134_v26, 0.0  ;;  %v178_v40 = vmax.f32 %v135_v27, 0.0  ;;  %v179_v41 = vmax.f32 %v136_v28, 0.0  ;;  %v54_v26 = vld [vmem:[%s623_s0 + $0x140] sm:$0xff] }
  0x16   :  { %217 = vst [vmem:[%s626_s3 + $0x88] sm:$0xff] %v174_v32  ;;  %218 = vst [vmem:[%s626_s3 + $0x90] sm:$0xff] %v175_v33  ;;  %v89_v45 = vmul.f32 %v275_v1, %v39_v29  ;;  %v90_v46 = vmul.f32 %v275_v1, %v40_v30  ;;  %v91_v47 = vmul.f32 %v275_v1, %v41_v31  ;;  %v55_v31 = vld [vmem:[%s623_s0 + $0x148] sm:$0xff]  ;;  %v56_v32 = vld [vmem:[%s623_s0 + $0x150] sm:$0xff] }
  0x17   :  { %219 = vst [vmem:[%s626_s3 + $0x98] sm:$0xff] %v176_v34  ;;  %v180_v44 = vmax.f32 %v137_v35, 0.0  ;;  %220 = vst [vmem:[%s626_s3 + $0xa0] sm:$0xff] %v177_v39  ;;  %v138_v48 = vadd.f32 %v280_v2, %v88_v42  ;;  %v92_v49 = vmul.f32 %v275_v1, %v42_v36  ;;  %v93_v50 = vmul.f32 %v275_v1, %v43_v37 }
  0x18   :  { %221 = vst [vmem:[%s626_s3 + $0xa8] sm:$0xff] %v178_v40  ;;  %222 = vst [vmem:[%s626_s3 + $0xb0] sm:$0xff] %v179_v41  ;;  %v94_v51 = vmul.f32 %v275_v1, %v44_v38  ;;  %v139_v52 = vadd.f32 %v280_v2, %v89_v45  ;;  %v140_v53 = vadd.f32 %v280_v2, %v90_v46 }
  0x19   :  { %223 = vst [vmem:[%s626_s3 + $0xb8] sm:$0xff] %v180_v44  ;;  %v141_v54 = vadd.f32 %v280_v2, %v91_v47  ;;  %v95_v55 = vmul.f32 %v275_v1, %v45_v43  ;;  %v181_v57 = vmax.f32 %v138_v48, 0.0  ;;  %v142_v58 = vadd.f32 %v280_v2, %v92_v49 }
  0x1a   :  { %v143_v59 = vadd.f32 %v280_v2, %v93_v50  ;;  %v144_v60 = vadd.f32 %v280_v2, %v94_v51  ;;  %v182_v0 = vmax.f32 %v139_v52, 0.0  ;;  %v183_v3 = vmax.f32 %v140_v53, 0.0 }
  0x1b   :  { %v184_v4 = vmax.f32 %v141_v54, 0.0  ;;  %v145_v5 = vadd.f32 %v280_v2, %v95_v55  ;;  %224 = vst [vmem:[%s626_s3 + $0xc0] sm:$0xff] %v181_v57  ;;  %v185_v9 = vmax.f32 %v142_v58, 0.0  ;;  %v96_v12 = vmul.f32 %v275_v1, %v46_v56 }
  0x1c   :  { %v186_v10 = vmax.f32 %v143_v59, 0.0  ;;  %v187_v11 = vmax.f32 %v144_v60, 0.0  ;;  %225 = vst [vmem:[%s626_s3 + $0xc8] sm:$0xff] %v182_v0  ;;  %226 = vst [vmem:[%s626_s3 + $0xd0] sm:$0xff] %v183_v3  ;;  %v97_v15 = vmul.f32 %v275_v1, %v47_v61  ;;  %v98_v16 = vmul.f32 %v275_v1, %v48_v62 }
  0x1d   :  { %227 = vst [vmem:[%s626_s3 + $0xd8] sm:$0xff] %v184_v4  ;;  %v188_v14 = vmax.f32 %v145_v5, 0.0  ;;  %v99_v17 = vmul.f32 %v275_v1, %v49_v63  ;;  %228 = vst [vmem:[%s626_s3 + $0xe0] sm:$0xff] %v185_v9  ;;  %v146_v18 = vadd.f32 %v280_v2, %v96_v12  ;;  %v100_v19 = vmul.f32 %v275_v1, %v50_v6 }
  0x1e   :  { %229 = vst [vmem:[%s626_s3 + $0xe8] sm:$0xff] %v186_v10  ;;  %230 = vst [vmem:[%s626_s3 + $0xf0] sm:$0xff] %v187_v11  ;;  %v101_v20 = vmul.f32 %v275_v1, %v51_v7  ;;  %v102_v21 = vmul.f32 %v275_v1, %v52_v8  ;;  %v147_v22 = vadd.f32 %v280_v2, %v97_v15 }
  0x1f   :  { %231 = vst [vmem:[%s626_s3 + $0xf8] sm:$0xff] %v188_v14  ;;  %v148_v23 = vadd.f32 %v280_v2, %v98_v16  ;;  %v149_v24 = vadd.f32 %v280_v2, %v99_v17  ;;  %v103_v25 = vmul.f32 %v275_v1, %v53_v13  ;;  %v189_v27 = vmax.f32 %v146_v18, 0.0 }
  0x20   :  { %v150_v28 = vadd.f32 %v280_v2, %v100_v19  ;;  %v151_v29 = vadd.f32 %v280_v2, %v101_v20  ;;  %v152_v30 = vadd.f32 %v280_v2, %v102_v21  ;;  %v190_v33 = vmax.f32 %v147_v22, 0.0 }
  0x21   :  { %v191_v34 = vmax.f32 %v148_v23, 0.0  ;;  %v192_v35 = vmax.f32 %v149_v24, 0.0  ;;  %v153_v36 = vadd.f32 %v280_v2, %v103_v25  ;;  %232 = vst [vmem:[%s626_s3 + $0x100] sm:$0xff] %v189_v27  ;;  %v104_v40 = vmul.f32 %v275_v1, %v54_v26 }
  0x22   :  { %v193_v37 = vmax.f32 %v150_v28, 0.0  ;;  %v194_v38 = vmax.f32 %v151_v29, 0.0  ;;  %v195_v39 = vmax.f32 %v152_v30, 0.0  ;;  %233 = vst [vmem:[%s626_s3 + $0x108] sm:$0xff] %v190_v33  ;;  %v105_v42 = vmul.f32 %v275_v1, %v55_v31 }
  0x23   :  { %234 = vst [vmem:[%s626_s3 + $0x110] sm:$0xff] %v191_v34  ;;  %235 = vst [vmem:[%s626_s3 + $0x118] sm:$0xff] %v192_v35  ;;  %v196_v41 = vmax.f32 %v153_v36, 0.0  ;;  %v106_v43 = vmul.f32 %v275_v1, %v56_v32  ;;  %v154_v44 = vadd.f32 %v280_v2, %v104_v40 }
  0x24   :  { %236 = vst [vmem:[%s626_s3 + $0x120] sm:$0xff] %v193_v37  ;;  %237 = vst [vmem:[%s626_s3 + $0x128] sm:$0xff] %v194_v38  ;;  %v155_v1 = vadd.f32 %v280_v2, %v105_v42 }
  0x25   :  { %238 = vst [vmem:[%s626_s3 + $0x130] sm:$0xff] %v195_v39  ;;  %239 = vst [vmem:[%s626_s3 + $0x138] sm:$0xff] %v196_v41  ;;  %v156_v45 = vadd.f32 %v280_v2, %v106_v43  ;;  %v197_v46 = vmax.f32 %v154_v44, 0.0 }
  0x26   :  { %v198_v47 = vmax.f32 %v155_v1, 0.0 }
  0x27   :  { %v199_v48 = vmax.f32 %v156_v45, 0.0  ;;  %240 = vst [vmem:[%s626_s3 + $0x140] sm:$0xff] %v197_v46 }
  0x28   :  { %241 = vst [vmem:[%s626_s3 + $0x148] sm:$0xff] %v198_v47 }
  0x29   :  { %242 = vst [vmem:[%s626_s3 + $0x150] sm:$0xff] %v199_v48 }

// kernel: stem_v4_res2_forward.20
= control target key start
LH: loop header
LB: loop body
LE: loop exit
PB: predicated region body
PF: predicated region fallthrough
CT: control target
= control target key end

     0   :  { %vm252_vm0 = vcmask 1044480   ;;  %vm253_vm1 = vcmask 1045504   ;;  %v810_v1 = vmov 65535   ;;  %vm185_vm2 = vcmask 220160   ;;  %s1178_s1 = inlined_call_operand.vmem [shape: bf16[27,128], index: 1, kind: input, shape index: {}]   ;;  %s1179_s0 = inlined_call_operand.vmem [shape: bf16[344,27], index: 0, kind: input, shape index: {}]   ;;  %s1180_s3 = inlined_call_operand.vmem [shape: f32[2,128], index: 3, kind: output, shape index: {1}]   ;;  %s1181_s2 = inlined_call_operand.vmem [shape: f32[344,128], index: 2, kind: output, shape index: {0}]  }
   0x1   :  { %v786_v0 = vld [vmem:[%s1178_s1 + $0x8] sm:$0x3f]   ;;  %v254_v2 = vsel %vm252_vm0, 4294967295, %v810_v1  ;;  %v788_v4 = vld [vmem:[%s1179_s0] sm:$0xff]   ;;  %v790_v8 = vld [vmem:[%s1179_s0 + $0x10] sm:$0xff]   ;;  %v811_v28 = vmov 0.0  }
   0x2   :  { %v255_v3 = vsel %vm253_vm1, %v254_v2, 0  ;;  %v787_v6 = vld [vmem:[%s1178_s1] sm:$0xff]   ;;  %736 = vmatprep.mubr.msk.bf16.mxu0 %vm185_vm2, %v788_v4  ;;  %v789_v7 = vld [vmem:[%s1179_s0 + $0x8] sm:$0xff]   ;;  %v802_v11 = vld [vmem:[%s1179_s0 + $0x70] sm:$0xff]   ;;  %18 = vst [vmem:[%s1180_s3] sm:$0x3] %v811_v28  ;;  %vm650_vm3 = vcmask 1040384  }
   0x3   :  { %v257_v5 = vand.u32 %v786_v0, %v255_v3  ;;  %v800_v9 = vld [vmem:[%s1179_s0 + $0x60] sm:$0xff]   ;;  %v801_v10 = vld [vmem:[%s1179_s0 + $0x68] sm:$0xff]   ;;  %v791_v12 = vld [vmem:[%s1179_s0 + $0x18] sm:$0xff]  }
   0x4   :  { %760 = vmatprep.mubr.msk.bf16.mxu1 %vm185_vm2, %v800_v9  ;;  %v792_v13 = vld [vmem:[%s1179_s0 + $0x20] sm:$0xff]   ;;  %v803_v14 = vld [vmem:[%s1179_s0 + $0x78] sm:$0xff]   ;;  %v793_v16 = vld [vmem:[%s1179_s0 + $0x28] sm:$0xff]  }
   0x5   :  { %732 = vmatprep.subr.bf16.mxu0 %v257_v5  ;;  %780 = vmatprep.subr.bf16.mxu1 %v257_v5  ;;  %v804_v15 = vld [vmem:[%s1179_s0 + $0x80] sm:$0xff]   ;;  %v794_v17 = vld [vmem:[%s1179_s0 + $0x30] sm:$0xff]   ;;  %v805_v18 = vld [vmem:[%s1179_s0 + $0x88] sm:$0xff]  }
   0x6   :  { %733 = vmatpush3.bf16.msra.mxu0 %v257_v5  ;;  %782 = vmatpush3.bf16.msra.mxu1 %v257_v5  ;;  %v806_v19 = vld [vmem:[%s1179_s0 + $0x90] sm:$0xff]   ;;  %v795_v20 = vld [vmem:[%s1179_s0 + $0x38] sm:$0xff]   ;;  %v796_v21 = vld [vmem:[%s1179_s0 + $0x40] sm:$0xff]  }
   0x7   :  { %734 = vmatprep.subr.bf16.mxu0 %v787_v6  ;;  %781 = vmatprep.subr.bf16.mxu1 %v787_v6  ;;  %v807_v22 = vld [vmem:[%s1179_s0 + $0x98] sm:$0xff]   ;;  %v808_v23 = vld [vmem:[%s1179_s0 + $0xa0] sm:$0xff]   ;;  %v797_v24 = vld [vmem:[%s1179_s0 + $0x48] sm:$0xff]  }
   0x8   :  { %v798_v25 = vld [vmem:[%s1179_s0 + $0x50] sm:$0xff]   ;;  %v809_v26 = vld [vmem:[%s1179_s0 + $0xa8] ss:$0 sps:$4 sm:$0xff]   ;;  %v799_v27 = vld [vmem:[%s1179_s0 + $0x58] sm:$0xff]  }
   0xa   :  { %735 = vmatpush3.bf16.msra.mxu0 %v787_v6  ;;  %783 = vmatpush3.bf16.msra.mxu1 %v787_v6 }
   0xd   :  { %737 = vmatmul.mubr.msk.bf16.vlgmr.msra.gmra.mxu0 %vm185_vm2, %v789_v7  ;;  %761 = vmatmul.mubr.msk.bf16.vlgmr.msra.gmra.mxu1 %vm185_vm2, %v801_v10 }
   0xe   :  { %740 = vmatprep.mubr.msk.bf16.mxu0 %vm185_vm2, %v790_v8  ;;  %764 = vmatprep.mubr.msk.bf16.mxu1 %vm185_vm2, %v802_v11 }
  0x15   :  { %741 = vmatmul.mubr.msk.bf16.gmra.mxu0 %vm185_vm2, %v791_v12  ;;  %765 = vmatmul.mubr.msk.bf16.gmra.mxu1 %vm185_vm2, %v803_v14 }
  0x16   :  { %744 = vmatprep.mubr.msk.bf16.mxu0 %vm185_vm2, %v792_v13  ;;  %768 = vmatprep.mubr.msk.bf16.mxu1 %vm185_vm2, %v804_v15 }
  0x1d   :  { %745 = vmatmul.mubr.msk.bf16.gmra.mxu0 %vm185_vm2, %v793_v16  ;;  %769 = vmatmul.mubr.msk.bf16.gmra.mxu1 %vm185_vm2, %v805_v18 }
  0x1e   :  { %748 = vmatprep.mubr.msk.bf16.mxu0 %vm185_vm2, %v794_v17  ;;  %772 = vmatprep.mubr.msk.bf16.mxu1 %vm185_vm2, %v806_v19 }
  0x25   :  { %749 = vmatmul.mubr.msk.bf16.gmra.mxu0 %vm185_vm2, %v795_v20  ;;  %773 = vmatmul.mubr.msk.bf16.gmra.mxu1 %vm185_vm2, %v807_v22 }
  0x26   :  { %752 = vmatprep.mubr.msk.bf16.mxu0 %vm185_vm2, %v796_v21  ;;  %776 = vmatprep.mubr.msk.bf16.mxu1 %vm185_vm2, %v808_v23 }
  0x2d   :  { %753 = vmatmul.mubr.msk.bf16.gmra.mxu0 %vm185_vm2, %v797_v24  ;;  %777 = vmatmul.mubr.msk.bf16.gmra.mxu1 %vm185_vm2, %v809_v26 }
  0x2e   :  { %756 = vmatprep.mubr.msk.bf16.mxu0 %vm185_vm2, %v798_v25 }
  0x35   :  { %757 = vmatmul.mubr.msk.bf16.gmra.mxu0 %vm185_vm2, %v799_v27 }
  0xcd   :  { %v738_v29 = vpop.f32.mrf.mxu0  ;;  %v935_v32 = vpop.f32.mrf.mxu1 }
  0xce   :  { %469 = vst [vmem:[%s1181_s2 + $0x10] sm:$0xff] %v738_v29  ;;  %493 = vst [vmem:[%s1181_s2 + $0xd0] sm:$0xff] %v935_v32  ;;  %v561_v40 = vmul.f32 %v738_v29, %v738_v29 }
  0xcf   :  { %v293_v30 = vpop.f32.mrf.mxu0  ;;  %v944_v34 = vpop.f32.mrf.mxu1 }
  0xd0   :  { %467 = vst [vmem:[%s1181_s2] sm:$0xff] %v293_v30  ;;  %v559_v35 = vmul.f32 %v293_v30, %v293_v30  ;;  %491 = vst [vmem:[%s1181_s2 + $0xc0] sm:$0xff] %v944_v34 }
  0xd1   :  { %v739_v31 = vpop.f32.mrf.mxu0  ;;  %v953_v39 = vpop.f32.mrf.mxu1 }
  0xd2   :  { %470 = vst [vmem:[%s1181_s2 + $0x18] sm:$0xff] %v739_v31  ;;  %494 = vst [vmem:[%s1181_s2 + $0xd8] sm:$0xff] %v953_v39  ;;  %v562_v45 = vmul.f32 %v739_v31, %v739_v31 }
  0xd3   :  { %v296_v33 = vpop.f32.mrf.mxu0  ;;  %v962_v44 = vpop.f32.mrf.mxu1 }
  0xd4   :  { %468 = vst [vmem:[%s1181_s2 + $0x8] sm:$0xff] %v296_v33  ;;  %v511_v36 = vadd.f32 %v296_v33, %v293_v30  ;;  %v560_v37 = vmul.f32 %v296_v33, %v296_v33  ;;  %492 = vst [vmem:[%s1181_s2 + $0xc8] sm:$0xff] %v962_v44 }
  0xd5   :  { %v742_v38 = vpop.f32.mrf.mxu0  ;;  %v971_v49 = vpop.f32.mrf.mxu1 }
  0xd6   :  { %v512_v41 = vadd.f32 %v738_v29, %v511_v36  ;;  %v602_v42 = vadd.f32 %v560_v37, %v559_v35  ;;  %473 = vst [vmem:[%s1181_s2 + $0x30] sm:$0xff] %v742_v38  ;;  %497 = vst [vmem:[%s1181_s2 + $0xf0] sm:$0xff] %v971_v49  ;;  %v565_v60 = vmul.f32 %v742_v38, %v742_v38 }
  0xd7   :  { %v309_v43 = vpop.f32.mrf.mxu0  ;;  %v980_v54 = vpop.f32.mrf.mxu1 }
  0xd8   :  { %v603_v46 = vadd.f32 %v602_v42, %v561_v40  ;;  %471 = vst [vmem:[%s1181_s2 + $0x20] sm:$0xff] %v309_v43  ;;  %v513_v47 = vadd.f32 %v739_v31, %v512_v41  ;;  %v563_v51 = vmul.f32 %v309_v43, %v309_v43  ;;  %495 = vst [vmem:[%s1181_s2 + $0xe0] sm:$0xff] %v980_v54 }
  0xd9   :  { %v743_v48 = vpop.f32.mrf.mxu0  ;;  %v989_v59 = vpop.f32.mrf.mxu1 }
  0xda   :  { %v514_v50 = vadd.f32 %v513_v47, %v309_v43  ;;  %v604_v52 = vadd.f32 %v603_v46, %v562_v45  ;;  %474 = vst [vmem:[%s1181_s2 + $0x38] sm:$0xff] %v743_v48  ;;  %498 = vst [vmem:[%s1181_s2 + $0xf8] sm:$0xff] %v989_v59  ;;  %v566_v1 = vmul.f32 %v743_v48, %v743_v48 }
  0xdb   :  { %v312_v53 = vpop.f32.mrf.mxu0  ;;  %v998_v0 = vpop.f32.mrf.mxu1 }
  0xdc   :  { %v605_v55 = vadd.f32 %v604_v52, %v563_v51  ;;  %472 = vst [vmem:[%s1181_s2 + $0x28] sm:$0xff] %v312_v53  ;;  %v515_v56 = vadd.f32 %v514_v50, %v312_v53  ;;  %v564_v57 = vmul.f32 %v312_v53, %v312_v53  ;;  %496 = vst [vmem:[%s1181_s2 + $0xe8] sm:$0xff] %v998_v0 }
  0xdd   :  { %v746_v58 = vpop.f32.mrf.mxu0  ;;  %v1007_v5 = vpop.f32.mrf.mxu1 }
  0xde   :  { %v516_v61 = vadd.f32 %v742_v38, %v515_v56  ;;  %v606_v62 = vadd.f32 %v605_v55, %v564_v57  ;;  %477 = vst [vmem:[%s1181_s2 + $0x50] sm:$0xff] %v746_v58  ;;  %501 = vst [vmem:[%s1181_s2 + $0x110] sm:$0xff] %v1007_v5  ;;  %v569_v16 = vmul.f32 %v746_v58, %v746_v58 }
  0xdf   :  { %v325_v63 = vpop.f32.mrf.mxu0  ;;  %v1016_v10 = vpop.f32.mrf.mxu1 }
  0xe0   :  { %v607_v2 = vadd.f32 %v606_v62, %v565_v60  ;;  %475 = vst [vmem:[%s1181_s2 + $0x40] sm:$0xff] %v325_v63  ;;  %v517_v3 = vadd.f32 %v743_v48, %v516_v61  ;;  %v567_v7 = vmul.f32 %v325_v63, %v325_v63  ;;  %499 = vst [vmem:[%s1181_s2 + $0x100] sm:$0xff] %v1016_v10 }
  0xe1   :  { %v747_v4 = vpop.f32.mrf.mxu0  ;;  %v1025_v15 = vpop.f32.mrf.mxu1 }
  0xe2   :  { %v518_v6 = vadd.f32 %v517_v3, %v325_v63  ;;  %v608_v8 = vadd.f32 %v607_v2, %v566_v1  ;;  %478 = vst [vmem:[%s1181_s2 + $0x58] sm:$0xff] %v747_v4  ;;  %502 = vst [vmem:[%s1181_s2 + $0x118] sm:$0xff] %v1025_v15  ;;  %v570_v21 = vmul.f32 %v747_v4, %v747_v4 }
  0xe3   :  { %v328_v9 = vpop.f32.mrf.mxu0  ;;  %v1034_v20 = vpop.f32.mrf.mxu1 }
  0xe4   :  { %v609_v11 = vadd.f32 %v608_v8, %v567_v7  ;;  %476 = vst [vmem:[%s1181_s2 + $0x48] sm:$0xff] %v328_v9  ;;  %v519_v12 = vadd.f32 %v518_v6, %v328_v9  ;;  %v568_v13 = vmul.f32 %v328_v9, %v328_v9  ;;  %500 = vst [vmem:[%s1181_s2 + $0x108] sm:$0xff] %v1034_v20 }
  0xe5   :  { %v750_v14 = vpop.f32.mrf.mxu0  ;;  %v1043_v25 = vpop.f32.mrf.mxu1 }
  0xe6   :  { %v520_v17 = vadd.f32 %v746_v58, %v519_v12  ;;  %v610_v18 = vadd.f32 %v609_v11, %v568_v13  ;;  %481 = vst [vmem:[%s1181_s2 + $0x70] sm:$0xff] %v750_v14  ;;  %505 = vst [vmem:[%s1181_s2 + $0x130] sm:$0xff] %v1043_v25  ;;  %v573_v38 = vmul.f32 %v750_v14, %v750_v14 }
  0xe7   :  { %v341_v19 = vpop.f32.mrf.mxu0  ;;  %v1052_v30 = vpop.f32.mrf.mxu1 }
  0xe8   :  { %v611_v22 = vadd.f32 %v610_v18, %v569_v16  ;;  %479 = vst [vmem:[%s1181_s2 + $0x60] sm:$0xff] %v341_v19  ;;  %v521_v23 = vadd.f32 %v747_v4, %v520_v17  ;;  %v571_v27 = vmul.f32 %v341_v19, %v341_v19  ;;  %503 = vst [vmem:[%s1181_s2 + $0x120] sm:$0xff] %v1052_v30 }
  0xe9   :  { %v751_v24 = vpop.f32.mrf.mxu0  ;;  %v1061_v37 = vpop.f32.mrf.mxu1 }
  0xea   :  { %v522_v26 = vadd.f32 %v521_v23, %v341_v19  ;;  %v612_v28 = vadd.f32 %v611_v22, %v570_v21  ;;  %482 = vst [vmem:[%s1181_s2 + $0x78] sm:$0xff] %v751_v24  ;;  %506 = vst [vmem:[%s1181_s2 + $0x138] sm:$0xff] %v1061_v37  ;;  %v574_v45 = vmul.f32 %v751_v24, %v751_v24 }
  0xeb   :  { %v344_v29 = vpop.f32.mrf.mxu0  ;;  %v1070_v43 = vpop.f32.mrf.mxu1 }
  0xec   :  { %v613_v31 = vadd.f32 %v612_v28, %v571_v27  ;;  %480 = vst [vmem:[%s1181_s2 + $0x68] sm:$0xff] %v344_v29  ;;  %v523_v33 = vadd.f32 %v522_v26, %v344_v29  ;;  %v572_v35 = vmul.f32 %v344_v29, %v344_v29  ;;  %504 = vst [vmem:[%s1181_s2 + $0x128] sm:$0xff] %v1070_v43 }
  0xed   :  { %v754_v36 = vpop.f32.mrf.mxu0  ;;  %v1079_v50 = vpop.f32.mrf.mxu1  ;;  %v583_v27 = vmul.f32 %v944_v34, %v944_v34 }
  0xee   :  { %v524_v40 = vadd.f32 %v750_v14, %v523_v33  ;;  %v614_v41 = vadd.f32 %v613_v31, %v572_v35  ;;  %485 = vst [vmem:[%s1181_s2 + $0x90] sm:$0xff] %v754_v36  ;;  %509 = vst [vmem:[%s1181_s2 + $0x150] sm:$0xff] %v1079_v50  ;;  %v577_v63 = vmul.f32 %v754_v36, %v754_v36 }
  0xef   :  { %v357_v42 = vpop.f32.mrf.mxu0  ;;  %v1088_v56 = vpop.f32.mrf.mxu1  ;;  %v584_v33 = vmul.f32 %v962_v44, %v962_v44 }
  0xf0   :  { %v615_v46 = vadd.f32 %v614_v41, %v573_v38  ;;  %483 = vst [vmem:[%s1181_s2 + $0x80] sm:$0xff] %v357_v42  ;;  %v525_v47 = vadd.f32 %v751_v24, %v524_v40  ;;  %v575_v52 = vmul.f32 %v357_v42, %v357_v42  ;;  %507 = vst [vmem:[%s1181_s2 + $0x140] sm:$0xff] %v1088_v56 }
  0xf1   :  { %v755_v48 = vpop.f32.mrf.mxu0  ;;  %v779_v62 = vpop.f32.mrf.mxu1  ;;  %v586_v41 = vmul.f32 %v953_v39, %v953_v39 }
  0xf2   :  { %v526_v51 = vadd.f32 %v525_v47, %v357_v42  ;;  %v616_v53 = vadd.f32 %v615_v46, %v574_v45  ;;  %486 = vst [vmem:[%s1181_s2 + $0x98] sm:$0xff] %v755_v48  ;;  %v578_v6 = vmul.f32 %v755_v48, %v755_v48  ;;  %v587_v46 = vmul.f32 %v980_v54, %v980_v54 }
  0xf3   :  { %v360_v55 = vpop.f32.mrf.mxu0  ;;  %v1100_v4 = vpop.f32.mrf.mxu1  ;;  %v592_v62 = vmul.f32 %v1034_v20, %v1034_v20 }
  0xf4   :  { %v617_v57 = vadd.f32 %v616_v53, %v575_v52  ;;  %484 = vst [vmem:[%s1181_s2 + $0x88] sm:$0xff] %v360_v55  ;;  %v527_v58 = vadd.f32 %v526_v51, %v360_v55  ;;  %v576_v60 = vmul.f32 %v360_v55, %v360_v55  ;;  %508 = vst [vmem:[%s1181_s2 + $0x148] sm:$0xff] %v1100_v4 }
  0xf5   :  { %v758_v61 = vpop.f32.mrf.mxu0  ;;  %v588_v51 = vmul.f32 %v998_v0, %v998_v0 }
  0xf6   :  { %v528_v1 = vadd.f32 %v754_v36, %v527_v58  ;;  %v618_v2 = vadd.f32 %v617_v57, %v576_v60  ;;  %489 = vst [vmem:[%s1181_s2 + $0xb0] sm:$0xff] %v758_v61  ;;  %v581_v19 = vmul.f32 %v758_v61, %v758_v61  ;;  %v585_v36 = vmul.f32 %v935_v32, %v935_v32 }
  0xf7   :  { %v373_v3 = vpop.f32.mrf.mxu0  ;;  %v591_v58 = vmul.f32 %v1016_v10, %v1016_v10 }
  0xf8   :  { %v619_v7 = vadd.f32 %v618_v2, %v577_v63  ;;  %487 = vst [vmem:[%s1181_s2 + $0xa0] sm:$0xff] %v373_v3  ;;  %v529_v8 = vadd.f32 %v755_v48, %v528_v1  ;;  %v579_v12 = vmul.f32 %v373_v3, %v373_v3 }
  0xf9   :  { %v759_v9 = vpop.f32.mrf.mxu0 }
  0xfa   :  { %v530_v11 = vadd.f32 %v529_v8, %v373_v3  ;;  %v620_v13 = vadd.f32 %v619_v7, %v578_v6  ;;  %490 = vst [vmem:[%s1181_s2 + $0xb8] sm:$0xff] %v759_v9  ;;  %v582_v23 = vmul.f32 %v759_v9, %v759_v9  ;;  %v595_v6 = vmul.f32 %v1052_v30, %v1052_v30 }
  0xfb   :  { %v376_v14 = vpop.f32.mrf.mxu0 }
  0xfc   :  { %v621_v16 = vadd.f32 %v620_v13, %v579_v12  ;;  %488 = vst [vmem:[%s1181_s2 + $0xa8] sm:$0xff] %v376_v14  ;;  %v531_v17 = vadd.f32 %v530_v11, %v376_v14  ;;  %v580_v18 = vmul.f32 %v376_v14, %v376_v14 }
  0xfe   :  { %v532_v21 = vadd.f32 %v758_v61, %v531_v17  ;;  %v622_v22 = vadd.f32 %v621_v16, %v580_v18  ;;  %v599_v16 = vmul.f32 %v1088_v56, %v1088_v56 }
 0x100   :  { %v533_v24 = vadd.f32 %v759_v9, %v532_v21  ;;  %v623_v26 = vadd.f32 %v622_v22, %v581_v19  ;;  %v596_v9 = vmul.f32 %v1070_v43, %v1070_v43  ;;  %v600_v19 = vmul.f32 %v1100_v4, %v1100_v4 }
 0x102   :  { %v624_v28 = vadd.f32 %v623_v26, %v582_v23  ;;  %v534_v29 = vadd.f32 %v533_v24, %v944_v34 }
 0x104   :  { %v535_v31 = vadd.f32 %v534_v29, %v962_v44  ;;  %v625_v35 = vadd.f32 %v624_v28, %v583_v27 }
 0x106   :  { %v536_v38 = vadd.f32 %v935_v32, %v535_v31  ;;  %v626_v40 = vadd.f32 %v625_v35, %v584_v33  ;;  %v589_v32 = vmul.f32 %v971_v49, %v971_v49 }
 0x108   :  { %v627_v42 = vadd.f32 %v626_v40, %v585_v36  ;;  %v537_v45 = vadd.f32 %v953_v39, %v536_v38  ;;  %v590_v39 = vmul.f32 %v989_v59, %v989_v59 }
 0x10a   :  { %v538_v34 = vadd.f32 %v537_v45, %v980_v54  ;;  %v628_v47 = vadd.f32 %v627_v42, %v586_v41 }
 0x10c   :  { %v629_v44 = vadd.f32 %v628_v47, %v587_v46  ;;  %v539_v48 = vadd.f32 %v538_v34, %v998_v0 }
 0x10e   :  { %v540_v52 = vadd.f32 %v971_v49, %v539_v48  ;;  %v630_v53 = vadd.f32 %v629_v44, %v588_v51  ;;  %v593_v49 = vmul.f32 %v1007_v5, %v1007_v5 }
 0x110   :  { %v631_v55 = vadd.f32 %v630_v53, %v589_v32  ;;  %v541_v57 = vadd.f32 %v989_v59, %v540_v52  ;;  %v594_v59 = vmul.f32 %v1025_v15, %v1025_v15 }
 0x112   :  { %v542_v54 = vadd.f32 %v541_v57, %v1016_v10  ;;  %v632_v60 = vadd.f32 %v631_v55, %v590_v39 }
 0x114   :  { %v633_v61 = vadd.f32 %v632_v60, %v591_v58  ;;  %v543_v0 = vadd.f32 %v542_v54, %v1034_v20 }
 0x116   :  { %v544_v63 = vadd.f32 %v1007_v5, %v543_v0  ;;  %v634_v1 = vadd.f32 %v633_v61, %v592_v62  ;;  %v597_v5 = vmul.f32 %v1043_v25, %v1043_v25 }
 0x118   :  { %v635_v2 = vadd.f32 %v634_v1, %v593_v49  ;;  %v545_v3 = vadd.f32 %v1025_v15, %v544_v63  ;;  %v598_v15 = vmul.f32 %v1061_v37, %v1061_v37 }
 0x11a   :  { %v546_v10 = vadd.f32 %v545_v3, %v1052_v30  ;;  %v636_v7 = vadd.f32 %v635_v2, %v594_v59 }
 0x11c   :  { %v637_v8 = vadd.f32 %v636_v7, %v595_v6  ;;  %v547_v20 = vadd.f32 %v546_v10, %v1070_v43 }
 0x11e   :  { %v548_v11 = vadd.f32 %v1043_v25, %v547_v20  ;;  %v638_v12 = vadd.f32 %v637_v8, %v596_v9  ;;  %v601_v25 = vmul.f32 %v1079_v50, %v1079_v50 }
 0x120   :  { %v639_v13 = vadd.f32 %v638_v12, %v597_v5  ;;  %v549_v14 = vadd.f32 %v1061_v37, %v548_v11 }
 0x122   :  { %v550_v30 = vadd.f32 %v549_v14, %v1088_v56  ;;  %v640_v17 = vadd.f32 %v639_v13, %v598_v15 }
 0x124   :  { %v641_v18 = vadd.f32 %v640_v17, %v599_v16  ;;  %v551_v43 = vadd.f32 %v550_v30, %v1100_v4  ;;  %v510_v4 = vld [vmem:[%s1180_s3] sm:$0x3] }
 0x126   :  { %v552_v21 = vadd.f32 %v1079_v50, %v551_v43  ;;  %v642_v22 = vadd.f32 %v641_v18, %v600_v19 }
 0x128   :  { %v553_v23 = vrot.slane %v552_v21, 4  ;;  %v643_v37 = vadd.f32 %v642_v22, %v601_v25 }
 0x12a   :  { %v554_v24 = vadd.f32 %v553_v23, %v552_v21  ;;  %v644_v26 = vrot.slane %v643_v37, 4 }
 0x12c   :  { %v555_v27 = vrot.slane %v554_v24, 2  ;;  %v645_v28 = vadd.f32 %v644_v26, %v643_v37 }
 0x12e   :  { %v556_v56 = vadd.f32 %v555_v27, %v554_v24  ;;  %v646_v29 = vrot.slane %v645_v28, 2 }
 0x130   :  { %v557_v31 = vrot.slane %v556_v56, 1  ;;  %v647_v33 = vadd.f32 %v646_v29, %v645_v28 }
 0x132   :  { %v648_v35 = vrot.slane %v647_v33, 1  ;;  %v558_v36 = vadd.f32 %v557_v31, %v556_v56 }
 0x134   :  { %v649_v38 = vadd.f32 %v648_v35, %v647_v33 }
 0x136   :  { %v651_v50 = vsel %vm650_vm3, %v558_v36, %v649_v38 }
 0x137   :  { %v652_v40 = vadd.f32 %v651_v50, %v510_v4 }
 0x139   :  { %653 = vst [vmem:[%s1180_s3] sm:$0x3] %v652_v40 }

// kernel: stem_v4_res2_forward.22
= control target key start
LH: loop header
LB: loop body
LE: loop exit
PB: predicated region body
PF: predicated region fallthrough
CT: control target
= control target key end

     0   :  { %v1569_v0 = vmov 0   ;;  %vm574_vm0 = vcmask 261120   ;;  %vm1240_vm1 = vcmask 1040384   ;;  %s2122_s1 = inlined_call_operand.vmem [shape: bf16[288,128], index: 1, kind: input, shape index: {}]   ;;  %s2123_s0 = inlined_call_operand.vmem [shape: bf16[344,288], index: 0, kind: input, shape index: {}]   ;;  %s2124_s3 = inlined_call_operand.vmem [shape: f32[2,128], index: 3, kind: output, shape index: {1}]   ;;  %s2125_s2 = inlined_call_operand.vmem [shape: f32[344,128], index: 2, kind: output, shape index: {0}]  }
   0x1   :  { %641 = vmatprep.subr.bf16.mxu0 %v1569_v0  ;;  %1430 = vmatprep.subr.bf16.mxu1 %v1569_v0  ;;  %v1464_v1 = vld [vmem:[%s2122_s1 + $0x38] sm:$0xff]   ;;  %v1465_v2 = vld [vmem:[%s2122_s1 + $0x30] sm:$0xff]   ;;  %v1466_v3 = vld [vmem:[%s2122_s1 + $0x28] sm:$0xff]  }
   0x2   :  { %642 = vmatpush1.bf16.msra.mxu0 %v1464_v1  ;;  %1446 = vmatpush1.bf16.msra.mxu1 %v1464_v1  ;;  %v1467_v4 = vld [vmem:[%s2122_s1 + $0x20] sm:$0xff]   ;;  %v1468_v5 = vld [vmem:[%s2122_s1 + $0x18] sm:$0xff]   ;;  %v1469_v7 = vld [vmem:[%s2122_s1 + $0x10] sm:$0xff]  }
   0x3   :  { %643 = vmatprep.subr.bf16.mxu0 %v1569_v0  ;;  %1431 = vmatprep.subr.bf16.mxu1 %v1569_v0  ;;  %v1482_v6 = vld [vmem:[%s2123_s0 + $0x4] ss:$12 sps:$4 sm:$0xff]   ;;  %v1485_v8 = vld [vmem:[%s2123_s0 + $0x19c] ss:$12 sps:$4 sm:$0xff]   ;;  %v1480_v20 = vld [vmem:[%s2123_s0] ss:$12 sps:$4 sm:$0xff]  }
   0x4   :  { %673 = vmatprep.mubr.bf16.mxu0 %v1482_v6  ;;  %809 = vmatprep.mubr.bf16.mxu1 %v1485_v8  ;;  %v1470_v9 = vld [vmem:[%s2122_s1 + $0x8] sm:$0xff]   ;;  %v1471_v10 = vld [vmem:[%s2122_s1] sm:$0xff]   ;;  %v1472_v11 = vld [vmem:[%s2122_s1 + $0x78] sm:$0xff]  }
   0x5   :  { %v1473_v12 = vld [vmem:[%s2122_s1 + $0x70] sm:$0xff]   ;;  %v1474_v13 = vld [vmem:[%s2122_s1 + $0x68] sm:$0xff]   ;;  %v1475_v14 = vld [vmem:[%s2122_s1 + $0x60] sm:$0xff]  }
   0x6   :  { %644 = vmatpush1.bf16.msra.mxu0 %v1465_v2  ;;  %1447 = vmatpush1.bf16.msra.mxu1 %v1465_v2  ;;  %v1476_v15 = vld [vmem:[%s2122_s1 + $0x58] sm:$0xff]   ;;  %v1477_v16 = vld [vmem:[%s2122_s1 + $0x50] sm:$0xff]   ;;  %v1478_v17 = vld [vmem:[%s2122_s1 + $0x48] sm:$0xff]  }
   0x7   :  { %645 = vmatprep.subr.bf16.mxu0 %v1569_v0  ;;  %1432 = vmatprep.subr.bf16.mxu1 %v1569_v0  ;;  %v1479_v18 = vld [vmem:[%s2122_s1 + $0x40] sm:$0xff]   ;;  %v1498_v19 = vld [vmem:[%s2122_s1 + $0x88] sm:$0xff]   ;;  %v1491_v26 = vld [vmem:[%s2123_s0 + $0x1b0] ss:$12 sps:$4 sm:$0xff]  }
   0x8   :  { %v1483_v21 = vld [vmem:[%s2123_s0 + $0x198] ss:$12 sps:$4 sm:$0xff]   ;;  %v1486_v22 = vld [vmem:[%s2123_s0 + $0x1c] ss:$12 sps:$4 sm:$0xff]   ;;  %v1488_v23 = vld [vmem:[%s2123_s0 + $0x1b4] ss:$12 sps:$4 sm:$0xff]  }
   0x9   :  { %v1510_v24 = vld [vmem:[%s2122_s1 + $0x80] sm:$0xff]   ;;  %v1494_v28 = vld [vmem:[%s2123_s0 + $0x1cc] ss:$12 sps:$4 sm:$0xff]   ;;  %v1496_v29 = vld [vmem:[%s2123_s0 + $0x30] ss:$12 sps:$4 sm:$0xff]  }
   0xa   :  { %646 = vmatpush1.bf16.msra.mxu0 %v1466_v3  ;;  %1448 = vmatpush1.bf16.msra.mxu1 %v1466_v3  ;;  %v1490_v25 = vld [vmem:[%s2123_s0 + $0x18] ss:$12 sps:$4 sm:$0xff]   ;;  %v1492_v27 = vld [vmem:[%s2123_s0 + $0x34] ss:$12 sps:$4 sm:$0xff]   ;;  %v1511_v40 = vld [vmem:[%s2123_s0 + $0x7c] ss:$12 sps:$4 sm:$0xff]  }
   0xb   :  { %647 = vmatprep.subr.bf16.mxu0 %v1569_v0  ;;  %1433 = vmatprep.subr.bf16.mxu1 %v1569_v0  ;;  %v1497_v30 = vld [vmem:[%s2123_s0 + $0x1c8] ss:$12 sps:$4 sm:$0xff]   ;;  %v1499_v31 = vld [vmem:[%s2123_s0 + $0x4c] ss:$12 sps:$4 sm:$0xff]   ;;  %v1501_v32 = vld [vmem:[%s2123_s0 + $0x1e4] ss:$12 sps:$4 sm:$0xff]  }
   0xc   :  { %v103_v33 = vld [vmem:[%s2123_s0 + $0x1f8] sm:$0xff]  ;;  %v1503_v34 = vld [vmem:[%s2123_s0 + $0x48] ss:$12 sps:$4 sm:$0xff]   ;;  %v1504_v35 = vld [vmem:[%s2123_s0 + $0x1e0] ss:$12 sps:$4 sm:$0xff]  }
   0xd   :  { %v1505_v36 = vld [vmem:[%s2123_s0 + $0x64] ss:$12 sps:$4 sm:$0xff]   ;;  %v1316_v37 = vcombine.high %v103_v33, %v103_v33  ;;  %v1508_v38 = vld [vmem:[%s2123_s0 + $0x60] ss:$12 sps:$4 sm:$0xff]   ;;  %v1315_v39 = vcombine.low %v103_v33, %v103_v33  ;;  %v1513_v41 = vld [vmem:[%s2123_s0 + $0x8] ss:$12 sps:$4 sm:$0xff]  }
   0xe   :  { %648 = vmatpush1.bf16.msra.mxu0 %v1467_v4  ;;  %1449 = vmatpush1.bf16.msra.mxu1 %v1467_v4  ;;  %v1514_v42 = vld [vmem:[%s2123_s0 + $0x78] ss:$12 sps:$4 sm:$0xff]   ;;  %v1515_v43 = vld [vmem:[%s2123_s0 + $0x20] ss:$12 sps:$4 sm:$0xff]   ;;  %v1519_v46 = vld [vmem:[%s2123_s0 + $0x90] ss:$12 sps:$4 sm:$0xff]  }
   0xf   :  { %649 = vmatprep.subr.bf16.mxu0 %v1569_v0  ;;  %1434 = vmatprep.subr.bf16.mxu1 %v1569_v0  ;;  %v1516_v44 = vld [vmem:[%s2123_s0 + $0x94] ss:$12 sps:$4 sm:$0xff]   ;;  %v1518_v45 = vld [vmem:[%s2123_s0 + $0x38] ss:$12 sps:$4 sm:$0xff]   ;;  %v1520_v47 = vld [vmem:[%s2123_s0 + $0x50] ss:$12 sps:$4 sm:$0xff]  }
  0x10   :  { %v1521_v48 = vld [vmem:[%s2123_s0 + $0xac] ss:$12 sps:$4 sm:$0xff]   ;;  %v1523_v49 = vld [vmem:[%s2123_s0 + $0x68] ss:$12 sps:$4 sm:$0xff]   ;;  %v1526_v52 = vld [vmem:[%s2123_s0 + $0xc4] ss:$12 sps:$4 sm:$0xff]  }
  0x11   :  { %v1524_v50 = vld [vmem:[%s2123_s0 + $0xa8] ss:$12 sps:$4 sm:$0xff]   ;;  %v1525_v51 = vld [vmem:[%s2123_s0 + $0x80] ss:$12 sps:$4 sm:$0xff]   ;;  %v1528_v53 = vld [vmem:[%s2123_s0 + $0x98] ss:$12 sps:$4 sm:$0xff]  }
  0x12   :  { %650 = vmatpush1.bf16.msra.mxu0 %v1468_v5  ;;  %1450 = vmatpush1.bf16.msra.mxu1 %v1468_v5  ;;  %v1529_v54 = vld [vmem:[%s2123_s0 + $0xc0] ss:$12 sps:$4 sm:$0xff]   ;;  %v1530_v55 = vld [vmem:[%s2123_s0 + $0xb0] ss:$12 sps:$4 sm:$0xff]   ;;  %v1533_v57 = vld [vmem:[%s2123_s0 + $0xc8] ss:$12 sps:$4 sm:$0xff]  }
  0x13   :  { %651 = vmatprep.subr.bf16.mxu0 %v1569_v0  ;;  %1435 = vmatprep.subr.bf16.mxu1 %v1569_v0  ;;  %v1531_v56 = vld [vmem:[%s2123_s0 + $0xdc] ss:$12 sps:$4 sm:$0xff]   ;;  %v1534_v58 = vld [vmem:[%s2123_s0 + $0xd8] ss:$12 sps:$4 sm:$0xff]   ;;  %v1535_v59 = vld [vmem:[%s2123_s0 + $0xe0] ss:$12 sps:$4 sm:$0xff]  }
  0x14   :  { %v1536_v60 = vld [vmem:[%s2123_s0 + $0xf4] ss:$12 sps:$4 sm:$0xff]   ;;  %v1538_v61 = vld [vmem:[%s2123_s0 + $0xf8] ss:$12 sps:$4 sm:$0xff]   ;;  %v1539_v62 = vld [vmem:[%s2123_s0 + $0xf0] ss:$12 sps:$4 sm:$0xff]  }
  0x15   :  { %v1540_v63 = vld [vmem:[%s2123_s0 + $0x110] ss:$12 sps:$4 sm:$0xff]   ;;  %v1543_v1 = vld [vmem:[%s2123_s0 + $0x128] ss:$12 sps:$4 sm:$0xff]   ;;  %v1545_v3 = vld [vmem:[%s2123_s0 + $0x140] ss:$12 sps:$4 sm:$0xff]  }
  0x16   :  { %652 = vmatpush1.bf16.msra.mxu0 %v1469_v7  ;;  %1451 = vmatpush1.bf16.msra.mxu1 %v1469_v7  ;;  %v1544_v2 = vld [vmem:[%s2123_s0 + $0x108] ss:$12 sps:$4 sm:$0xff]   ;;  %v1546_v4 = vld [vmem:[%s2123_s0 + $0x124] ss:$12 sps:$4 sm:$0xff]   ;;  %v1549_v6 = vld [vmem:[%s2123_s0 + $0x120] ss:$12 sps:$4 sm:$0xff]  }
  0x17   :  { %653 = vmatprep.subr.bf16.mxu0 %v1569_v0  ;;  %1436 = vmatprep.subr.bf16.mxu1 %v1569_v0  ;;  %v1548_v5 = vld [vmem:[%s2123_s0 + $0x158] ss:$12 sps:$4 sm:$0xff]   ;;  %v1550_v7 = vld [vmem:[%s2123_s0 + $0x170] ss:$12 sps:$4 sm:$0xff]  }
  0x18   :  { %v1551_v8 = vld [vmem:[%s2123_s0 + $0x13c] ss:$12 sps:$4 sm:$0xff]  }
  0x1a   :  { %654 = vmatpush1.bf16.msra.mxu0 %v1470_v9  ;;  %1452 = vmatpush1.bf16.msra.mxu1 %v1470_v9  ;;  %v1553_v9 = vld [vmem:[%s2123_s0 + $0x188] ss:$12 sps:$4 sm:$0xff]  }
  0x1b   :  { %655 = vmatprep.subr.bf16.mxu0 %v1569_v0  ;;  %1437 = vmatprep.subr.bf16.mxu1 %v1569_v0 }
  0x1e   :  { %656 = vmatpush1.bf16.msra.mxu0 %v1471_v10  ;;  %1453 = vmatpush1.bf16.msra.mxu1 %v1471_v10  ;;  %v1554_v10 = vld [vmem:[%s2123_s0 + $0x138] ss:$12 sps:$4 sm:$0xff]  }
  0x1f   :  { %657 = vmatprep.subr.bf16.mxu0 %v1569_v0  ;;  %1438 = vmatprep.subr.bf16.mxu1 %v1569_v0 }
  0x22   :  { %658 = vmatpush2.bf16.msra.mxu0 %v1472_v11  ;;  %1454 = vmatpush2.bf16.msra.mxu1 %v1472_v11  ;;  %v1555_v11 = vld [vmem:[%s2123_s0 + $0x1a0] ss:$12 sps:$4 sm:$0xff]  }
  0x23   :  { %659 = vmatprep.subr.bf16.mxu0 %v1569_v0  ;;  %1439 = vmatprep.subr.bf16.mxu1 %v1569_v0 }
  0x26   :  { %660 = vmatpush2.bf16.msra.mxu0 %v1473_v12  ;;  %1455 = vmatpush2.bf16.msra.mxu1 %v1473_v12  ;;  %v1556_v12 = vld [vmem:[%s2123_s0 + $0x154] ss:$12 sps:$4 sm:$0xff]  }
  0x27   :  { %661 = vmatprep.subr.bf16.mxu0 %v1569_v0  ;;  %1440 = vmatprep.subr.bf16.mxu1 %v1569_v0 }
  0x2a   :  { %662 = vmatpush2.bf16.msra.mxu0 %v1474_v13  ;;  %1456 = vmatpush2.bf16.msra.mxu1 %v1474_v13  ;;  %v1558_v13 = vld [vmem:[%s2123_s0 + $0x1b8] ss:$12 sps:$4 sm:$0xff]  }
  0x2b   :  { %663 = vmatprep.subr.bf16.mxu0 %v1569_v0  ;;  %1441 = vmatprep.subr.bf16.mxu1 %v1569_v0 }
  0x2e   :  { %664 = vmatpush2.bf16.msra.mxu0 %v1475_v14  ;;  %1457 = vmatpush2.bf16.msra.mxu1 %v1475_v14  ;;  %v1559_v14 = vld [vmem:[%s2123_s0 + $0x150] ss:$12 sps:$4 sm:$0xff]  }
  0x2f   :  { %665 = vmatprep.subr.bf16.mxu0 %v1569_v0  ;;  %1442 = vmatprep.subr.bf16.mxu1 %v1569_v0 }
  0x32   :  { %666 = vmatpush2.bf16.msra.mxu0 %v1476_v15  ;;  %1458 = vmatpush2.bf16.msra.mxu1 %v1476_v15  ;;  %v1560_v15 = vld [vmem:[%s2123_s0 + $0x1d0] ss:$12 sps:$4 sm:$0xff]  }
  0x33   :  { %667 = vmatprep.subr.bf16.mxu0 %v1569_v0  ;;  %1443 = vmatprep.subr.bf16.mxu1 %v1569_v0 }
  0x36   :  { %668 = vmatpush2.bf16.msra.mxu0 %v1477_v16  ;;  %1459 = vmatpush2.bf16.msra.mxu1 %v1477_v16  ;;  %v1561_v16 = vld [vmem:[%s2123_s0 + $0x16c] ss:$12 sps:$4 sm:$0xff]  }
  0x37   :  { %669 = vmatprep.subr.bf16.mxu0 %v1569_v0  ;;  %1444 = vmatprep.subr.bf16.mxu1 %v1569_v0 }
  0x3a   :  { %670 = vmatpush2.bf16.msra.mxu0 %v1478_v17  ;;  %1460 = vmatpush2.bf16.msra.mxu1 %v1478_v17  ;;  %v1563_v17 = vld [vmem:[%s2123_s0 + $0x1e8] ss:$12 sps:$4 sm:$0xff]  }
  0x3b   :  { %671 = vmatprep.subr.bf16.mxu0 %v1569_v0  ;;  %1445 = vmatprep.subr.bf16.mxu1 %v1569_v0  ;;  %v1541_v0 = vld [vmem:[%s2123_s0 + $0x10c] ss:$12 sps:$4 sm:$0xff]  }
  0x3e   :  { %672 = vmatpush2.bf16.msra.mxu0 %v1479_v18  ;;  %1461 = vmatpush2.bf16.msra.mxu1 %v1479_v18  ;;  %v1564_v18 = vld [vmem:[%s2123_s0 + $0x168] ss:$12 sps:$4 sm:$0xff]  }
  0x3f   :  { %1382 = vmatprep.subr.bf16.mxu1 %v1498_v19 }
  0x41   :  { %674 = vmatmul.mubr.bf16.vlgmr.msra.gmra.mxu0 %v1480_v20  ;;  %810 = vmatmul.mubr.bf16.vlgmr.msra.gmra.mxu1 %v1483_v21  ;;  %v1566_v20 = vld [vmem:[%s2123_s0 + $0x184] ss:$12 sps:$4 sm:$0xff]   ;;  %v1568_v21 = vld [vmem:[%s2123_s0 + $0x180] ss:$12 sps:$4 sm:$0xff]  }
  0x42   :  { %681 = vmatprep.mubr.bf16.mxu0 %v1486_v22  ;;  %817 = vmatprep.mubr.bf16.mxu1 %v1488_v23 }
  0x43   :  { %1383 = vmatpush3.bf16.msra.mxu1 %v1498_v19  ;;  %v1565_v19 = vld [vmem:[%s2123_s0 + $0x200] ss:$0 sps:$4 sm:$0xff]  }
  0x44   :  { %1384 = vmatprep.subr.bf16.mxu1 %v1510_v24 }
  0x47   :  { %1385 = vmatpush3.bf16.msra.mxu1 %v1510_v24 }
  0x49   :  { %682 = vmatmul.mubr.bf16.gmra.mxu0 %v1490_v25  ;;  %818 = vmatmul.mubr.bf16.gmra.mxu1 %v1491_v26 }
  0x4a   :  { %689 = vmatprep.mubr.bf16.mxu0 %v1492_v27  ;;  %825 = vmatprep.mubr.bf16.mxu1 %v1494_v28 }
  0x51   :  { %690 = vmatmul.mubr.bf16.gmra.mxu0 %v1496_v29  ;;  %826 = vmatmul.mubr.bf16.gmra.mxu1 %v1497_v30  ;;  %v1570_v30 = vmov 0.0  }
  0x52   :  { %697 = vmatprep.mubr.bf16.mxu0 %v1499_v31  ;;  %833 = vmatprep.mubr.bf16.mxu1 %v1501_v32  ;;  %18 = vst [vmem:[%s2124_s3] sm:$0x3] %v1570_v30 }
  0x59   :  { %698 = vmatmul.mubr.bf16.gmra.mxu0 %v1503_v34  ;;  %834 = vmatmul.mubr.bf16.gmra.mxu1 %v1504_v35 }
  0x5a   :  { %705 = vmatprep.mubr.bf16.mxu0 %v1505_v36  ;;  %841 = vmatprep.mubr.bf16.mxu1 %v1316_v37 }
  0x61   :  { %706 = vmatmul.mubr.bf16.gmra.mxu0 %v1508_v38  ;;  %842 = vmatmul.mubr.bf16.gmra.mxu1 %v1315_v39 }
  0x62   :  { %713 = vmatprep.mubr.bf16.mxu0 %v1511_v40  ;;  %1386 = vmatprep.mubr.msk.bf16.mxu1 %vm574_vm0, %v1513_v41 }
  0x69   :  { %714 = vmatmul.mubr.bf16.gmra.mxu0 %v1514_v42  ;;  %1387 = vmatmul.mubr.msk.bf16.vlgmr.msra.gmra.mxu1 %vm574_vm0, %v1515_v43 }
  0x6a   :  { %721 = vmatprep.mubr.bf16.mxu0 %v1516_v44  ;;  %1390 = vmatprep.mubr.msk.bf16.mxu1 %vm574_vm0, %v1518_v45 }
  0x71   :  { %722 = vmatmul.mubr.bf16.gmra.mxu0 %v1519_v46  ;;  %1391 = vmatmul.mubr.msk.bf16.gmra.mxu1 %vm574_vm0, %v1520_v47 }
  0x72   :  { %729 = vmatprep.mubr.bf16.mxu0 %v1521_v48  ;;  %1394 = vmatprep.mubr.msk.bf16.mxu1 %vm574_vm0, %v1523_v49 }
  0x79   :  { %730 = vmatmul.mubr.bf16.gmra.mxu0 %v1524_v50  ;;  %1395 = vmatmul.mubr.msk.bf16.gmra.mxu1 %vm574_vm0, %v1525_v51 }
  0x7a   :  { %737 = vmatprep.mubr.bf16.mxu0 %v1526_v52  ;;  %1398 = vmatprep.mubr.msk.bf16.mxu1 %vm574_vm0, %v1528_v53 }
  0x81   :  { %738 = vmatmul.mubr.bf16.gmra.mxu0 %v1529_v54  ;;  %1399 = vmatmul.mubr.msk.bf16.gmra.mxu1 %vm574_vm0, %v1530_v55 }
  0x82   :  { %745 = vmatprep.mubr.bf16.mxu0 %v1531_v56  ;;  %1402 = vmatprep.mubr.msk.bf16.mxu1 %vm574_vm0, %v1533_v57 }
  0x89   :  { %746 = vmatmul.mubr.bf16.gmra.mxu0 %v1534_v58  ;;  %1403 = vmatmul.mubr.msk.bf16.gmra.mxu1 %vm574_vm0, %v1535_v59 }
  0x8a   :  { %753 = vmatprep.mubr.bf16.mxu0 %v1536_v60  ;;  %1406 = vmatprep.mubr.msk.bf16.mxu1 %vm574_vm0, %v1538_v61 }
  0x91   :  { %754 = vmatmul.mubr.bf16.gmra.mxu0 %v1539_v62  ;;  %1407 = vmatmul.mubr.msk.bf16.gmra.mxu1 %vm574_vm0, %v1540_v63 }
  0x92   :  { %761 = vmatprep.mubr.bf16.mxu0 %v1541_v0  ;;  %1410 = vmatprep.mubr.msk.bf16.mxu1 %vm574_vm0, %v1543_v1 }
  0x99   :  { %762 = vmatmul.mubr.bf16.gmra.mxu0 %v1544_v2  ;;  %1411 = vmatmul.mubr.msk.bf16.gmra.mxu1 %vm574_vm0, %v1545_v3 }
  0x9a   :  { %769 = vmatprep.mubr.bf16.mxu0 %v1546_v4  ;;  %1414 = vmatprep.mubr.msk.bf16.mxu1 %vm574_vm0, %v1548_v5 }
  0xa1   :  { %770 = vmatmul.mubr.bf16.gmra.mxu0 %v1549_v6  ;;  %1415 = vmatmul.mubr.msk.bf16.gmra.mxu1 %vm574_vm0, %v1550_v7 }
  0xa2   :  { %777 = vmatprep.mubr.bf16.mxu0 %v1551_v8  ;;  %1418 = vmatprep.mubr.msk.bf16.mxu1 %vm574_vm0, %v1553_v9 }
  0xa9   :  { %778 = vmatmul.mubr.bf16.gmra.mxu0 %v1554_v10  ;;  %1419 = vmatmul.mubr.msk.bf16.gmra.mxu1 %vm574_vm0, %v1555_v11 }
  0xaa   :  { %785 = vmatprep.mubr.bf16.mxu0 %v1556_v12  ;;  %1422 = vmatprep.mubr.msk.bf16.mxu1 %vm574_vm0, %v1558_v13 }
  0xb1   :  { %786 = vmatmul.mubr.bf16.gmra.mxu0 %v1559_v14  ;;  %1423 = vmatmul.mubr.msk.bf16.gmra.mxu1 %vm574_vm0, %v1560_v15 }
  0xb2   :  { %793 = vmatprep.mubr.bf16.mxu0 %v1561_v16  ;;  %1426 = vmatprep.mubr.msk.bf16.mxu1 %vm574_vm0, %v1563_v17 }
  0xb9   :  { %794 = vmatmul.mubr.bf16.gmra.mxu0 %v1564_v18  ;;  %1427 = vmatmul.mubr.msk.bf16.gmra.mxu1 %vm574_vm0, %v1565_v19 }
  0xba   :  { %801 = vmatprep.mubr.bf16.mxu0 %v1566_v20 }
  0xc1   :  { %802 = vmatmul.mubr.bf16.gmra.mxu0 %v1568_v21 }
 0x101   :  { %v675_v22 = vpop.f32.mrf.mxu0  ;;  %v1894_v23 = vpop.f32.mrf.mxu1 }
 0x103   :  { %v677_v24 = vpop.f32.mrf.mxu0  ;;  %v813_v25 = vpop.f32.mrf.mxu1 }
 0x105   :  { %v678_v26 = vpop.f32.mrf.mxu0  ;;  %v1896_v27 = vpop.f32.mrf.mxu1 }
 0x107   :  { %v680_v28 = vpop.f32.mrf.mxu0  ;;  %v816_v29 = vpop.f32.mrf.mxu1 }
 0x109   :  { %v683_v31 = vpop.f32.mrf.mxu0  ;;  %v1901_v32 = vpop.f32.mrf.mxu1 }
 0x10b   :  { %v685_v33 = vpop.f32.mrf.mxu0  ;;  %v821_v34 = vpop.f32.mrf.mxu1 }
 0x10d   :  { %v686_v35 = vpop.f32.mrf.mxu0  ;;  %v1903_v36 = vpop.f32.mrf.mxu1 }
 0x10f   :  { %v688_v37 = vpop.f32.mrf.mxu0  ;;  %v824_v38 = vpop.f32.mrf.mxu1 }
 0x111   :  { %v691_v39 = vpop.f32.mrf.mxu0  ;;  %v1905_v40 = vpop.f32.mrf.mxu1 }
 0x113   :  { %v693_v41 = vpop.f32.mrf.mxu0  ;;  %v829_v42 = vpop.f32.mrf.mxu1 }
 0x115   :  { %v1907_v43 = vpop.f32.mrf.mxu0  ;;  %v1909_v44 = vpop.f32.mrf.mxu1 }
 0x117   :  { %v696_v45 = vpop.f32.mrf.mxu0  ;;  %v832_v46 = vpop.f32.mrf.mxu1 }
 0x119   :  { %v699_v47 = vpop.f32.mrf.mxu0  ;;  %v1911_v48 = vpop.f32.mrf.mxu1 }
 0x11b   :  { %v701_v49 = vpop.f32.mrf.mxu0  ;;  %v837_v50 = vpop.f32.mrf.mxu1 }
 0x11d   :  { %v702_v51 = vpop.f32.mrf.mxu0  ;;  %v1913_v52 = vpop.f32.mrf.mxu1 }
 0x11f   :  { %v704_v53 = vpop.f32.mrf.mxu0  ;;  %v840_v54 = vpop.f32.mrf.mxu1 }
 0x121   :  { %v1915_v55 = vpop.f32.mrf.mxu0  ;;  %v1917_v56 = vpop.f32.mrf.mxu1 }
 0x123   :  { %v709_v57 = vpop.f32.mrf.mxu0  ;;  %v845_v58 = vpop.f32.mrf.mxu1 }
 0x125   :  { %v1919_v59 = vpop.f32.mrf.mxu0  ;;  %v846_v60 = vpop.f32.mrf.mxu1 }
 0x127   :  { %v712_v61 = vpop.f32.mrf.mxu0  ;;  %v847_v62 = vpop.f32.mrf.mxu1 }
 0x129   :  { %v715_v63 = vpop.f32.mrf.mxu0  ;;  %v1388_v0 = vpop.f32.mrf.mxu1 }
 0x12a   :  { %v892_v1 = vadd.f32 %v1388_v0, %v683_v31 }
 0x12b   :  { %v717_v2 = vpop.f32.mrf.mxu0  ;;  %v883_v3 = vpop.f32.mrf.mxu1 }
 0x12c   :  { %1059 = vst [vmem:[%s2125_s2 + $0x10] sm:$0xff] %v892_v1  ;;  %v884_v4 = vadd.f32 %v883_v3, %v675_v22  ;;  %v1151_v19 = vmul.f32 %v892_v1, %v892_v1 }
 0x12d   :  { %v718_v5 = vpop.f32.mrf.mxu0  ;;  %v1389_v6 = vpop.f32.mrf.mxu1 }
 0x12e   :  { %1057 = vst [vmem:[%s2125_s2] sm:$0xff] %v884_v4  ;;  %v895_v7 = vadd.f32 %v1389_v6, %v686_v35  ;;  %v1149_v13 = vmul.f32 %v884_v4, %v884_v4 }
 0x12f   :  { %v720_v8 = vpop.f32.mrf.mxu0  ;;  %v886_v9 = vpop.f32.mrf.mxu1 }
 0x130   :  { %1060 = vst [vmem:[%s2125_s2 + $0x18] sm:$0xff] %v895_v7  ;;  %v887_v10 = vadd.f32 %v886_v9, %v678_v26  ;;  %v1152_v26 = vmul.f32 %v895_v7, %v895_v7 }
 0x131   :  { %v1930_v11 = vpop.f32.mrf.mxu0  ;;  %v1392_v12 = vpop.f32.mrf.mxu1 }
 0x132   :  { %1058 = vst [vmem:[%s2125_s2 + $0x8] sm:$0xff] %v887_v10  ;;  %v1101_v14 = vadd.f32 %v887_v10, %v884_v4  ;;  %v1150_v15 = vmul.f32 %v887_v10, %v887_v10  ;;  %v908_v16 = vadd.f32 %v1392_v12, %v699_v47 }
 0x133   :  { %v725_v17 = vpop.f32.mrf.mxu0  ;;  %v899_v18 = vpop.f32.mrf.mxu1 }
 0x134   :  { %v1102_v20 = vadd.f32 %v1101_v14, %v892_v1  ;;  %v1192_v21 = vadd.f32 %v1150_v15, %v1149_v13  ;;  %1063 = vst [vmem:[%s2125_s2 + $0x30] sm:$0xff] %v908_v16  ;;  %v900_v22 = vadd.f32 %v899_v18, %v691_v39 }
 0x135   :  { %v1938_v24 = vpop.f32.mrf.mxu0  ;;  %v1393_v25 = vpop.f32.mrf.mxu1 }
 0x136   :  { %v1193_v28 = vadd.f32 %v1192_v21, %v1151_v19  ;;  %1061 = vst [vmem:[%s2125_s2 + $0x20] sm:$0xff] %v900_v22  ;;  %v1103_v29 = vadd.f32 %v1102_v20, %v895_v7  ;;  %v911_v30 = vadd.f32 %v1393_v25, %v702_v51  ;;  %v1153_v35 = vmul.f32 %v900_v22, %v900_v22 }
 0x137   :  { %v728_v31 = vpop.f32.mrf.mxu0  ;;  %v902_v33 = vpop.f32.mrf.mxu1  ;;  %v1155_v51 = vmul.f32 %v908_v16, %v908_v16 }
 0x138   :  { %v1104_v34 = vadd.f32 %v1103_v29, %v900_v22  ;;  %v1194_v37 = vadd.f32 %v1193_v28, %v1152_v26  ;;  %1064 = vst [vmem:[%s2125_s2 + $0x38] sm:$0xff] %v911_v30  ;;  %v903_v38 = vadd.f32 %v902_v33, %v1907_v43  ;;  %v1156_v60 = vmul.f32 %v911_v30, %v911_v30 }
 0x139   :  { %v731_v39 = vpop.f32.mrf.mxu0  ;;  %v1396_v41 = vpop.f32.mrf.mxu1 }
 0x13a   :  { %v1195_v42 = vadd.f32 %v1194_v37, %v1153_v35  ;;  %1062 = vst [vmem:[%s2125_s2 + $0x28] sm:$0xff] %v903_v38  ;;  %v1105_v45 = vadd.f32 %v1104_v34, %v903_v38  ;;  %v1154_v46 = vmul.f32 %v903_v38, %v903_v38  ;;  %v924_v47 = vadd.f32 %v1396_v41, %v715_v63 }
 0x13b   :  { %v733_v49 = vpop.f32.mrf.mxu0  ;;  %v915_v50 = vpop.f32.mrf.mxu1 }
 0x13c   :  { %v1106_v53 = vadd.f32 %v1105_v45, %v908_v16  ;;  %v1196_v54 = vadd.f32 %v1195_v42, %v1154_v46  ;;  %1067 = vst [vmem:[%s2125_s2 + $0x50] sm:$0xff] %v924_v47  ;;  %v916_v43 = vadd.f32 %v915_v50, %v1915_v55  ;;  %v1159_v14 = vmul.f32 %v924_v47, %v924_v47 }
 0x13d   :  { %v734_v57 = vpop.f32.mrf.mxu0  ;;  %v1397_v58 = vpop.f32.mrf.mxu1 }
 0x13e   :  { %v1197_v61 = vadd.f32 %v1196_v54, %v1155_v51  ;;  %1065 = vst [vmem:[%s2125_s2 + $0x40] sm:$0xff] %v916_v43  ;;  %v1107_v62 = vadd.f32 %v1106_v53, %v911_v30  ;;  %v927_v63 = vadd.f32 %v1397_v58, %v718_v5  ;;  %v1157_v3 = vmul.f32 %v916_v43, %v916_v43 }
 0x13f   :  { %v736_v0 = vpop.f32.mrf.mxu0  ;;  %v918_v1 = vpop.f32.mrf.mxu1 }
 0x140   :  { %v1108_v2 = vadd.f32 %v1107_v62, %v916_v43  ;;  %v1198_v4 = vadd.f32 %v1197_v61, %v1156_v60  ;;  %1068 = vst [vmem:[%s2125_s2 + $0x58] sm:$0xff] %v927_v63  ;;  %v919_v55 = vadd.f32 %v918_v1, %v1919_v59  ;;  %v1160_v19 = vmul.f32 %v927_v63, %v927_v63 }
 0x141   :  { %v739_v6 = vpop.f32.mrf.mxu0  ;;  %v1400_v7 = vpop.f32.mrf.mxu1 }
 0x142   :  { %v1199_v8 = vadd.f32 %v1198_v4, %v1157_v3  ;;  %1066 = vst [vmem:[%s2125_s2 + $0x48] sm:$0xff] %v919_v55  ;;  %v1109_v9 = vadd.f32 %v1108_v2, %v919_v55  ;;  %v1158_v5 = vmul.f32 %v919_v55, %v919_v55  ;;  %v940_v10 = vadd.f32 %v1400_v7, %v731_v39 }
 0x143   :  { %v741_v12 = vpop.f32.mrf.mxu0  ;;  %v931_v13 = vpop.f32.mrf.mxu1 }
 0x144   :  { %v1110_v15 = vadd.f32 %v1109_v9, %v924_v47  ;;  %v1200_v16 = vadd.f32 %v1199_v8, %v1158_v5  ;;  %1071 = vst [vmem:[%s2125_s2 + $0x70] sm:$0xff] %v940_v10  ;;  %v932_v59 = vadd.f32 %v931_v13, %v1930_v11  ;;  %v1163_v53 = vmul.f32 %v940_v10, %v940_v10 }
 0x145   :  { %v742_v17 = vpop.f32.mrf.mxu0  ;;  %v1401_v18 = vpop.f32.mrf.mxu1 }
 0x146   :  { %v1201_v20 = vadd.f32 %v1200_v16, %v1159_v14  ;;  %1069 = vst [vmem:[%s2125_s2 + $0x60] sm:$0xff] %v932_v59  ;;  %v1111_v21 = vadd.f32 %v1110_v15, %v927_v63  ;;  %v943_v22 = vadd.f32 %v1401_v18, %v734_v57  ;;  %v1161_v11 = vmul.f32 %v932_v59, %v932_v59 }
 0x147   :  { %v744_v25 = vpop.f32.mrf.mxu0  ;;  %v934_v26 = vpop.f32.mrf.mxu1 }
 0x148   :  { %v1202_v28 = vadd.f32 %v1201_v20, %v1160_v19  ;;  %1072 = vst [vmem:[%s2125_s2 + $0x78] sm:$0xff] %v943_v22  ;;  %v935_v29 = vadd.f32 %v934_v26, %v1938_v24  ;;  %v1112_v33 = vadd.f32 %v1111_v21, %v932_v59  ;;  %v1164_v63 = vmul.f32 %v943_v22, %v943_v22 }
 0x149   :  { %v747_v30 = vpop.f32.mrf.mxu0  ;;  %v1404_v31 = vpop.f32.mrf.mxu1 }
 0x14a   :  { %1070 = vst [vmem:[%s2125_s2 + $0x68] sm:$0xff] %v935_v29  ;;  %v956_v34 = vadd.f32 %v1404_v31, %v747_v30  ;;  %v1203_v35 = vadd.f32 %v1202_v28, %v1161_v11  ;;  %v1162_v37 = vmul.f32 %v935_v29, %v935_v29  ;;  %v1113_v45 = vadd.f32 %v1112_v33, %v935_v29 }
 0x14b   :  { %v749_v38 = vpop.f32.mrf.mxu0  ;;  %v947_v39 = vpop.f32.mrf.mxu1 }
 0x14c   :  { %1075 = vst [vmem:[%s2125_s2 + $0x90] sm:$0xff] %v956_v34  ;;  %v948_v41 = vadd.f32 %v947_v39, %v739_v6  ;;  %v1204_v47 = vadd.f32 %v1203_v35, %v1162_v37  ;;  %v1114_v57 = vadd.f32 %v1113_v45, %v940_v10 }
 0x14d   :  { %v750_v42 = vpop.f32.mrf.mxu0  ;;  %v1405_v24 = vpop.f32.mrf.mxu1 }
 0x14e   :  { %1073 = vst [vmem:[%s2125_s2 + $0x80] sm:$0xff] %v948_v41  ;;  %v959_v46 = vadd.f32 %v1405_v24, %v750_v42  ;;  %v1205_v58 = vadd.f32 %v1204_v47, %v1163_v53  ;;  %v1115_v2 = vadd.f32 %v1114_v57, %v943_v22  ;;  %v1165_v7 = vmul.f32 %v948_v41, %v948_v41 }
 0x14f   :  { %v752_v49 = vpop.f32.mrf.mxu0  ;;  %v950_v50 = vpop.f32.mrf.mxu1  ;;  %v1167_v22 = vmul.f32 %v956_v34, %v956_v34 }
 0x150   :  { %1076 = vst [vmem:[%s2125_s2 + $0x98] sm:$0xff] %v959_v46  ;;  %v951_v51 = vadd.f32 %v950_v50, %v742_v17  ;;  %v1206_v3 = vadd.f32 %v1205_v58, %v1164_v63  ;;  %v1116_v5 = vadd.f32 %v1115_v2, %v948_v41  ;;  %v1168_v33 = vmul.f32 %v959_v46, %v959_v46 }
 0x151   :  { %v755_v54 = vpop.f32.mrf.mxu0  ;;  %v1408_v43 = vpop.f32.mrf.mxu1 }
 0x152   :  { %1074 = vst [vmem:[%s2125_s2 + $0x88] sm:$0xff] %v951_v51  ;;  %v1207_v12 = vadd.f32 %v1206_v3, %v1165_v7  ;;  %v1166_v13 = vmul.f32 %v951_v51, %v951_v51  ;;  %v1117_v17 = vadd.f32 %v1116_v5, %v951_v51 }
 0x153   :  { %v757_v60 = vpop.f32.mrf.mxu0  ;;  %v963_v61 = vpop.f32.mrf.mxu1 }
 0x154   :  { %v964_v62 = vadd.f32 %v963_v61, %v755_v54  ;;  %v1208_v19 = vadd.f32 %v1207_v12, %v1166_v13  ;;  %v1118_v28 = vadd.f32 %v1117_v17, %v956_v34 }
 0x155   :  { %v758_v0 = vpop.f32.mrf.mxu0  ;;  %v1409_v1 = vpop.f32.mrf.mxu1 }
 0x156   :  { %1077 = vst [vmem:[%s2125_s2 + $0xa0] sm:$0xff] %v964_v62  ;;  %v1209_v11 = vadd.f32 %v1208_v19, %v1167_v22  ;;  %v1119_v38 = vadd.f32 %v1118_v28, %v959_v46  ;;  %v1169_v34 = vmul.f32 %v964_v62, %v964_v62 }
 0x157   :  { %v760_v4 = vpop.f32.mrf.mxu0  ;;  %v966_v55 = vpop.f32.mrf.mxu1 }
 0x158   :  { %v967_v6 = vadd.f32 %v966_v55, %v758_v0  ;;  %v1210_v41 = vadd.f32 %v1209_v11, %v1168_v33  ;;  %v1120_v49 = vadd.f32 %v1119_v38, %v964_v62 }
 0x159   :  { %v763_v8 = vpop.f32.mrf.mxu0  ;;  %v1412_v9 = vpop.f32.mrf.mxu1 }
 0x15a   :  { %1078 = vst [vmem:[%s2125_s2 + $0xa8] sm:$0xff] %v967_v6  ;;  %v972_v10 = vadd.f32 %v1408_v43, %v763_v8  ;;  %v1211_v53 = vadd.f32 %v1210_v41, %v1169_v34  ;;  %v1170_v54 = vmul.f32 %v967_v6, %v967_v6  ;;  %v1121_v60 = vadd.f32 %v1120_v49, %v967_v6 }
 0x15b   :  { %v765_v14 = vpop.f32.mrf.mxu0  ;;  %v979_v15 = vpop.f32.mrf.mxu1 }
 0x15c   :  { %1079 = vst [vmem:[%s2125_s2 + $0xb0] sm:$0xff] %v972_v10  ;;  %v1212_v62 = vadd.f32 %v1211_v53, %v1170_v54  ;;  %v1171_v63 = vmul.f32 %v972_v10, %v972_v10  ;;  %v1122_v55 = vadd.f32 %v1121_v60, %v972_v10 }
 0x15d   :  { %v766_v16 = vpop.f32.mrf.mxu0  ;;  %v1413_v59 = vpop.f32.mrf.mxu1 }
 0x15e   :  { %v975_v18 = vadd.f32 %v1409_v1, %v766_v16  ;;  %v1213_v7 = vadd.f32 %v1212_v62, %v1171_v63 }
 0x15f   :  { %v768_v20 = vpop.f32.mrf.mxu0  ;;  %v982_v21 = vpop.f32.mrf.mxu1 }
 0x160   :  { %1080 = vst [vmem:[%s2125_s2 + $0xb8] sm:$0xff] %v975_v18  ;;  %v1172_v2 = vmul.f32 %v975_v18, %v975_v18  ;;  %v1123_v12 = vadd.f32 %v1122_v55, %v975_v18 }
 0x161   :  { %v771_v25 = vpop.f32.mrf.mxu0  ;;  %v2002_v26 = vpop.f32.mrf.mxu1 }
 0x162   :  { %v980_v29 = vadd.f32 %v979_v15, %v771_v25  ;;  %v1214_v13 = vadd.f32 %v1213_v7, %v1172_v2 }
 0x163   :  { %v773_v30 = vpop.f32.mrf.mxu0  ;;  %v995_v31 = vpop.f32.mrf.mxu1 }
 0x164   :  { %1081 = vst [vmem:[%s2125_s2 + $0xc0] sm:$0xff] %v980_v29  ;;  %v1173_v8 = vmul.f32 %v980_v29, %v980_v29  ;;  %v1124_v16 = vadd.f32 %v1123_v12, %v980_v29 }
 0x165   :  { %v774_v35 = vpop.f32.mrf.mxu0  ;;  %v2007_v37 = vpop.f32.mrf.mxu1 }
 0x166   :  { %v983_v39 = vadd.f32 %v982_v21, %v774_v35  ;;  %v1215_v18 = vadd.f32 %v1214_v13, %v1173_v8 }
 0x167   :  { %v776_v42 = vpop.f32.mrf.mxu0  ;;  %v998_v24 = vpop.f32.mrf.mxu1 }
 0x168   :  { %1082 = vst [vmem:[%s2125_s2 + $0xc8] sm:$0xff] %v983_v39  ;;  %v1125_v21 = vadd.f32 %v1124_v16, %v983_v39 }
 0x169   :  { %v779_v45 = vpop.f32.mrf.mxu0  ;;  %v1420_v47 = vpop.f32.mrf.mxu1 }
 0x16a   :  { %v988_v50 = vadd.f32 %v1412_v9, %v779_v45  ;;  %v2013_v51 = vadd.f32 %v1420_v47, %v1894_v23 }
 0x16b   :  { %v781_v43 = vpop.f32.mrf.mxu0  ;;  %v2015_v46 = vpop.f32.mrf.mxu1 }
 0x16c   :  { %1083 = vst [vmem:[%s2125_s2 + $0xd0] sm:$0xff] %v988_v50  ;;  %1091 = vst [vmem:[%s2125_s2 + $0x110] sm:$0xff] %v2013_v51  ;;  %v1126_v29 = vadd.f32 %v1125_v21, %v988_v50  ;;  %v1183_v8 = vmul.f32 %v2013_v51, %v2013_v51 }
 0x16d   :  { %v782_v57 = vpop.f32.mrf.mxu0  ;;  %v1421_v58 = vpop.f32.mrf.mxu1 }
 0x16e   :  { %v991_v61 = vadd.f32 %v1413_v59, %v782_v57  ;;  %v2025_v23 = vadd.f32 %v1421_v58, %v1896_v27 }
 0x16f   :  { %v784_v0 = vpop.f32.mrf.mxu0  ;;  %v2027_v1 = vpop.f32.mrf.mxu1 }
 0x170   :  { %1084 = vst [vmem:[%s2125_s2 + $0xd8] sm:$0xff] %v991_v61  ;;  %1092 = vst [vmem:[%s2125_s2 + $0x118] sm:$0xff] %v2025_v23  ;;  %v1176_v11 = vmul.f32 %v991_v61, %v991_v61  ;;  %v1184_v12 = vmul.f32 %v2025_v23, %v2025_v23 }
 0x171   :  { %v787_v3 = vpop.f32.mrf.mxu0  ;;  %v1424_v4 = vpop.f32.mrf.mxu1 }
 0x172   :  { %v996_v27 = vadd.f32 %v995_v31, %v787_v3  ;;  %v2037_v6 = vadd.f32 %v1424_v4, %v1905_v40  ;;  %v1174_v40 = vmul.f32 %v983_v39, %v983_v39  ;;  %v1127_v39 = vadd.f32 %v1126_v29, %v991_v61 }
 0x173   :  { %v789_v9 = vpop.f32.mrf.mxu0  ;;  %v1027_v5 = vpop.f32.mrf.mxu1 }
 0x174   :  { %1085 = vst [vmem:[%s2125_s2 + $0xe0] sm:$0xff] %v996_v27  ;;  %1095 = vst [vmem:[%s2125_s2 + $0x130] sm:$0xff] %v2037_v6  ;;  %v2047_v10 = vadd.f32 %v1027_v5, %v1901_v32  ;;  %v1175_v32 = vmul.f32 %v988_v50, %v988_v50  ;;  %v1216_v25 = vadd.f32 %v1215_v18, %v1174_v40 }
 0x175   :  { %v790_v14 = vpop.f32.mrf.mxu0  ;;  %v1425_v15 = vpop.f32.mrf.mxu1  ;;  %v1177_v41 = vmul.f32 %v996_v27, %v996_v27 }
 0x176   :  { %1093 = vst [vmem:[%s2125_s2 + $0x120] sm:$0xff] %v2047_v10  ;;  %v999_v59 = vadd.f32 %v998_v24, %v790_v14  ;;  %v2054_v17 = vadd.f32 %v1425_v15, %v1909_v44  ;;  %v1217_v38 = vadd.f32 %v1216_v25, %v1175_v32  ;;  %v1128_v24 = vadd.f32 %v1127_v39, %v996_v27 }
 0x177   :  { %v792_v19 = vpop.f32.mrf.mxu0  ;;  %v1030_v20 = vpop.f32.mrf.mxu1  ;;  %v1185_v40 = vmul.f32 %v2047_v10, %v2047_v10 }
 0x178   :  { %1086 = vst [vmem:[%s2125_s2 + $0xe8] sm:$0xff] %v999_v59  ;;  %1096 = vst [vmem:[%s2125_s2 + $0x138] sm:$0xff] %v2054_v17  ;;  %v1031_v22 = vadd.f32 %v1030_v20, %v1903_v36  ;;  %v1178_v34 = vmul.f32 %v999_v59, %v999_v59  ;;  %v1129_v53 = vadd.f32 %v1128_v24, %v999_v59 }
 0x179   :  { %v795_v28 = vpop.f32.mrf.mxu0  ;;  %v1428_v44 = vpop.f32.mrf.mxu1  ;;  %v1187_v19 = vmul.f32 %v2037_v6, %v2037_v6  ;;  %v1188_v21 = vmul.f32 %v2054_v17, %v2054_v17 }
 0x17a   :  { %1094 = vst [vmem:[%s2125_s2 + $0x128] sm:$0xff] %v1031_v22  ;;  %v1004_v30 = vadd.f32 %v2002_v26, %v795_v28  ;;  %v2069_v31 = vadd.f32 %v1428_v44, %v1917_v56  ;;  %v1218_v56 = vadd.f32 %v1217_v38, %v1176_v11  ;;  %v1186_v16 = vmul.f32 %v1031_v22, %v1031_v22 }
 0x17b   :  { %v797_v33 = vpop.f32.mrf.mxu0  ;;  %v1043_v35 = vpop.f32.mrf.mxu1 }
 0x17c   :  { %1087 = vst [vmem:[%s2125_s2 + $0xf0] sm:$0xff] %v1004_v30  ;;  %1099 = vst [vmem:[%s2125_s2 + $0x150] sm:$0xff] %v2069_v31  ;;  %v1044_v36 = vadd.f32 %v1043_v35, %v1911_v48  ;;  %v1219_v50 = vadd.f32 %v1218_v56, %v1177_v41  ;;  %v1179_v54 = vmul.f32 %v1004_v30, %v1004_v30 }
 0x17d   :  { %v798_v26 = vpop.f32.mrf.mxu0  ;;  %v1429_v42 = vpop.f32.mrf.mxu1  ;;  %v1130_v58 = vadd.f32 %v1129_v53, %v1004_v30 }
 0x17e   :  { %1097 = vst [vmem:[%s2125_s2 + $0x140] sm:$0xff] %v1044_v36  ;;  %v1007_v45 = vadd.f32 %v2007_v37, %v798_v26  ;;  %v1220_v57 = vadd.f32 %v1219_v50, %v1178_v34  ;;  %v1189_v25 = vmul.f32 %v1044_v36, %v1044_v36  ;;  %v1100_v34 = vld [vmem:[%s2124_s3] sm:$0x3] }
 0x17f   :  { %v800_v47 = vpop.f32.mrf.mxu0  ;;  %v1046_v49 = vpop.f32.mrf.mxu1 }
 0x180   :  { %1088 = vst [vmem:[%s2125_s2 + $0xf8] sm:$0xff] %v1007_v45  ;;  %v1047_v48 = vadd.f32 %v1046_v49, %v1913_v52  ;;  %v1180_v60 = vmul.f32 %v1007_v45, %v1007_v45  ;;  %v1221_v62 = vadd.f32 %v1220_v57, %v1179_v54  ;;  %v1131_v63 = vadd.f32 %v1130_v58, %v1007_v45 }
 0x181   :  { %v803_v43 = vpop.f32.mrf.mxu0 }
 0x182   :  { %1098 = vst [vmem:[%s2125_s2 + $0x148] sm:$0xff] %v1047_v48  ;;  %v1012_v37 = vadd.f32 %v2015_v46, %v803_v43  ;;  %v1222_v52 = vadd.f32 %v1221_v62, %v1180_v60 }
 0x183   :  { %v805_v61 = vpop.f32.mrf.mxu0 }
 0x184   :  { %1089 = vst [vmem:[%s2125_s2 + $0x100] sm:$0xff] %v1012_v37  ;;  %v1181_v0 = vmul.f32 %v1012_v37, %v1012_v37  ;;  %v1132_v3 = vadd.f32 %v1131_v63, %v1012_v37 }
 0x185   :  { %v806_v2 = vpop.f32.mrf.mxu0 }
 0x186   :  { %v1015_v4 = vadd.f32 %v2027_v1, %v806_v2  ;;  %v1223_v27 = vadd.f32 %v1222_v52, %v1181_v0 }
 0x187   :  { %v808_v55 = vpop.f32.mrf.mxu0 }
 0x188   :  { %1090 = vst [vmem:[%s2125_s2 + $0x108] sm:$0xff] %v1015_v4  ;;  %v1133_v46 = vadd.f32 %v1132_v3, %v1015_v4  ;;  %v1182_v7 = vmul.f32 %v1015_v4, %v1015_v4 }
 0x18a   :  { %v1134_v9 = vadd.f32 %v1133_v46, %v2013_v51  ;;  %v1224_v5 = vadd.f32 %v1223_v27, %v1182_v7 }
 0x18c   :  { %v1135_v13 = vadd.f32 %v1134_v9, %v2025_v23  ;;  %v1225_v1 = vadd.f32 %v1224_v5, %v1183_v8 }
 0x18e   :  { %v1136_v14 = vadd.f32 %v1135_v13, %v2047_v10  ;;  %v1226_v15 = vadd.f32 %v1225_v1, %v1184_v12  ;;  %v1190_v10 = vmul.f32 %v1047_v48, %v1047_v48 }
 0x190   :  { %v1137_v59 = vadd.f32 %v1136_v14, %v1031_v22  ;;  %v1227_v18 = vadd.f32 %v1226_v15, %v1185_v40  ;;  %v1191_v22 = vmul.f32 %v2069_v31, %v2069_v31 }
 0x192   :  { %v1138_v51 = vadd.f32 %v1137_v59, %v2037_v6  ;;  %v1228_v20 = vadd.f32 %v1227_v18, %v1186_v16 }
 0x194   :  { %v1139_v23 = vadd.f32 %v1138_v51, %v2054_v17  ;;  %v1229_v32 = vadd.f32 %v1228_v20, %v1187_v19 }
 0x196   :  { %v1140_v28 = vadd.f32 %v1139_v23, %v1044_v36  ;;  %v1230_v44 = vadd.f32 %v1229_v32, %v1188_v21 }
 0x198   :  { %v1141_v29 = vadd.f32 %v1140_v28, %v1047_v48  ;;  %v1231_v11 = vadd.f32 %v1230_v44, %v1189_v25 }
 0x19a   :  { %v1142_v30 = vadd.f32 %v1141_v29, %v2069_v31  ;;  %v1232_v33 = vadd.f32 %v1231_v11, %v1190_v10 }
 0x19c   :  { %v1143_v6 = vrot.slane %v1142_v30, 4  ;;  %v1233_v35 = vadd.f32 %v1232_v33, %v1191_v22 }
 0x19e   :  { %v1144_v38 = vadd.f32 %v1143_v6, %v1142_v30  ;;  %v1234_v39 = vrot.slane %v1233_v35, 4 }
 0x1a0   :  { %v1145_v41 = vrot.slane %v1144_v38, 2  ;;  %v1235_v26 = vadd.f32 %v1234_v39, %v1233_v35 }
 0x1a2   :  { %v1146_v17 = vadd.f32 %v1145_v41, %v1144_v38  ;;  %v1236_v42 = vrot.slane %v1235_v26, 2 }
 0x1a4   :  { %v1147_v56 = vrot.slane %v1146_v17, 1  ;;  %v1237_v36 = vadd.f32 %v1236_v42, %v1235_v26 }
 0x1a6   :  { %v1238_v24 = vrot.slane %v1237_v36, 1  ;;  %v1148_v45 = vadd.f32 %v1147_v56, %v1146_v17 }
 0x1a8   :  { %v1239_v47 = vadd.f32 %v1238_v24, %v1237_v36 }
 0x1aa   :  { %v1241_v31 = vsel %vm1240_vm1, %v1148_v45, %v1239_v47 }
 0x1ab   :  { %v1242_v49 = vadd.f32 %v1241_v31, %v1100_v34 }
 0x1ad   :  { %1243 = vst [vmem:[%s2124_s3] sm:$0x3] %v1242_v49 }

// kernel: stem_v4_res2_forward.24
= control target key start
LH: loop header
LB: loop body
LE: loop exit
PB: predicated region body
PF: predicated region fallthrough
CT: control target
= control target key end

     0   :  { %s593_s6 = smov 0   ;;  %s897_s0 = inlined_call_operand.vmem [shape: f32[2,13,13,64], index: 0, kind: input, shape index: {}]   ;;  %s898_s1 = inlined_call_operand.vmem [shape: f32[2,11,11,64], index: 1, kind: output, shape index: {}]  }
   0x1 LB: > { %s556_s7 = sadd.s32 4294967295, %s581_s6   ;;  %p560_p0 = scmp.ge.s32.totalorder %s581_s6, 1  ;;  %s581_s6 = sphi %s593_s6, %s11_s6  }
   0x2   : > { %p87_p1 = scmp.lt.s32.totalorder %s581_s6, 3 }
   0x4   : > { %p88_p2 = pnand %p560_p0, %p87_p1 }
   0x5   : > { %p107_p3 = scmp.lt.s32.totalorder (!%p88_p2), %s556_s7, 1 }
   0x6   : > { %91 = sbr.rel (%p88_p2) target bundleno = 92 (0x5c), region = 24 }
   0xb   : > { %s900_s7 = smov (!%p107_p3, %s556_s7), 1  ;;  %vm165_vm0 = vcmask 1046528   ;;  %vm243_vm1 = vcmask 1045504   ;;  %vm477_vm2 = vcmask 523264   ;;  %vm479_vm3 = vcmask 518144  }
   0xc   : > { %s565_s8 = smul.u32 208, %s900_s7 }
   0xd   : > { %s566_s12 = smul.u32 176, %s900_s7 }
   0xe   : > { %s607_s11 = scalar_lea.vmem %s897_s0, %s565_s8 }
   0xf   : > { %v117_v0 = vld [vmem:[%s607_s11] sm:$0xff]  ;;  %v118_v1 = vld [vmem:[%s607_s11 + $0x8] sm:$0x1f]  ;;  %v119_v2 = vld [vmem:[%s607_s11 + $0x10] sm:$0xff]  ;;  %s679_s15 = scalar_lea.vmem %s898_s1, %s566_s12 }
  0x10   : > { %v120_v3 = vld [vmem:[%s607_s11 + $0x18] sm:$0x1f]  ;;  %v614_v4 = vld [vmem:[%s607_s11 + $0x20] sm:$0xff]  ;;  %v617_v5 = vld [vmem:[%s607_s11 + $0x28] sm:$0x1f]  ;;  %v166_v6 = vrot.slane %v117_v0, 1 }
  0x11   : > { %v167_v7 = vrot.slane %v118_v1, 1  ;;  %v169_v8 = vrot.slane %v119_v2, 1  ;;  %v170_v9 = vrot.slane %v120_v3, 1  ;;  %v172_v10 = vrot.slane %v614_v4, 1  ;;  %v123_v15 = vld [vmem:[%s607_s11 + $0x30] sm:$0xff]  ;;  %v125_v35 = vld [vmem:[%s607_s11 + $0x40] sm:$0xff] }
  0x12   : > { %v621_v11 = vrot.slane %v617_v5, 1  ;;  %v244_v12 = vrot.slane %v117_v0, 2  ;;  %v245_v13 = vrot.slane %v118_v1, 2  ;;  %v247_v14 = vrot.slane %v119_v2, 2  ;;  %v628_v20 = vld [vmem:[%s607_s11 + $0x38] sm:$0x1f] }
  0x13   : > { %v168_v16 = vsel %vm165_vm0, %v166_v6, %v167_v7  ;;  %v171_v17 = vsel %vm165_vm0, %v169_v8, %v170_v9  ;;  %v248_v18 = vrot.slane %v120_v3, 2  ;;  %v250_v19 = vrot.slane %v614_v4, 2  ;;  %v654_v42 = vld [vmem:[%s607_s11 + $0x48] sm:$0x1f] }
  0x14   : > { %v632_v21 = vsel %vm165_vm0, %v172_v10, %v621_v11  ;;  %v221_v22 = vmax.f32 %v117_v0, %v168_v16  ;;  %v223_v23 = vmax.f32 %v119_v2, %v171_v17  ;;  %v246_v24 = vsel %vm243_vm1, %v244_v12, %v245_v13 }
  0x15   : > { %v225_v25 = vmax.f32 %v614_v4, %v632_v21  ;;  %v249_v26 = vsel %vm243_vm1, %v247_v14, %v248_v18  ;;  %v639_v27 = vrot.slane %v617_v5, 2  ;;  %v222_v28 = vmax.f32 %v118_v1, %v167_v7 }
  0x16   : > { %v299_v29 = vmax.f32 %v221_v22, %v246_v24  ;;  %v301_v30 = vmax.f32 %v223_v23, %v249_v26  ;;  %v175_v31 = vrot.slane %v123_v15, 1  ;;  %v642_v32 = vrot.slane %v628_v20, 1 }
  0x17   : > { %v252_v33 = vsel %vm243_vm1, %v250_v19, %v639_v27  ;;  %v300_v34 = vmax.f32 %v222_v28, %v245_v13  ;;  %v253_v36 = vrot.slane %v123_v15, 2  ;;  %v648_v37 = vrot.slane %v628_v20, 2 }
  0x18   : > { %v303_v38 = vmax.f32 %v225_v25, %v252_v33  ;;  %v321_v39 = vmax.f32 %v299_v29, %v119_v2  ;;  %v323_v40 = vmax.f32 %v301_v30, %v614_v4  ;;  %v177_v41 = vsel %vm165_vm0, %v175_v31, %v642_v32  ;;  %v127_v2 = vld [vmem:[%s607_s11 + $0x50] sm:$0xff] }
  0x19   : > { %v322_v43 = vmax.f32 %v300_v34, %v120_v3  ;;  %v227_v44 = vmax.f32 %v123_v15, %v177_v41  ;;  %v255_v45 = vsel %vm243_vm1, %v253_v36, %v648_v37  ;;  %v224_v46 = vmax.f32 %v120_v3, %v170_v9  ;;  %v707_v36 = vld [vmem:[%s607_s11 + $0x68] sm:$0x1f] }
  0x1a   : > { %v325_v47 = vmax.f32 %v303_v38, %v123_v15  ;;  %v350_v48 = vmax.f32 %v321_v39, %v171_v17  ;;  %v352_v49 = vmax.f32 %v323_v40, %v632_v21  ;;  %v178_v50 = vrot.slane %v125_v35, 1  ;;  %v686_v17 = vld [vmem:[%s607_s11 + $0x58] sm:$0x1f] }
  0x1b   : > { %v351_v51 = vmax.f32 %v322_v43, %v170_v9  ;;  %v305_v52 = vmax.f32 %v227_v44, %v255_v45  ;;  %v302_v53 = vmax.f32 %v224_v46, %v248_v18  ;;  %v660_v54 = vrot.slane %v654_v42, 1 }
  0x1c   : > { %v377_v55 = vmax.f32 %v350_v48, %v249_v26  ;;  %v379_v56 = vmax.f32 %v352_v49, %v252_v33  ;;  %v354_v57 = vmax.f32 %v325_v47, %v177_v41  ;;  %v256_v58 = vrot.slane %v125_v35, 2  ;;  %v129_v26 = vld [vmem:[%s607_s11 + $0x60] sm:$0xff] }
  0x1d   : > { %v378_v59 = vmax.f32 %v351_v51, %v248_v18  ;;  %v327_v60 = vmax.f32 %v305_v52, %v125_v35  ;;  %v324_v61 = vmax.f32 %v302_v53, %v617_v5  ;;  %v180_v62 = vsel %vm165_vm0, %v178_v50, %v660_v54  ;;  %v131_v53 = vld [vmem:[%s607_s11 + $0x70] sm:$0xff] }
  0x1e   : > { %v399_v63 = vmax.f32 %v377_v55, %v614_v4  ;;  %v381_v0 = vmax.f32 %v354_v57, %v255_v45  ;;  %v401_v1 = vmax.f32 %v379_v56, %v123_v15  ;;  %v229_v3 = vmax.f32 %v125_v35, %v180_v62 }
  0x1f   : > { %v400_v6 = vmax.f32 %v378_v59, %v617_v5  ;;  %v353_v7 = vmax.f32 %v324_v61, %v621_v11  ;;  %v671_v8 = vrot.slane %v654_v42, 2  ;;  %v356_v9 = vmax.f32 %v327_v60, %v180_v62  ;;  %v736_v59 = vld [vmem:[%s607_s11 + $0x78] sm:$0x1f] }
  0x20   : > { %v428_v10 = vmax.f32 %v399_v63, %v632_v21  ;;  %v430_v12 = vmax.f32 %v401_v1, %v177_v41  ;;  %v403_v13 = vmax.f32 %v381_v0, %v125_v35  ;;  %v226_v4 = vmax.f32 %v617_v5, %v621_v11 }
  0x21   : > { %v429_v14 = vmax.f32 %v400_v6, %v621_v11  ;;  %v380_v15 = vmax.f32 %v353_v7, %v639_v27  ;;  %v258_v16 = vsel %vm243_vm1, %v256_v58, %v671_v8  ;;  %v181_v18 = vrot.slane %v127_v2, 1 }
  0x22   : > { %v455_v19 = vmax.f32 %v428_v10, %v252_v33  ;;  %v457_v5 = vmax.f32 %v430_v12, %v255_v45  ;;  %v307_v21 = vmax.f32 %v229_v3, %v258_v16  ;;  %v383_v22 = vmax.f32 %v356_v9, %v258_v16 }
  0x23   : > { %v456_v23 = vmax.f32 %v429_v14, %v639_v27  ;;  %v402_v24 = vmax.f32 %v380_v15, %v628_v20  ;;  %v432_v25 = vmax.f32 %v403_v13, %v180_v62  ;;  %v304_v11 = vmax.f32 %v226_v4, %v639_v27 }
  0x24   : > { %478 = vst.msk [vmem:[%s679_s15] sm:$0xff] %vm477_vm2, %v455_v19  ;;  %481 = vst.msk [vmem:[%s679_s15 + $0x10] sm:$0xff] %vm477_vm2, %v457_v5  ;;  %v329_v28 = vmax.f32 %v307_v21, %v127_v2  ;;  %v697_v29 = vrot.slane %v686_v17, 1  ;;  %v259_v30 = vrot.slane %v127_v2, 2  ;;  %v700_v31 = vrot.slane %v686_v17, 2 }
  0x25   : > { %480 = vst.msk [vmem:[%s679_s15 + $0x8] sm:$0x7] %vm479_vm3, %v456_v23  ;;  %v431_v33 = vmax.f32 %v402_v24, %v642_v32  ;;  %v459_v34 = vmax.f32 %v432_v25, %v258_v16  ;;  %v326_v27 = vmax.f32 %v304_v11, %v628_v20  ;;  %v405_v35 = vmax.f32 %v383_v22, %v127_v2  ;;  %v133_v16 = vld [vmem:[%s607_s11 + $0x80] sm:$0xff] }
  0x26   : > { %v183_v38 = vsel %vm165_vm0, %v181_v18, %v697_v29  ;;  %v261_v39 = vsel %vm243_vm1, %v259_v30, %v700_v31  ;;  %v228_v40 = vmax.f32 %v628_v20, %v642_v32  ;;  %v184_v41 = vrot.slane %v129_v26, 1  ;;  %v756_v18 = vld [vmem:[%s607_s11 + $0x88] sm:$0x1f] }
  0x27   : > { %v458_v43 = vmax.f32 %v431_v33, %v648_v37  ;;  %483 = vst.msk [vmem:[%s679_s15 + $0x20] sm:$0xff] %vm477_vm2, %v459_v34  ;;  %v355_v44 = vmax.f32 %v326_v27, %v642_v32  ;;  %v231_v45 = vmax.f32 %v127_v2, %v183_v38  ;;  %v358_v46 = vmax.f32 %v329_v28, %v183_v38 }
  0x28   : > { %v434_v47 = vmax.f32 %v405_v35, %v183_v38  ;;  %v306_v48 = vmax.f32 %v228_v40, %v648_v37  ;;  %v721_v49 = vrot.slane %v707_v36, 1  ;;  %v262_v50 = vrot.slane %v129_v26, 2  ;;  %v135_v40 = vld [vmem:[%s607_s11 + $0x90] sm:$0xff] }
  0x29   : > { %482 = vst.msk [vmem:[%s679_s15 + $0x18] sm:$0x7] %vm479_vm3, %v458_v43  ;;  %v382_v20 = vmax.f32 %v355_v44, %v648_v37  ;;  %v309_v51 = vmax.f32 %v231_v45, %v261_v39  ;;  %v385_v52 = vmax.f32 %v358_v46, %v261_v39  ;;  %v728_v32 = vrot.slane %v707_v36, 2 }
  0x2a   : > { %v461_v55 = vmax.f32 %v434_v47, %v261_v39  ;;  %v328_v56 = vmax.f32 %v306_v48, %v654_v42  ;;  %v186_v57 = vsel %vm165_vm0, %v184_v41, %v721_v49  ;;  %v230_v58 = vmax.f32 %v654_v42, %v660_v54 }
  0x2b   : > { %v404_v60 = vmax.f32 %v382_v20, %v654_v42  ;;  %v331_v37 = vmax.f32 %v309_v51, %v129_v26  ;;  %v233_v61 = vmax.f32 %v129_v26, %v186_v57  ;;  %v264_v62 = vsel %vm243_vm1, %v262_v50, %v728_v32  ;;  %v790_v50 = vld [vmem:[%s607_s11 + $0x98] sm:$0x1f] }
  0x2c   : > { %485 = vst.msk [vmem:[%s679_s15 + $0x30] sm:$0xff] %vm477_vm2, %v461_v55  ;;  %v357_v63 = vmax.f32 %v328_v56, %v660_v54  ;;  %v407_v0 = vmax.f32 %v385_v52, %v129_v26  ;;  %v308_v1 = vmax.f32 %v230_v58, %v671_v8  ;;  %v187_v2 = vrot.slane %v131_v53, 1 }
  0x2d   : > { %v433_v3 = vmax.f32 %v404_v60, %v660_v54  ;;  %v311_v6 = vmax.f32 %v233_v61, %v264_v62  ;;  %v360_v7 = vmax.f32 %v331_v37, %v186_v57  ;;  %v747_v42 = vrot.slane %v736_v59, 1 }
  0x2e   : > { %v384_v9 = vmax.f32 %v357_v63, %v671_v8  ;;  %v436_v10 = vmax.f32 %v407_v0, %v186_v57  ;;  %v330_v12 = vmax.f32 %v308_v1, %v686_v17  ;;  %v265_v13 = vrot.slane %v131_v53, 2  ;;  %v137_v0 = vld [vmem:[%s607_s11 + $0xa0] sm:$0xff] }
  0x2f   : > { %v460_v4 = vmax.f32 %v433_v3, %v671_v8  ;;  %v333_v14 = vmax.f32 %v311_v6, %v131_v53  ;;  %v387_v15 = vmax.f32 %v360_v7, %v264_v62  ;;  %v189_v54 = vsel %vm165_vm0, %v187_v2, %v747_v42  ;;  %v818_v7 = vld [vmem:[%s607_s11 + $0xa8] sm:$0x1f] }
  0x30   : > { %v406_v19 = vmax.f32 %v384_v9, %v686_v17  ;;  %v463_v5 = vmax.f32 %v436_v10, %v264_v62  ;;  %v359_v21 = vmax.f32 %v330_v12, %v697_v29  ;;  %v235_v22 = vmax.f32 %v131_v53, %v189_v54 }
  0x31   : > { %484 = vst.msk [vmem:[%s679_s15 + $0x28] sm:$0x7] %vm479_vm3, %v460_v4  ;;  %v763_v23 = vrot.slane %v736_v59, 2  ;;  %v362_v8 = vmax.f32 %v333_v14, %v189_v54  ;;  %v409_v24 = vmax.f32 %v387_v15, %v131_v53  ;;  %v232_v25 = vmax.f32 %v686_v17, %v697_v29 }
  0x32   : > { %v435_v11 = vmax.f32 %v406_v19, %v697_v29  ;;  %487 = vst.msk [vmem:[%s679_s15 + $0x40] sm:$0xff] %vm477_vm2, %v463_v5  ;;  %v386_v26 = vmax.f32 %v359_v21, %v700_v31  ;;  %v190_v28 = vrot.slane %v133_v16, 1  ;;  %v772_v30 = vrot.slane %v756_v18, 1 }
  0x33   : > { %v267_v33 = vsel %vm243_vm1, %v265_v13, %v763_v23  ;;  %v438_v34 = vmax.f32 %v409_v24, %v189_v54  ;;  %v310_v27 = vmax.f32 %v232_v25, %v700_v31  ;;  %v268_v35 = vrot.slane %v133_v16, 2 }
  0x34   : > { %v462_v17 = vmax.f32 %v435_v11, %v700_v31  ;;  %v408_v29 = vmax.f32 %v386_v26, %v707_v36  ;;  %v313_v38 = vmax.f32 %v235_v22, %v267_v33  ;;  %v389_v39 = vmax.f32 %v362_v8, %v267_v33 }
  0x35   : > { %v465_v41 = vmax.f32 %v438_v34, %v267_v33  ;;  %v332_v43 = vmax.f32 %v310_v27, %v707_v36  ;;  %v192_v44 = vsel %vm165_vm0, %v190_v28, %v772_v30  ;;  %v784_v45 = vrot.slane %v756_v18, 2 }
  0x36   : > { %486 = vst.msk [vmem:[%s679_s15 + $0x38] sm:$0x7] %vm479_vm3, %v462_v17  ;;  %v437_v46 = vmax.f32 %v408_v29, %v721_v49  ;;  %v335_v47 = vmax.f32 %v313_v38, %v133_v16  ;;  %v237_v31 = vmax.f32 %v133_v16, %v192_v44  ;;  %v411_v48 = vmax.f32 %v389_v39, %v133_v16 }
  0x37   : > { %489 = vst.msk [vmem:[%s679_s15 + $0x50] sm:$0xff] %vm477_vm2, %v465_v41  ;;  %v361_v20 = vmax.f32 %v332_v43, %v721_v49  ;;  %v270_v51 = vsel %vm243_vm1, %v268_v35, %v784_v45  ;;  %v234_v52 = vmax.f32 %v707_v36, %v721_v49  ;;  %v193_v53 = vrot.slane %v135_v40, 1  ;;  %v140_v35 = vld [vmem:[%s607_s11 + $0xb8] sm:$0x1f] }
  0x38   : > { %v464_v55 = vmax.f32 %v437_v46, %v728_v32  ;;  %v315_v56 = vmax.f32 %v237_v31, %v270_v51  ;;  %v364_v57 = vmax.f32 %v335_v47, %v192_v44  ;;  %v440_v58 = vmax.f32 %v411_v48, %v192_v44 }
  0x39   : > { %v388_v60 = vmax.f32 %v361_v20, %v728_v32  ;;  %v312_v37 = vmax.f32 %v234_v52, %v728_v32  ;;  %v803_v61 = vrot.slane %v790_v50, 1  ;;  %v271_v62 = vrot.slane %v135_v40, 2  ;;  %v141_v20 = vld [vmem:[%s607_s11 + $0xc0] sm:$0xff] }
  0x3a   : > { %488 = vst.msk [vmem:[%s679_s15 + $0x48] sm:$0x7] %vm479_vm3, %v464_v55  ;;  %v337_v63 = vmax.f32 %v315_v56, %v135_v40  ;;  %v391_v36 = vmax.f32 %v364_v57, %v270_v51  ;;  %v467_v49 = vmax.f32 %v440_v58, %v270_v51  ;;  %v809_v1 = vrot.slane %v790_v50, 2  ;;  %v142_v55 = vld [vmem:[%s607_s11 + $0xc8] sm:$0x1f] }
  0x3b   : > { %v410_v2 = vmax.f32 %v388_v60, %v736_v59  ;;  %v334_v3 = vmax.f32 %v312_v37, %v736_v59  ;;  %v195_v32 = vsel %vm165_vm0, %v193_v53, %v803_v61  ;;  %v236_v6 = vmax.f32 %v736_v59, %v747_v42 }
  0x3c   : > { %491 = vst.msk [vmem:[%s679_s15 + $0x60] sm:$0xff] %vm477_vm2, %v467_v49  ;;  %v239_v9 = vmax.f32 %v135_v40, %v195_v32  ;;  %v273_v10 = vsel %vm243_vm1, %v271_v62, %v809_v1  ;;  %v366_v12 = vmax.f32 %v337_v63, %v195_v32  ;;  %v413_v13 = vmax.f32 %v391_v36, %v135_v40 }
  0x3d   : > { %v439_v4 = vmax.f32 %v410_v2, %v747_v42  ;;  %v363_v14 = vmax.f32 %v334_v3, %v747_v42  ;;  %v314_v15 = vmax.f32 %v236_v6, %v763_v23  ;;  %v196_v16 = vrot.slane %v137_v0, 1  ;;  %v139_v42 = vld [vmem:[%s607_s11 + $0xb0] sm:$0xff] }
  0x3e   : > { %v317_v59 = vmax.f32 %v239_v9, %v273_v10  ;;  %v393_v54 = vmax.f32 %v366_v12, %v273_v10  ;;  %v442_v19 = vmax.f32 %v413_v13, %v195_v32  ;;  %v828_v5 = vrot.slane %v818_v7, 1 }
  0x3f   : > { %v466_v21 = vmax.f32 %v439_v4, %v763_v23  ;;  %v390_v22 = vmax.f32 %v363_v14, %v763_v23  ;;  %v336_v8 = vmax.f32 %v314_v15, %v756_v18  ;;  %v274_v24 = vrot.slane %v137_v0, 2 }
  0x40   : > { %v339_v25 = vmax.f32 %v317_v59, %v137_v0  ;;  %v469_v11 = vmax.f32 %v442_v19, %v273_v10  ;;  %v198_v26 = vsel %vm165_vm0, %v196_v16, %v828_v5  ;;  %v837_v28 = vrot.slane %v818_v7, 2 }
  0x41   : > { %490 = vst.msk [vmem:[%s679_s15 + $0x58] sm:$0x7] %vm479_vm3, %v466_v21  ;;  %v412_v33 = vmax.f32 %v390_v22, %v756_v18  ;;  %v365_v34 = vmax.f32 %v336_v8, %v772_v30  ;;  %v241_v27 = vmax.f32 %v137_v0, %v198_v26  ;;  %v415_v23 = vmax.f32 %v393_v54, %v137_v0 }
  0x42   : > { %493 = vst.msk [vmem:[%s679_s15 + $0x70] sm:$0xff] %vm477_vm2, %v469_v11  ;;  %v276_v17 = vsel %vm243_vm1, %v274_v24, %v837_v28  ;;  %v368_v29 = vmax.f32 %v339_v25, %v198_v26  ;;  %v238_v38 = vmax.f32 %v756_v18, %v772_v30  ;;  %v345_v39 = vrot.slane %v139_v42, 1 }
  0x43   : > { %v441_v40 = vmax.f32 %v412_v33, %v772_v30  ;;  %v392_v41 = vmax.f32 %v365_v34, %v784_v45  ;;  %v319_v43 = vmax.f32 %v241_v27, %v276_v17  ;;  %v444_v44 = vmax.f32 %v415_v23, %v198_v26 }
  0x44   : > { %v395_v46 = vmax.f32 %v368_v29, %v276_v17  ;;  %v316_v47 = vmax.f32 %v238_v38, %v784_v45  ;;  %v346_v31 = vrot.slane %v140_v35, 1  ;;  %v372_v48 = vrot.slane %v139_v42, 2 }
  0x45   : > { %v468_v51 = vmax.f32 %v441_v40, %v784_v45  ;;  %v414_v52 = vmax.f32 %v392_v41, %v790_v50  ;;  %v471_v18 = vmax.f32 %v444_v44, %v276_v17  ;;  %v341_v53 = vmax.f32 %v319_v43, %v139_v42 }
  0x46   : > { %v338_v30 = vmax.f32 %v316_v47, %v790_v50  ;;  %v347_v56 = vsel %vm165_vm0, %v345_v39, %v346_v31  ;;  %v373_v57 = vrot.slane %v140_v35, 2  ;;  %v417_v58 = vmax.f32 %v395_v46, %v139_v42 }
  0x47   : > { %492 = vst.msk [vmem:[%s679_s15 + $0x68] sm:$0x7] %vm479_vm3, %v468_v51  ;;  %v443_v60 = vmax.f32 %v414_v52, %v803_v61  ;;  %v370_v37 = vmax.f32 %v341_v53, %v347_v56  ;;  %v240_v45 = vmax.f32 %v790_v50, %v803_v61  ;;  %v423_v62 = vrot.slane %v141_v20, 1 }
  0x48   : > { %495 = vst.msk [vmem:[%s679_s15 + $0x80] sm:$0xff] %vm477_vm2, %v471_v18  ;;  %v367_v63 = vmax.f32 %v338_v30, %v803_v61  ;;  %v374_v36 = vsel %vm243_vm1, %v372_v48, %v373_v57  ;;  %v446_v49 = vmax.f32 %v417_v58, %v347_v56  ;;  %v424_v0 = vrot.slane %v142_v55, 1 }
  0x49   : > { %v470_v2 = vmax.f32 %v443_v60, %v809_v1  ;;  %v397_v3 = vmax.f32 %v370_v37, %v374_v36  ;;  %v318_v32 = vmax.f32 %v240_v45, %v809_v1  ;;  %v450_v6 = vrot.slane %v141_v20, 2 }
  0x4a   : > { %v394_v9 = vmax.f32 %v367_v63, %v809_v1  ;;  %v473_v10 = vmax.f32 %v446_v49, %v374_v36  ;;  %v425_v12 = vsel %vm165_vm0, %v423_v62, %v424_v0  ;;  %v451_v50 = vrot.slane %v142_v55, 2 }
  0x4b   : > { %494 = vst.msk [vmem:[%s679_s15 + $0x78] sm:$0x7] %vm479_vm3, %v470_v2  ;;  %v340_v61 = vmax.f32 %v318_v32, %v818_v7  ;;  %v419_v13 = vmax.f32 %v397_v3, %v141_v20  ;;  %v242_v4 = vmax.f32 %v818_v7, %v828_v5 }
  0x4c   : > { %v416_v14 = vmax.f32 %v394_v9, %v818_v7  ;;  %497 = vst.msk [vmem:[%s679_s15 + $0x90] sm:$0xff] %vm477_vm2, %v473_v10  ;;  %v452_v1 = vsel %vm243_vm1, %v450_v6, %v451_v50 }
  0x4d   : > { %v369_v15 = vmax.f32 %v340_v61, %v828_v5  ;;  %v448_v16 = vmax.f32 %v419_v13, %v425_v12  ;;  %v320_v59 = vmax.f32 %v242_v4, %v837_v28 }
  0x4e   : > { %v445_v54 = vmax.f32 %v416_v14, %v828_v5 }
  0x4f   : > { %v396_v19 = vmax.f32 %v369_v15, %v837_v28  ;;  %v475_v21 = vmax.f32 %v448_v16, %v452_v1  ;;  %v342_v22 = vmax.f32 %v320_v59, %v140_v35 }
  0x50   : > { %v472_v8 = vmax.f32 %v445_v54, %v837_v28 }
  0x51   : > { %v418_v7 = vmax.f32 %v396_v19, %v140_v35  ;;  %499 = vst.msk [vmem:[%s679_s15 + $0xa0] sm:$0xff] %vm477_vm2, %v475_v21  ;;  %v371_v24 = vmax.f32 %v342_v22, %v346_v31 }
  0x52   : > { %496 = vst.msk [vmem:[%s679_s15 + $0x88] sm:$0x7] %vm479_vm3, %v472_v8 }
  0x53   : > { %v447_v42 = vmax.f32 %v418_v7, %v346_v31  ;;  %v398_v25 = vmax.f32 %v371_v24, %v373_v57 }
  0x55   : > { %v474_v11 = vmax.f32 %v447_v42, %v373_v57  ;;  %v420_v26 = vmax.f32 %v398_v25, %v142_v55 }
  0x57   : > { %498 = vst.msk [vmem:[%s679_s15 + $0x98] sm:$0x7] %vm479_vm3, %v474_v11  ;;  %v449_v5 = vmax.f32 %v420_v26, %v424_v0 }
  0x59   : > { %v476_v33 = vmax.f32 %v449_v5, %v451_v50 }
  0x5b   : > { %500 = vst.msk [vmem:[%s679_s15 + $0xa8] sm:$0x7] %vm479_vm3, %v476_v33 }
  0x5c PF: > { %s11_s6 = sadd.s32 1, %s581_s6  }
  0x5d   : > { %p8_p4 = scmp.ge.s32.totalorder %s11_s6, 4  }
  0x5f   :  { %10 = sbr.rel (!%p8_p4) target bundleno = 1 (0x1), region = 54 }

// kernel: stem_v4_res2_forward.25
= control target key start
LH: loop header
LB: loop body
LE: loop exit
PB: predicated region body
PF: predicated region fallthrough
CT: control target
= control target key end

     0   :  { %v1016_v34 = vmov 0.0   ;;  %vm1017_vm0 = vmmov 0   ;;  %vm451_vm1 = vcmask 523264   ;;  %vm730_vm2 = vcmask 1040384   ;;  %s1289_s1 = inlined_call_operand.vmem [shape: bf16[576,128], index: 1, kind: input, shape index: {}]   ;;  %s1290_s0 = inlined_call_operand.vmem [shape: bf16[72,576], index: 0, kind: input, shape index: {}]   ;;  %s1291_s3 = inlined_call_operand.vmem [shape: f32[2,128], index: 3, kind: output, shape index: {1}]   ;;  %s1292_s2 = inlined_call_operand.vmem [shape: f32[72,128], index: 2, kind: output, shape index: {0}]  }
   0x1   :  { %v947_v0 = vld [vmem:[%s1289_s1 + $0x78] sm:$0xff]   ;;  %v951_v4 = vld [vmem:[%s1289_s1 + $0x70] sm:$0xff]   ;;  %v955_v8 = vld [vmem:[%s1289_s1 + $0x68] sm:$0xff]   ;;  %18 = vst [vmem:[%s1291_s3] sm:$0x3] %v1016_v34 }
   0x2   :  { %v948_v1 = vld [vmem:[%s1289_s1 + $0xf8] sm:$0xff]   ;;  %808 = vmatprep.subr.bf16.mxu0 %v947_v0  ;;  %v952_v5 = vld [vmem:[%s1289_s1 + $0xf0] sm:$0xff]   ;;  %v956_v9 = vld [vmem:[%s1289_s1 + $0xe8] sm:$0xff]  }
   0x3   :  { %v949_v2 = vld [vmem:[%s1289_s1 + $0x38] sm:$0xff]   ;;  %854 = vmatprep.subr.bf16.mxu1 %v948_v1  ;;  %v953_v6 = vld [vmem:[%s1289_s1 + $0x30] sm:$0xff]   ;;  %v957_v10 = vld [vmem:[%s1289_s1 + $0x28] sm:$0xff]  }
   0x4   :  { %v950_v3 = vld [vmem:[%s1289_s1 + $0xb8] sm:$0xff]   ;;  %809 = vmatpush3.bf16.msra.mxu0 %v949_v2  ;;  %v954_v7 = vld [vmem:[%s1289_s1 + $0xb0] sm:$0xff]   ;;  %v958_v11 = vld [vmem:[%s1289_s1 + $0xa8] sm:$0xff]  }
   0x5   :  { %855 = vmatpush3.bf16.msra.mxu1 %v950_v3  ;;  %810 = vmatprep.subr.bf16.mxu0 %v951_v4  ;;  %v959_v12 = vld [vmem:[%s1289_s1 + $0x60] sm:$0xff]   ;;  %v963_v16 = vld [vmem:[%s1289_s1 + $0x58] sm:$0xff]   ;;  %v967_v20 = vld [vmem:[%s1289_s1 + $0x50] sm:$0xff]  }
   0x6   :  { %856 = vmatprep.subr.bf16.mxu1 %v952_v5  ;;  %v960_v13 = vld [vmem:[%s1289_s1 + $0xe0] sm:$0xff]   ;;  %v964_v17 = vld [vmem:[%s1289_s1 + $0xd8] sm:$0xff]   ;;  %v968_v21 = vld [vmem:[%s1289_s1 + $0xd0] sm:$0xff]  }
   0x7   :  { %v961_v14 = vld [vmem:[%s1289_s1 + $0x20] sm:$0xff]   ;;  %v965_v18 = vld [vmem:[%s1289_s1 + $0x18] sm:$0xff]   ;;  %v969_v22 = vld [vmem:[%s1289_s1 + $0x10] sm:$0xff]  }
   0x8   :  { %811 = vmatpush3.bf16.msra.mxu0 %v953_v6  ;;  %v962_v15 = vld [vmem:[%s1289_s1 + $0xa0] sm:$0xff]   ;;  %v966_v19 = vld [vmem:[%s1289_s1 + $0x98] sm:$0xff]   ;;  %v970_v23 = vld [vmem:[%s1289_s1 + $0x90] sm:$0xff]  }
   0x9   :  { %857 = vmatpush3.bf16.msra.mxu1 %v954_v7  ;;  %812 = vmatprep.subr.bf16.mxu0 %v955_v8  ;;  %v971_v24 = vld [vmem:[%s1289_s1 + $0x48] sm:$0xff]   ;;  %v975_v28 = vld [vmem:[%s1289_s1 + $0x40] sm:$0xff]   ;;  %v985_v37 = vld [vmem:[%s1289_s1 + $0x118] sm:$0xff]  }
   0xa   :  { %858 = vmatprep.subr.bf16.mxu1 %v956_v9  ;;  %v972_v25 = vld [vmem:[%s1289_s1 + $0xc8] sm:$0xff]   ;;  %v976_v29 = vld [vmem:[%s1289_s1 + $0xc0] sm:$0xff]   ;;  %v992_v40 = vld [vmem:[%s1289_s1 + $0x110] sm:$0xff]  }
   0xb   :  { %v973_v26 = vld [vmem:[%s1289_s1 + $0x8] sm:$0xff]   ;;  %v977_v30 = vld [vmem:[%s1289_s1] sm:$0xff]   ;;  %v995_v44 = vld [vmem:[%s1290_s0 + $0x5c] ss:$20 sps:$4 sm:$0xff]  }
   0xc   :  { %813 = vmatpush3.bf16.msra.mxu0 %v957_v10  ;;  %v974_v27 = vld [vmem:[%s1289_s1 + $0x88] sm:$0xff]   ;;  %v978_v31 = vld [vmem:[%s1289_s1 + $0x80] sm:$0xff]   ;;  %v1000_v49 = vld [vmem:[%s1290_s0 + $0x7c] ss:$20 sps:$4 sm:$0xff]  }
   0xd   :  { %859 = vmatpush3.bf16.msra.mxu1 %v958_v11  ;;  %814 = vmatprep.subr.bf16.mxu0 %v959_v12  ;;  %v979_v32 = vld [vmem:[%s1290_s0] ss:$20 sps:$4 sm:$0xff]   ;;  %v981_v33 = vld [vmem:[%s1290_s0 + $0x4] ss:$20 sps:$4 sm:$0xff]   ;;  %v982_v35 = vld [vmem:[%s1290_s0 + $0x8] ss:$20 sps:$4 sm:$0xff]  }
   0xe   :  { %860 = vmatprep.subr.bf16.mxu1 %v960_v13  ;;  %v984_v36 = vld [vmem:[%s1290_s0 + $0xc] ss:$20 sps:$4 sm:$0xff]   ;;  %499 = vmatprep.mubr.bf16.mxu0 %v981_v33  ;;  %v988_v39 = vld [vmem:[%s1290_s0 + $0x34] ss:$20 sps:$4 sm:$0xff]   ;;  %v991_v42 = vld [vmem:[%s1290_s0 + $0x30] ss:$20 sps:$4 sm:$0xff]  }
   0xf   :  { %571 = vmatprep.mubr.bf16.mxu1 %v984_v36  ;;  %v986_v38 = vld [vmem:[%s1290_s0 + $0x2c] ss:$20 sps:$4 sm:$0xff]   ;;  %v990_v41 = vld [vmem:[%s1290_s0 + $0x28] ss:$20 sps:$4 sm:$0xff]   ;;  %v997_v46 = vld [vmem:[%s1290_s0 + $0x50] ss:$20 sps:$4 sm:$0xff]  }
  0x10   :  { %815 = vmatpush3.bf16.msra.mxu0 %v961_v14  ;;  %v993_v43 = vld [vmem:[%s1290_s0 + $0x54] ss:$20 sps:$4 sm:$0xff]   ;;  %v1008_v47 = vld [vmem:[%s1289_s1 + $0x100] sm:$0xff]   ;;  %v998_v48 = vld [vmem:[%s1290_s0 + $0x58] ss:$20 sps:$4 sm:$0xff]  }
  0x11   :  { %861 = vmatpush3.bf16.msra.mxu1 %v962_v15  ;;  %816 = vmatprep.subr.bf16.mxu0 %v963_v16  ;;  %v999_v45 = vld [vmem:[%s1289_s1 + $0x108] sm:$0xff]   ;;  %v1002_v50 = vld [vmem:[%s1290_s0 + $0x84] ss:$20 sps:$4 sm:$0xff]   ;;  %v1005_v54 = vld [vmem:[%s1290_s0 + $0x80] ss:$20 sps:$4 sm:$0xff]  }
  0x12   :  { %862 = vmatprep.subr.bf16.mxu1 %v964_v17  ;;  %v43_v51 = vld [vmem:[%s1290_s0 + $0xa0] sm:$0xff]  ;;  %v44_v52 = vld [vmem:[%s1290_s0 + $0xa8] sm:$0xff]  ;;  %v1014_v62 = vld [vmem:[%s1290_s0 + $0xb0] ss:$0 sps:$4 sm:$0xff]  }
  0x13   :  { %v1004_v53 = vld [vmem:[%s1290_s0 + $0x78] ss:$20 sps:$4 sm:$0xff]   ;;  %v763_v55 = vcombine.high %v43_v51, %v43_v51  ;;  %v765_v56 = vcombine.high %v44_v52, %v44_v52  ;;  %v762_v57 = vcombine.low %v43_v51, %v43_v51  ;;  %v764_v58 = vcombine.low %v44_v52, %v44_v52  ;;  %v1011_v59 = vld [vmem:[%s1290_s0 + $0x10] ss:$20 sps:$4 sm:$0xff]   ;;  %v1012_v60 = vld [vmem:[%s1290_s0 + $0x88] ss:$20 sps:$4 sm:$0xff]  }
  0x14   :  { %817 = vmatpush3.bf16.msra.mxu0 %v965_v18  ;;  %v1013_v61 = vld [vmem:[%s1290_s0 + $0x38] ss:$20 sps:$4 sm:$0xff]   ;;  %v1015_v63 = vld [vmem:[%s1290_s0 + $0x60] ss:$20 sps:$4 sm:$0xff]  }
  0x15   :  { %863 = vmatpush3.bf16.msra.mxu1 %v966_v19  ;;  %818 = vmatprep.subr.bf16.mxu0 %v967_v20 }
  0x16   :  { %864 = vmatprep.subr.bf16.mxu1 %v968_v21 }
  0x18   :  { %819 = vmatpush3.bf16.msra.mxu0 %v969_v22 }
  0x19   :  { %865 = vmatpush3.bf16.msra.mxu1 %v970_v23  ;;  %820 = vmatprep.subr.bf16.mxu0 %v971_v24 }
  0x1a   :  { %866 = vmatprep.subr.bf16.mxu1 %v972_v25 }
  0x1c   :  { %821 = vmatpush3.bf16.msra.mxu0 %v973_v26 }
  0x1d   :  { %867 = vmatpush3.bf16.msra.mxu1 %v974_v27  ;;  %822 = vmatprep.subr.bf16.mxu0 %v975_v28 }
  0x1e   :  { %868 = vmatprep.subr.bf16.mxu1 %v976_v29 }
  0x20   :  { %823 = vmatpush3.bf16.msra.mxu0 %v977_v30 }
  0x21   :  { %869 = vmatpush3.bf16.msra.mxu1 %v978_v31  ;;  %909 = vmatprep.subr.bf16.mxu0 %v1016_v34 }
  0x22   :  { %937 = vmatprep.subr.bf16.mxu1 %v1016_v34 }
  0x23   :  { %500 = vmatmul.mubr.bf16.vlgmr.msra.gmra.mxu0 %v979_v32 }
  0x24   :  { %572 = vmatmul.mubr.bf16.vlgmr.msra.gmra.mxu1 %v982_v35  ;;  %910 = vmatpush3.bf16.msra.mxu0 %v985_v37 }
  0x25   :  { %507 = vmatprep.mubr.bf16.mxu0 %v986_v38  ;;  %911 = vmatprep.subr.bf16.mxu0 %v1016_v34 }
  0x26   :  { %579 = vmatprep.mubr.bf16.mxu1 %v988_v39  ;;  %941 = vmatpush3.bf16.msra.mxu1 %v985_v37 }
  0x27   :  { %938 = vmatprep.subr.bf16.mxu1 %v1016_v34 }
  0x28   :  { %912 = vmatpush3.bf16.msra.mxu0 %v992_v40 }
  0x29   :  { %913 = vmatprep.subr.bf16.mxu0 %v1016_v34 }
  0x2a   :  { %942 = vmatpush3.bf16.msra.mxu1 %v992_v40 }
  0x2b   :  { %508 = vmatmul.mubr.bf16.gmra.mxu0 %v990_v41  ;;  %939 = vmatprep.subr.bf16.mxu1 %v1016_v34 }
  0x2c   :  { %580 = vmatmul.mubr.bf16.gmra.mxu1 %v991_v42  ;;  %515 = vmatprep.mubr.bf16.mxu0 %v993_v43 }
  0x2d   :  { %587 = vmatprep.mubr.bf16.mxu1 %v995_v44  ;;  %914 = vmatpush3.bf16.msra.mxu0 %v999_v45 }
  0x2e   :  { %915 = vmatprep.subr.bf16.mxu0 %v1016_v34  ;;  %943 = vmatpush3.bf16.msra.mxu1 %v999_v45 }
  0x2f   :  { %940 = vmatprep.subr.bf16.mxu1 %v1016_v34 }
  0x31   :  { %916 = vmatpush3.bf16.msra.mxu0 %v1008_v47 }
  0x32   :  { %944 = vmatpush3.bf16.msra.mxu1 %v1008_v47 }
  0x33   :  { %516 = vmatmul.mubr.bf16.gmra.mxu0 %v997_v46 }
  0x34   :  { %588 = vmatmul.mubr.bf16.gmra.mxu1 %v998_v48  ;;  %523 = vmatprep.mubr.bf16.mxu0 %v1000_v49 }
  0x35   :  { %595 = vmatprep.mubr.bf16.mxu1 %v1002_v50 }
  0x3b   :  { %524 = vmatmul.mubr.bf16.gmra.mxu0 %v1004_v53 }
  0x3c   :  { %596 = vmatmul.mubr.bf16.gmra.mxu1 %v1005_v54  ;;  %531 = vmatprep.mubr.bf16.mxu0 %v763_v55 }
  0x3d   :  { %603 = vmatprep.mubr.bf16.mxu1 %v765_v56 }
  0x43   :  { %532 = vmatmul.mubr.bf16.gmra.mxu0 %v762_v57 }
  0x44   :  { %604 = vmatmul.mubr.bf16.gmra.mxu1 %v764_v58  ;;  %917 = vmatprep.mubr.msk.bf16.mxu0 %vm1017_vm0, %v1016_v34 }
  0x45   :  { %929 = vmatprep.mubr.msk.bf16.mxu1 %vm1017_vm0, %v1016_v34 }
  0x4b   :  { %918 = vmatmul.mubr.msk.bf16.vlgmr.msra.gmra.mxu0 %vm451_vm1, %v1011_v59 }
  0x4c   :  { %930 = vmatmul.mubr.msk.bf16.vlgmr.msra.gmra.mxu1 %vm451_vm1, %v1012_v60  ;;  %921 = vmatprep.mubr.msk.bf16.mxu0 %vm1017_vm0, %v1016_v34 }
  0x4d   :  { %933 = vmatprep.mubr.msk.bf16.mxu1 %vm1017_vm0, %v1016_v34 }
  0x53   :  { %922 = vmatmul.mubr.msk.bf16.gmra.mxu0 %vm451_vm1, %v1013_v61 }
  0x54   :  { %934 = vmatmul.mubr.msk.bf16.gmra.mxu1 %vm451_vm1, %v1014_v62  ;;  %925 = vmatprep.mubr.msk.bf16.mxu0 %vm1017_vm0, %v1016_v34 }
  0x5b   :  { %926 = vmatmul.mubr.msk.bf16.gmra.mxu0 %vm451_vm1, %v1015_v63 }
  0xe3   :  { %v824_v0 = vpop.f32.mrf.mxu0 }
  0xe4   :  { %v870_v1 = vpop.f32.mrf.mxu1 }
  0xe5   :  { %v825_v2 = vpop.f32.mrf.mxu0 }
  0xe6   :  { %v871_v3 = vpop.f32.mrf.mxu1  ;;  %v826_v35 = vadd.f32 %v825_v2, %v824_v0 }
  0xe7   :  { %v827_v4 = vpop.f32.mrf.mxu0  ;;  %v872_v36 = vadd.f32 %v871_v3, %v870_v1 }
  0xe8   :  { %v873_v5 = vpop.f32.mrf.mxu1 }
  0xe9   :  { %v828_v6 = vpop.f32.mrf.mxu0  ;;  %v574_v46 = vadd.f32 %v872_v36, %v826_v35 }
  0xea   :  { %v874_v7 = vpop.f32.mrf.mxu1  ;;  %v829_v43 = vadd.f32 %v828_v6, %v827_v4 }
  0xeb   :  { %v830_v8 = vpop.f32.mrf.mxu0  ;;  %v875_v44 = vadd.f32 %v874_v7, %v873_v5 }
  0xec   :  { %v876_v9 = vpop.f32.mrf.mxu1 }
  0xed   :  { %v831_v10 = vpop.f32.mrf.mxu0  ;;  %v577_v58 = vadd.f32 %v875_v44, %v829_v43 }
  0xee   :  { %v877_v11 = vpop.f32.mrf.mxu1  ;;  %v832_v55 = vadd.f32 %v831_v10, %v830_v8 }
  0xef   :  { %v833_v12 = vpop.f32.mrf.mxu0  ;;  %v878_v56 = vadd.f32 %v877_v11, %v876_v9 }
  0xf0   :  { %v879_v13 = vpop.f32.mrf.mxu1 }
  0xf1   :  { %v834_v14 = vpop.f32.mrf.mxu0  ;;  %v582_v6 = vadd.f32 %v878_v56, %v832_v55 }
  0xf2   :  { %v880_v15 = vpop.f32.mrf.mxu1  ;;  %v835_v3 = vadd.f32 %v834_v14, %v833_v12 }
  0xf3   :  { %v1232_v16 = vpop.f32.mrf.mxu0  ;;  %v881_v4 = vadd.f32 %v880_v15, %v879_v13 }
  0xf4   :  { %v1234_v17 = vpop.f32.mrf.mxu1 }
  0xf5   :  { %v837_v18 = vpop.f32.mrf.mxu0  ;;  %v585_v14 = vadd.f32 %v881_v4, %v835_v3 }
  0xf6   :  { %v883_v19 = vpop.f32.mrf.mxu1  ;;  %v838_v11 = vadd.f32 %v837_v18, %v1232_v16 }
  0xf7   :  { %v1236_v20 = vpop.f32.mrf.mxu0 }
  0xf8   :  { %v1238_v21 = vpop.f32.mrf.mxu1 }
  0xf9   :  { %v1240_v22 = vpop.f32.mrf.mxu0 }
  0xfa   :  { %v1242_v23 = vpop.f32.mrf.mxu1  ;;  %v841_v16 = vadd.f32 %v1240_v22, %v1236_v20 }
  0xfb   :  { %v842_v24 = vpop.f32.mrf.mxu0 }
  0xfc   :  { %v888_v25 = vpop.f32.mrf.mxu1 }
  0xfd   :  { %v843_v26 = vpop.f32.mrf.mxu0 }
  0xfe   :  { %v889_v27 = vpop.f32.mrf.mxu1  ;;  %v844_v38 = vadd.f32 %v843_v26, %v842_v24  ;;  %v884_v24 = vadd.f32 %v883_v19, %v1234_v17  ;;  %v887_v19 = vadd.f32 %v1242_v23, %v1238_v21 }
  0xff   :  { %v845_v28 = vpop.f32.mrf.mxu0  ;;  %v890_v39 = vadd.f32 %v889_v27, %v888_v25 }
 0x100   :  { %v891_v29 = vpop.f32.mrf.mxu1  ;;  %v590_v18 = vadd.f32 %v884_v24, %v838_v11  ;;  %v593_v23 = vadd.f32 %v887_v19, %v841_v16 }
 0x101   :  { %v846_v30 = vpop.f32.mrf.mxu0  ;;  %v598_v50 = vadd.f32 %v890_v39, %v844_v38 }
 0x102   :  { %v892_v31 = vpop.f32.mrf.mxu1  ;;  %v847_v47 = vadd.f32 %v846_v30, %v845_v28 }
 0x103   :  { %v848_v32 = vpop.f32.mrf.mxu0  ;;  %v893_v48 = vadd.f32 %v892_v31, %v891_v29 }
 0x104   :  { %v894_v33 = vpop.f32.mrf.mxu1 }
 0x105   :  { %v849_v34 = vpop.f32.mrf.mxu0  ;;  %v601_v62 = vadd.f32 %v893_v48, %v847_v47 }
 0x106   :  { %v895_v37 = vpop.f32.mrf.mxu1  ;;  %v850_v59 = vadd.f32 %v849_v34, %v848_v32 }
 0x107   :  { %v851_v40 = vpop.f32.mrf.mxu0  ;;  %v896_v60 = vadd.f32 %v895_v37, %v894_v33 }
 0x108   :  { %v897_v41 = vpop.f32.mrf.mxu1 }
 0x109   :  { %v852_v42 = vpop.f32.mrf.mxu0  ;;  %v606_v8 = vadd.f32 %v896_v60, %v850_v59 }
 0x10a   :  { %v898_v45 = vpop.f32.mrf.mxu1 }
 0x10b   :  { %v645_v49 = vpop.f32.mrf.mxu0 }
 0x10c   :  { %v646_v51 = vadd.f32 %v645_v49, %v574_v46  ;;  %v669_v52 = vpop.f32.mrf.mxu1 }
 0x10d   :  { %v1244_v53 = vadd.f32 %v669_v52, %v598_v50  ;;  %v919_v54 = vpop.f32.mrf.mxu0 }
 0x10e   :  { %683 = vst [vmem:[%s1292_s2] sm:$0xff] %v646_v51  ;;  %v931_v57 = vpop.f32.mrf.mxu1  ;;  %v707_v29 = vmul.f32 %v646_v51, %v646_v51 }
 0x10f   :  { %689 = vst [vmem:[%s1292_s2 + $0x30] sm:$0xff] %v1244_v53  ;;  %v648_v61 = vpop.f32.mrf.mxu0  ;;  %v713_v47 = vmul.f32 %v1244_v53, %v1244_v53 }
 0x110   :  { %v649_v63 = vadd.f32 %v648_v61, %v577_v58  ;;  %v672_v0 = vpop.f32.mrf.mxu1 }
 0x111   :  { %v673_v1 = vadd.f32 %v672_v0, %v601_v62  ;;  %v920_v2 = vpop.f32.mrf.mxu0 }
 0x112   :  { %684 = vst [vmem:[%s1292_s2 + $0x8] sm:$0xff] %v649_v63  ;;  %v932_v5 = vpop.f32.mrf.mxu1  ;;  %v708_v26 = vmul.f32 %v649_v63, %v649_v63  ;;  %v693_v30 = vadd.f32 %v649_v63, %v646_v51 }
 0x113   :  { %690 = vst [vmem:[%s1292_s2 + $0x38] sm:$0xff] %v673_v1  ;;  %v653_v7 = vpop.f32.mrf.mxu0  ;;  %v714_v50 = vmul.f32 %v673_v1, %v673_v1 }
 0x114   :  { %v654_v9 = vadd.f32 %v653_v7, %v582_v6  ;;  %v677_v10 = vpop.f32.mrf.mxu1  ;;  %v716_v34 = vadd.f32 %v708_v26, %v707_v29 }
 0x115   :  { %v678_v12 = vadd.f32 %v677_v10, %v606_v8  ;;  %v923_v13 = vpop.f32.mrf.mxu0 }
 0x116   :  { %685 = vst [vmem:[%s1292_s2 + $0x10] sm:$0xff] %v654_v9  ;;  %v935_v15 = vpop.f32.mrf.mxu1  ;;  %v709_v31 = vmul.f32 %v654_v9, %v654_v9  ;;  %v694_v35 = vadd.f32 %v693_v30, %v654_v9 }
 0x117   :  { %691 = vst [vmem:[%s1292_s2 + $0x40] sm:$0xff] %v678_v12  ;;  %v656_v25 = vpop.f32.mrf.mxu0  ;;  %v715_v54 = vmul.f32 %v678_v12, %v678_v12 }
 0x118   :  { %v657_v27 = vadd.f32 %v656_v25, %v585_v14  ;;  %v680_v28 = vpop.f32.mrf.mxu1  ;;  %v717_v20 = vadd.f32 %v716_v34, %v709_v31 }
 0x119   :  { %v924_v17 = vpop.f32.mrf.mxu0 }
 0x11a   :  { %686 = vst [vmem:[%s1292_s2 + $0x18] sm:$0xff] %v657_v27  ;;  %v936_v32 = vpop.f32.mrf.mxu1  ;;  %v710_v36 = vmul.f32 %v657_v27, %v657_v27  ;;  %v695_v22 = vadd.f32 %v694_v35, %v657_v27 }
 0x11b   :  { %v661_v33 = vpop.f32.mrf.mxu0 }
 0x11c   :  { %v662_v37 = vadd.f32 %v661_v33, %v590_v18  ;;  %v718_v40 = vadd.f32 %v717_v20, %v710_v36 }
 0x11d   :  { %v927_v38 = vpop.f32.mrf.mxu0 }
 0x11e   :  { %687 = vst [vmem:[%s1292_s2 + $0x20] sm:$0xff] %v662_v37  ;;  %v711_v21 = vmul.f32 %v662_v37, %v662_v37  ;;  %v696_v41 = vadd.f32 %v695_v22, %v662_v37 }
 0x11f   :  { %v664_v39 = vpop.f32.mrf.mxu0 }
 0x120   :  { %v665_v42 = vadd.f32 %v664_v39, %v593_v23  ;;  %v719_v44 = vadd.f32 %v718_v40, %v711_v21 }
 0x121   :  { %v928_v43 = vpop.f32.mrf.mxu0 }
 0x122   :  { %688 = vst [vmem:[%s1292_s2 + $0x28] sm:$0xff] %v665_v42  ;;  %v697_v45 = vadd.f32 %v696_v41, %v665_v42  ;;  %v712_v46 = vmul.f32 %v665_v42, %v665_v42 }
 0x124   :  { %v698_v48 = vadd.f32 %v697_v45, %v1244_v53  ;;  %v720_v49 = vadd.f32 %v719_v44, %v712_v46  ;;  %v692_v53 = vld [vmem:[%s1291_s3] sm:$0x3] }
 0x126   :  { %v699_v51 = vadd.f32 %v698_v48, %v673_v1  ;;  %v721_v52 = vadd.f32 %v720_v49, %v713_v47 }
 0x128   :  { %v700_v55 = vadd.f32 %v699_v51, %v678_v12  ;;  %v722_v56 = vadd.f32 %v721_v52, %v714_v50 }
 0x12a   :  { %v701_v57 = vrot.slane %v700_v55, 4  ;;  %v723_v58 = vadd.f32 %v722_v56, %v715_v54 }
 0x12c   :  { %v702_v59 = vadd.f32 %v701_v57, %v700_v55  ;;  %v724_v60 = vrot.slane %v723_v58, 4 }
 0x12e   :  { %v703_v61 = vrot.slane %v702_v59, 2  ;;  %v725_v62 = vadd.f32 %v724_v60, %v723_v58 }
 0x130   :  { %v704_v63 = vadd.f32 %v703_v61, %v702_v59  ;;  %v726_v0 = vrot.slane %v725_v62, 2 }
 0x132   :  { %v705_v2 = vrot.slane %v704_v63, 1  ;;  %v727_v3 = vadd.f32 %v726_v0, %v725_v62 }
 0x134   :  { %v728_v4 = vrot.slane %v727_v3, 1  ;;  %v706_v1 = vadd.f32 %v705_v2, %v704_v63 }
 0x136   :  { %v729_v5 = vadd.f32 %v728_v4, %v727_v3 }
 0x138   :  { %v731_v6 = vsel %vm730_vm2, %v706_v1, %v729_v5 }
 0x139   :  { %v732_v7 = vadd.f32 %v731_v6, %v692_v53 }
 0x13b   :  { %733 = vst [vmem:[%s1291_s3] sm:$0x3] %v732_v7 }

// kernel: stem_v4_res2_forward.26
= control target key start
LH: loop header
LB: loop body
LE: loop exit
PB: predicated region body
PF: predicated region fallthrough
CT: control target
= control target key end

     0   :  { %s159_s0 = inlined_call_operand.vmem [shape: f32[72,128], index: 0, kind: input, shape index: {}]   ;;  %s160_s1 = inlined_call_operand.vmem [shape: f32[1,128], index: 1, kind: input, shape index: {}]   ;;  %s161_s2 = inlined_call_operand.vmem [shape: f32[1,128], index: 2, kind: input, shape index: {}]   ;;  %s162_s3 = inlined_call_operand.vmem [shape: f32[72,128], index: 3, kind: output, shape index: {}]  }
   0x1   :  { %v14_v0 = vld [vmem:[%s159_s0] sm:$0xff]  ;;  %v15_v4 = vld [vmem:[%s159_s0 + $0x8] sm:$0xff]  ;;  %v16_v5 = vld [vmem:[%s159_s0 + $0x10] sm:$0xff] }
   0x2   :  { %v77_v1 = vld [vmem:[%s160_s1] ss:$0 sm:$0xff]  ;;  %v17_v6 = vld [vmem:[%s159_s0 + $0x18] sm:$0xff]  ;;  %v19_v11 = vld [vmem:[%s159_s0 + $0x28] sm:$0xff] }
   0x3   :  { %v78_v2 = vld [vmem:[%s161_s2] ss:$0 sm:$0xff]  ;;  %v30_v3 = vmul.f32 %v77_v1, %v14_v0  ;;  %v31_v7 = vmul.f32 %v77_v1, %v15_v4  ;;  %v32_v8 = vmul.f32 %v77_v1, %v16_v5  ;;  %v33_v9 = vmul.f32 %v77_v1, %v17_v6  ;;  %v20_v12 = vld [vmem:[%s159_s0 + $0x30] sm:$0xff]  ;;  %v21_v17 = vld [vmem:[%s159_s0 + $0x38] sm:$0xff] }
   0x4   :  { %v18_v10 = vld [vmem:[%s159_s0 + $0x20] sm:$0xff]  ;;  %v35_v15 = vmul.f32 %v77_v1, %v19_v11  ;;  %v36_v16 = vmul.f32 %v77_v1, %v20_v12  ;;  %v37_v21 = vmul.f32 %v77_v1, %v21_v17 }
   0x5   :  { %v46_v13 = vadd.f32 %v78_v2, %v30_v3  ;;  %v34_v14 = vmul.f32 %v77_v1, %v18_v10  ;;  %v47_v18 = vadd.f32 %v78_v2, %v31_v7  ;;  %v48_v19 = vadd.f32 %v78_v2, %v32_v8  ;;  %v22_v22 = vld [vmem:[%s159_s0 + $0x40] sm:$0xff] }
   0x6   :  { %v49_v20 = vadd.f32 %v78_v2, %v33_v9  ;;  %v51_v25 = vadd.f32 %v78_v2, %v35_v15  ;;  %v52_v26 = vadd.f32 %v78_v2, %v36_v16  ;;  %v53_v30 = vadd.f32 %v78_v2, %v37_v21 }
   0x7   :  { %v55_v23 = vmax.f32 %v46_v13, 0.0  ;;  %v50_v24 = vadd.f32 %v78_v2, %v34_v14  ;;  %v56_v27 = vmax.f32 %v47_v18, 0.0  ;;  %v57_v28 = vmax.f32 %v48_v19, 0.0 }
   0x8   :  { %v58_v29 = vmax.f32 %v49_v20, 0.0  ;;  %v60_v32 = vmax.f32 %v51_v25, 0.0  ;;  %v61_v33 = vmax.f32 %v52_v26, 0.0  ;;  %v38_v34 = vmul.f32 %v77_v1, %v22_v22 }
   0x9   :  { %64 = vst [vmem:[%s162_s3] sm:$0xff] %v55_v23  ;;  %v59_v31 = vmax.f32 %v50_v24, 0.0  ;;  %65 = vst [vmem:[%s162_s3 + $0x8] sm:$0xff] %v56_v27  ;;  %v62_v35 = vmax.f32 %v53_v30, 0.0 }
   0xa   :  { %66 = vst [vmem:[%s162_s3 + $0x10] sm:$0xff] %v57_v28  ;;  %67 = vst [vmem:[%s162_s3 + $0x18] sm:$0xff] %v58_v29  ;;  %v54_v36 = vadd.f32 %v78_v2, %v38_v34 }
   0xb   :  { %68 = vst [vmem:[%s162_s3 + $0x20] sm:$0xff] %v59_v31  ;;  %69 = vst [vmem:[%s162_s3 + $0x28] sm:$0xff] %v60_v32 }
   0xc   :  { %70 = vst [vmem:[%s162_s3 + $0x30] sm:$0xff] %v61_v33  ;;  %71 = vst [vmem:[%s162_s3 + $0x38] sm:$0xff] %v62_v35  ;;  %v63_v37 = vmax.f32 %v54_v36, 0.0 }
   0xe   :  { %72 = vst [vmem:[%s162_s3 + $0x40] sm:$0xff] %v63_v37 }

// kernel: stem_v4_res2_forward.27
= control target key start
LH: loop header
LB: loop body
LE: loop exit
PB: predicated region body
PF: predicated region fallthrough
CT: control target
= control target key end

     0   :  { %v368_v0 = vmov 0   ;;  %vm150_vm0 = vcmask 261120   ;;  %v369_v22 = vmov 0.0   ;;  %vm285_vm1 = vcmask 1040384   ;;  %s488_s1 = inlined_call_operand.vmem [shape: bf16[160,128], index: 1, kind: input, shape index: {}]   ;;  %s489_s0 = inlined_call_operand.vmem [shape: bf16[72,160], index: 0, kind: input, shape index: {}]   ;;  %s490_s3 = inlined_call_operand.vmem [shape: f32[2,128], index: 3, kind: output, shape index: {1}]   ;;  %s491_s2 = inlined_call_operand.vmem [shape: f32[72,128], index: 2, kind: output, shape index: {0}]  }
   0x1   :  { %166 = vmatprep.subr.bf16.mxu0 %v368_v0  ;;  %v344_v1 = vld [vmem:[%s488_s1 + $0x38] sm:$0xff]   ;;  %322 = vmatprep.subr.bf16.mxu1 %v368_v0  ;;  %v345_v2 = vld [vmem:[%s488_s1 + $0x30] sm:$0xff]   ;;  %v346_v3 = vld [vmem:[%s488_s1 + $0x28] sm:$0xff]   ;;  %18 = vst [vmem:[%s490_s3] sm:$0x3] %v369_v22 }
   0x2   :  { %167 = vmatpush1.bf16.msra.mxu0 %v344_v1  ;;  %332 = vmatpush1.bf16.msra.mxu1 %v344_v1  ;;  %v347_v4 = vld [vmem:[%s488_s1 + $0x20] sm:$0xff]   ;;  %v362_v6 = vld [vmem:[%s489_s0 + $0x34] ss:$8 sps:$4 sm:$0xff]   ;;  %v350_v9 = vld [vmem:[%s488_s1 + $0x8] sm:$0xff]  }
   0x3   :  { %168 = vmatprep.subr.bf16.mxu0 %v368_v0  ;;  %323 = vmatprep.subr.bf16.mxu1 %v368_v0  ;;  %v356_v5 = vld [vmem:[%s489_s0 + $0x4] ss:$8 sps:$4 sm:$0xff]   ;;  %v348_v7 = vld [vmem:[%s488_s1 + $0x18] sm:$0xff]   ;;  %v349_v8 = vld [vmem:[%s488_s1 + $0x10] sm:$0xff]  }
   0x4   :  { %317 = vmatprep.mubr.msk.bf16.mxu0 %vm150_vm0, %v356_v5  ;;  %320 = vmatprep.mubr.msk.bf16.mxu1 %vm150_vm0, %v362_v6  ;;  %v351_v10 = vld [vmem:[%s488_s1] sm:$0xff]   ;;  %v352_v11 = vld [vmem:[%s488_s1 + $0x48] sm:$0xff]   ;;  %v360_v15 = vld [vmem:[%s489_s0 + $0x30] ss:$8 sps:$4 sm:$0xff]  }
   0x5   :  { %v353_v12 = vld [vmem:[%s488_s1 + $0x40] sm:$0xff]   ;;  %v357_v16 = vld [vmem:[%s489_s0 + $0x14] ss:$8 sps:$4 sm:$0xff]   ;;  %v359_v18 = vld [vmem:[%s489_s0 + $0x10] ss:$8 sps:$4 sm:$0xff]  }
   0x6   :  { %169 = vmatpush1.bf16.msra.mxu0 %v345_v2  ;;  %333 = vmatpush1.bf16.msra.mxu1 %v345_v2  ;;  %v27_v13 = vld [vmem:[%s489_s0 + $0x40] sm:$0xff] }
   0x7   :  { %170 = vmatprep.subr.bf16.mxu0 %v368_v0  ;;  %324 = vmatprep.subr.bf16.mxu1 %v368_v0  ;;  %v354_v14 = vld [vmem:[%s489_s0] ss:$8 sps:$4 sm:$0xff]   ;;  %v306_v17 = vcombine.high %v27_v13, %v27_v13  ;;  %v305_v19 = vcombine.low %v27_v13, %v27_v13  ;;  %v363_v20 = vld [vmem:[%s489_s0 + $0x24] ss:$8 sps:$4 sm:$0xff]  }
   0x8   :  { %v365_v21 = vld [vmem:[%s489_s0 + $0x20] ss:$8 sps:$4 sm:$0xff]  }
   0xa   :  { %171 = vmatpush1.bf16.msra.mxu0 %v346_v3  ;;  %334 = vmatpush1.bf16.msra.mxu1 %v346_v3 }
   0xb   :  { %172 = vmatprep.subr.bf16.mxu0 %v368_v0  ;;  %325 = vmatprep.subr.bf16.mxu1 %v368_v0 }
   0xe   :  { %173 = vmatpush1.bf16.msra.mxu0 %v347_v4  ;;  %335 = vmatpush1.bf16.msra.mxu1 %v347_v4 }
   0xf   :  { %174 = vmatprep.subr.bf16.mxu0 %v368_v0  ;;  %326 = vmatprep.subr.bf16.mxu1 %v368_v0 }
  0x12   :  { %175 = vmatpush1.bf16.msra.mxu0 %v348_v7  ;;  %336 = vmatpush1.bf16.msra.mxu1 %v348_v7 }
  0x13   :  { %176 = vmatprep.subr.bf16.mxu0 %v368_v0  ;;  %327 = vmatprep.subr.bf16.mxu1 %v368_v0 }
  0x16   :  { %177 = vmatpush1.bf16.msra.mxu0 %v349_v8  ;;  %337 = vmatpush1.bf16.msra.mxu1 %v349_v8 }
  0x17   :  { %178 = vmatprep.subr.bf16.mxu0 %v368_v0  ;;  %328 = vmatprep.subr.bf16.mxu1 %v368_v0 }
  0x1a   :  { %179 = vmatpush1.bf16.msra.mxu0 %v350_v9  ;;  %338 = vmatpush1.bf16.msra.mxu1 %v350_v9 }
  0x1b   :  { %180 = vmatprep.subr.bf16.mxu0 %v368_v0  ;;  %329 = vmatprep.subr.bf16.mxu1 %v368_v0 }
  0x1e   :  { %181 = vmatpush1.bf16.msra.mxu0 %v351_v10  ;;  %339 = vmatpush1.bf16.msra.mxu1 %v351_v10 }
  0x1f   :  { %194 = vmatprep.subr.bf16.mxu0 %v368_v0  ;;  %330 = vmatprep.subr.bf16.mxu1 %v368_v0 }
  0x22   :  { %195 = vmatpush2.bf16.msra.mxu0 %v352_v11  ;;  %340 = vmatpush2.bf16.msra.mxu1 %v352_v11 }
  0x23   :  { %196 = vmatprep.subr.bf16.mxu0 %v368_v0  ;;  %331 = vmatprep.subr.bf16.mxu1 %v368_v0 }
  0x26   :  { %197 = vmatpush2.bf16.msra.mxu0 %v353_v12  ;;  %341 = vmatpush2.bf16.msra.mxu1 %v353_v12 }
  0x29   :  { %199 = vmatmul.mubr.bf16.vlgmr.msra.gmra.mxu0 %v354_v14  ;;  %223 = vmatmul.mubr.bf16.vlgmr.msra.gmra.mxu1 %v360_v15  ;;  %v247_v14 = vld [vmem:[%s490_s3] sm:$0x3] }
  0x2a   :  { %318 = vmatprep.mubr.msk.bf16.mxu0 %vm150_vm0, %v357_v16  ;;  %321 = vmatprep.mubr.msk.bf16.mxu1 %vm150_vm0, %v306_v17 }
  0x31   :  { %207 = vmatmul.mubr.bf16.gmra.mxu0 %v359_v18  ;;  %231 = vmatmul.mubr.bf16.gmra.mxu1 %v305_v19 }
  0x32   :  { %319 = vmatprep.mubr.msk.bf16.mxu0 %vm150_vm0, %v363_v20 }
  0x39   :  { %215 = vmatmul.mubr.bf16.gmra.mxu0 %v365_v21 }
  0xe9   :  { %v200_v23 = vpop.f32.mrf.mxu0  ;;  %v224_v24 = vpop.f32.mrf.mxu1 }
  0xea   :  { %238 = vst [vmem:[%s491_s2] sm:$0xff] %v200_v23  ;;  %244 = vst [vmem:[%s491_s2 + $0x30] sm:$0xff] %v224_v24  ;;  %v262_v38 = vmul.f32 %v200_v23, %v200_v23  ;;  %v268_v58 = vmul.f32 %v224_v24, %v224_v24 }
  0xeb   :  { %v202_v25 = vpop.f32.mrf.mxu0  ;;  %v226_v26 = vpop.f32.mrf.mxu1 }
  0xed   :  { %v203_v27 = vpop.f32.mrf.mxu0  ;;  %v227_v28 = vpop.f32.mrf.mxu1 }
  0xee   :  { %239 = vst [vmem:[%s491_s2 + $0x8] sm:$0xff] %v203_v27  ;;  %245 = vst [vmem:[%s491_s2 + $0x38] sm:$0xff] %v227_v28  ;;  %v263_v35 = vmul.f32 %v203_v27, %v203_v27  ;;  %v248_v39 = vadd.f32 %v203_v27, %v200_v23  ;;  %v269_v61 = vmul.f32 %v227_v28, %v227_v28 }
  0xef   :  { %v205_v29 = vpop.f32.mrf.mxu0  ;;  %v229_v30 = vpop.f32.mrf.mxu1 }
  0xf0   :  { %v271_v43 = vadd.f32 %v263_v35, %v262_v38 }
  0xf1   :  { %v208_v31 = vpop.f32.mrf.mxu0  ;;  %v232_v32 = vpop.f32.mrf.mxu1 }
  0xf2   :  { %240 = vst [vmem:[%s491_s2 + $0x10] sm:$0xff] %v208_v31  ;;  %246 = vst [vmem:[%s491_s2 + $0x40] sm:$0xff] %v232_v32  ;;  %v264_v40 = vmul.f32 %v208_v31, %v208_v31  ;;  %v249_v44 = vadd.f32 %v248_v39, %v208_v31  ;;  %v270_v0 = vmul.f32 %v232_v32, %v232_v32 }
  0xf3   :  { %v210_v33 = vpop.f32.mrf.mxu0  ;;  %v234_v34 = vpop.f32.mrf.mxu1 }
  0xf4   :  { %v272_v47 = vadd.f32 %v271_v43, %v264_v40 }
  0xf5   :  { %v211_v36 = vpop.f32.mrf.mxu0  ;;  %v235_v37 = vpop.f32.mrf.mxu1 }
  0xf6   :  { %241 = vst [vmem:[%s491_s2 + $0x18] sm:$0xff] %v211_v36  ;;  %v265_v45 = vmul.f32 %v211_v36, %v211_v36  ;;  %v250_v48 = vadd.f32 %v249_v44, %v211_v36 }
  0xf7   :  { %v213_v41 = vpop.f32.mrf.mxu0  ;;  %v236_v42 = vpop.f32.mrf.mxu1 }
  0xf8   :  { %v273_v51 = vadd.f32 %v272_v47, %v265_v45 }
  0xf9   :  { %v216_v46 = vpop.f32.mrf.mxu0 }
  0xfa   :  { %242 = vst [vmem:[%s491_s2 + $0x20] sm:$0xff] %v216_v46  ;;  %v266_v49 = vmul.f32 %v216_v46, %v216_v46  ;;  %v251_v52 = vadd.f32 %v250_v48, %v216_v46 }
  0xfb   :  { %v218_v50 = vpop.f32.mrf.mxu0 }
  0xfc   :  { %v274_v54 = vadd.f32 %v273_v51, %v266_v49 }
  0xfd   :  { %v219_v53 = vpop.f32.mrf.mxu0 }
  0xfe   :  { %243 = vst [vmem:[%s491_s2 + $0x28] sm:$0xff] %v219_v53  ;;  %v252_v55 = vadd.f32 %v251_v52, %v219_v53  ;;  %v267_v56 = vmul.f32 %v219_v53, %v219_v53 }
  0xff   :  { %v221_v57 = vpop.f32.mrf.mxu0 }
 0x100   :  { %v253_v59 = vadd.f32 %v252_v55, %v224_v24  ;;  %v275_v60 = vadd.f32 %v274_v54, %v267_v56 }
 0x102   :  { %v276_v62 = vadd.f32 %v275_v60, %v268_v58  ;;  %v254_v63 = vadd.f32 %v253_v59, %v227_v28 }
 0x104   :  { %v255_v1 = vadd.f32 %v254_v63, %v232_v32  ;;  %v277_v2 = vadd.f32 %v276_v62, %v269_v61 }
 0x106   :  { %v256_v3 = vrot.slane %v255_v1, 4  ;;  %v278_v4 = vadd.f32 %v277_v2, %v270_v0 }
 0x108   :  { %v257_v5 = vadd.f32 %v256_v3, %v255_v1  ;;  %v279_v6 = vrot.slane %v278_v4, 4 }
 0x10a   :  { %v258_v7 = vrot.slane %v257_v5, 2  ;;  %v280_v8 = vadd.f32 %v279_v6, %v278_v4 }
 0x10c   :  { %v259_v9 = vadd.f32 %v258_v7, %v257_v5  ;;  %v281_v10 = vrot.slane %v280_v8, 2 }
 0x10e   :  { %v260_v11 = vrot.slane %v259_v9, 1  ;;  %v282_v12 = vadd.f32 %v281_v10, %v280_v8 }
 0x110   :  { %v283_v13 = vrot.slane %v282_v12, 1  ;;  %v261_v15 = vadd.f32 %v260_v11, %v259_v9 }
 0x112   :  { %v284_v16 = vadd.f32 %v283_v13, %v282_v12 }
 0x114   :  { %v286_v17 = vsel %vm285_vm1, %v261_v15, %v284_v16 }
 0x115   :  { %v287_v18 = vadd.f32 %v286_v17, %v247_v14 }
 0x117   :  { %288 = vst [vmem:[%s490_s3] sm:$0x3] %v287_v18 }

// kernel: stem_v4_res2_forward.29
= control target key start
LH: loop header
LB: loop body
LE: loop exit
PB: predicated region body
PF: predicated region fallthrough
CT: control target
= control target key end

     0   :  { %vm369_vm0 = vcmask 523264   ;;  %v735_v46 = vmov 0.0   ;;  %vm550_vm1 = vcmask 1040384   ;;  %s915_s1 = inlined_call_operand.vmem [shape: bf16[576,128], index: 1, kind: input, shape index: {}]   ;;  %s916_s0 = inlined_call_operand.vmem [shape: bf16[32,576], index: 0, kind: input, shape index: {}]   ;;  %s917_s3 = inlined_call_operand.vmem [shape: f32[2,128], index: 3, kind: output, shape index: {1}]   ;;  %s918_s2 = inlined_call_operand.vmem [shape: f32[32,128], index: 2, kind: output, shape index: {0}]  }
   0x1   :  { %v685_v0 = vld [vmem:[%s915_s1 + $0x78] sm:$0xff]   ;;  %v689_v4 = vld [vmem:[%s915_s1 + $0x70] sm:$0xff]   ;;  %v693_v8 = vld [vmem:[%s915_s1 + $0x68] sm:$0xff]   ;;  %18 = vst [vmem:[%s917_s3] sm:$0x3] %v735_v46 }
   0x2   :  { %v686_v1 = vld [vmem:[%s915_s1 + $0xf8] sm:$0xff]   ;;  %610 = vmatprep.subr.bf16.mxu0 %v685_v0  ;;  %v690_v5 = vld [vmem:[%s915_s1 + $0xf0] sm:$0xff]   ;;  %v694_v9 = vld [vmem:[%s915_s1 + $0xe8] sm:$0xff]  }
   0x3   :  { %v687_v2 = vld [vmem:[%s915_s1 + $0x38] sm:$0xff]   ;;  %638 = vmatprep.subr.bf16.mxu1 %v686_v1  ;;  %v691_v6 = vld [vmem:[%s915_s1 + $0x30] sm:$0xff]   ;;  %v695_v10 = vld [vmem:[%s915_s1 + $0x28] sm:$0xff]  }
   0x4   :  { %v688_v3 = vld [vmem:[%s915_s1 + $0xb8] sm:$0xff]   ;;  %611 = vmatpush3.bf16.msra.mxu0 %v687_v2  ;;  %v692_v7 = vld [vmem:[%s915_s1 + $0xb0] sm:$0xff]   ;;  %v696_v11 = vld [vmem:[%s915_s1 + $0xa8] sm:$0xff]  }
   0x5   :  { %639 = vmatpush3.bf16.msra.mxu1 %v688_v3  ;;  %612 = vmatprep.subr.bf16.mxu0 %v689_v4  ;;  %v697_v12 = vld [vmem:[%s915_s1 + $0x60] sm:$0xff]   ;;  %v701_v16 = vld [vmem:[%s915_s1 + $0x58] sm:$0xff]   ;;  %v705_v20 = vld [vmem:[%s915_s1 + $0x50] sm:$0xff]  }
   0x6   :  { %640 = vmatprep.subr.bf16.mxu1 %v690_v5  ;;  %v698_v13 = vld [vmem:[%s915_s1 + $0xe0] sm:$0xff]   ;;  %v702_v17 = vld [vmem:[%s915_s1 + $0xd8] sm:$0xff]   ;;  %v706_v21 = vld [vmem:[%s915_s1 + $0xd0] sm:$0xff]  }
   0x7   :  { %v699_v14 = vld [vmem:[%s915_s1 + $0x20] sm:$0xff]   ;;  %v703_v18 = vld [vmem:[%s915_s1 + $0x18] sm:$0xff]   ;;  %v707_v22 = vld [vmem:[%s915_s1 + $0x10] sm:$0xff]  }
   0x8   :  { %613 = vmatpush3.bf16.msra.mxu0 %v691_v6  ;;  %v700_v15 = vld [vmem:[%s915_s1 + $0xa0] sm:$0xff]   ;;  %v704_v19 = vld [vmem:[%s915_s1 + $0x98] sm:$0xff]   ;;  %v708_v23 = vld [vmem:[%s915_s1 + $0x90] sm:$0xff]  }
   0x9   :  { %641 = vmatpush3.bf16.msra.mxu1 %v692_v7  ;;  %614 = vmatprep.subr.bf16.mxu0 %v693_v8  ;;  %v709_v24 = vld [vmem:[%s915_s1 + $0x48] sm:$0xff]   ;;  %v713_v28 = vld [vmem:[%s915_s1 + $0x40] sm:$0xff]   ;;  %v723_v36 = vld [vmem:[%s915_s1 + $0x118] sm:$0xff]  }
   0xa   :  { %642 = vmatprep.subr.bf16.mxu1 %v694_v9  ;;  %v710_v25 = vld [vmem:[%s915_s1 + $0xc8] sm:$0xff]   ;;  %v714_v29 = vld [vmem:[%s915_s1 + $0xc0] sm:$0xff]   ;;  %v724_v37 = vld [vmem:[%s915_s1 + $0x110] sm:$0xff]  }
   0xb   :  { %v711_v26 = vld [vmem:[%s915_s1 + $0x8] sm:$0xff]   ;;  %v715_v30 = vld [vmem:[%s915_s1] sm:$0xff]  }
   0xc   :  { %615 = vmatpush3.bf16.msra.mxu0 %v695_v10  ;;  %v712_v27 = vld [vmem:[%s915_s1 + $0x88] sm:$0xff]   ;;  %v716_v31 = vld [vmem:[%s915_s1 + $0x80] sm:$0xff]  }
   0xd   :  { %643 = vmatpush3.bf16.msra.mxu1 %v696_v11  ;;  %616 = vmatprep.subr.bf16.mxu0 %v697_v12  ;;  %v717_v32 = vld [vmem:[%s916_s0] ss:$20 sps:$4 sm:$0xff]   ;;  %v719_v33 = vld [vmem:[%s916_s0 + $0x4] ss:$20 sps:$4 sm:$0xff]   ;;  %v720_v34 = vld [vmem:[%s916_s0 + $0x8] ss:$20 sps:$4 sm:$0xff]  }
   0xe   :  { %644 = vmatprep.subr.bf16.mxu1 %v698_v13  ;;  %v722_v35 = vld [vmem:[%s916_s0 + $0xc] ss:$20 sps:$4 sm:$0xff]   ;;  %408 = vmatprep.mubr.bf16.mxu0 %v719_v33  ;;  %v727_v39 = vld [vmem:[%s916_s0 + $0x34] ss:$20 sps:$4 sm:$0xff]   ;;  %v730_v42 = vld [vmem:[%s916_s0 + $0x30] ss:$20 sps:$4 sm:$0xff]  }
   0xf   :  { %457 = vmatprep.mubr.bf16.mxu1 %v722_v35  ;;  %v725_v38 = vld [vmem:[%s916_s0 + $0x2c] ss:$20 sps:$4 sm:$0xff]   ;;  %v729_v40 = vld [vmem:[%s916_s0 + $0x28] ss:$20 sps:$4 sm:$0xff]   ;;  %v733_v43 = vld [vmem:[%s916_s0 + $0x10] ss:$20 sps:$4 sm:$0xff]  }
  0x10   :  { %617 = vmatpush3.bf16.msra.mxu0 %v699_v14  ;;  %v731_v41 = vld [vmem:[%s915_s1 + $0x108] sm:$0xff]   ;;  %v732_v44 = vld [vmem:[%s915_s1 + $0x100] sm:$0xff]  }
  0x11   :  { %645 = vmatpush3.bf16.msra.mxu1 %v700_v15  ;;  %618 = vmatprep.subr.bf16.mxu0 %v701_v16  ;;  %v734_v45 = vld [vmem:[%s916_s0 + $0x38] ss:$20 sps:$4 sm:$0xff]  }
  0x12   :  { %646 = vmatprep.subr.bf16.mxu1 %v702_v17 }
  0x14   :  { %619 = vmatpush3.bf16.msra.mxu0 %v703_v18 }
  0x15   :  { %647 = vmatpush3.bf16.msra.mxu1 %v704_v19  ;;  %620 = vmatprep.subr.bf16.mxu0 %v705_v20 }
  0x16   :  { %648 = vmatprep.subr.bf16.mxu1 %v706_v21 }
  0x18   :  { %621 = vmatpush3.bf16.msra.mxu0 %v707_v22 }
  0x19   :  { %649 = vmatpush3.bf16.msra.mxu1 %v708_v23  ;;  %622 = vmatprep.subr.bf16.mxu0 %v709_v24 }
  0x1a   :  { %650 = vmatprep.subr.bf16.mxu1 %v710_v25 }
  0x1c   :  { %623 = vmatpush3.bf16.msra.mxu0 %v711_v26 }
  0x1d   :  { %651 = vmatpush3.bf16.msra.mxu1 %v712_v27  ;;  %624 = vmatprep.subr.bf16.mxu0 %v713_v28 }
  0x1e   :  { %652 = vmatprep.subr.bf16.mxu1 %v714_v29 }
  0x20   :  { %625 = vmatpush3.bf16.msra.mxu0 %v715_v30 }
  0x21   :  { %653 = vmatpush3.bf16.msra.mxu1 %v716_v31  ;;  %672 = vmatprep.subr.bf16.mxu0 %v723_v36 }
  0x23   :  { %409 = vmatmul.mubr.bf16.vlgmr.msra.gmra.mxu0 %v717_v32 }
  0x24   :  { %458 = vmatmul.mubr.bf16.vlgmr.msra.gmra.mxu1 %v720_v34  ;;  %673 = vmatpush3.bf16.msra.mxu0 %v723_v36 }
  0x25   :  { %674 = vmatprep.subr.bf16.mxu0 %v724_v37  ;;  %416 = vmatprep.mubr.bf16.mxu0 %v725_v38 }
  0x26   :  { %465 = vmatprep.mubr.bf16.mxu1 %v727_v39  ;;  %v527_v39 = vld [vmem:[%s917_s3] sm:$0x3] }
  0x28   :  { %675 = vmatpush3.bf16.msra.mxu0 %v724_v37 }
  0x29   :  { %676 = vmatprep.subr.bf16.mxu0 %v731_v41 }
  0x2b   :  { %417 = vmatmul.mubr.bf16.gmra.mxu0 %v729_v40 }
  0x2c   :  { %466 = vmatmul.mubr.bf16.gmra.mxu1 %v730_v42  ;;  %680 = vmatprep.mubr.msk.bf16.mxu0 %vm369_vm0, %v733_v43 }
  0x2d   :  { %677 = vmatpush3.bf16.msra.mxu0 %v731_v41 }
  0x2e   :  { %678 = vmatprep.subr.bf16.mxu0 %v732_v44 }
  0x31   :  { %679 = vmatpush3.bf16.msra.mxu0 %v732_v44 }
  0x34   :  { %681 = vmatmul.mubr.msk.bf16.vlgmr.msra.gmra.mxu0 %vm369_vm0, %v734_v45 }
  0xe3   :  { %v626_v47 = vpop.f32.mrf.mxu0 }
  0xe4   :  { %v654_v48 = vpop.f32.mrf.mxu1 }
  0xe5   :  { %v627_v49 = vpop.f32.mrf.mxu0 }
  0xe6   :  { %v655_v50 = vpop.f32.mrf.mxu1  ;;  %v628_v63 = vadd.f32 %v627_v49, %v626_v47 }
  0xe7   :  { %v629_v51 = vpop.f32.mrf.mxu0  ;;  %v656_v0 = vadd.f32 %v655_v50, %v654_v48 }
  0xe8   :  { %v657_v52 = vpop.f32.mrf.mxu1 }
  0xe9   :  { %v630_v53 = vpop.f32.mrf.mxu0  ;;  %v460_v10 = vadd.f32 %v656_v0, %v628_v63 }
  0xea   :  { %v658_v54 = vpop.f32.mrf.mxu1  ;;  %v631_v7 = vadd.f32 %v630_v53, %v629_v51 }
  0xeb   :  { %v632_v55 = vpop.f32.mrf.mxu0  ;;  %v659_v8 = vadd.f32 %v658_v54, %v657_v52 }
  0xec   :  { %v660_v56 = vpop.f32.mrf.mxu1 }
  0xed   :  { %v633_v57 = vpop.f32.mrf.mxu0  ;;  %v463_v16 = vadd.f32 %v659_v8, %v631_v7 }
  0xee   :  { %v661_v58 = vpop.f32.mrf.mxu1  ;;  %v634_v59 = vadd.f32 %v633_v57, %v632_v55 }
  0xef   :  { %v662_v60 = vadd.f32 %v661_v58, %v660_v56  ;;  %v635_v61 = vpop.f32.mrf.mxu0 }
  0xf0   :  { %v663_v62 = vpop.f32.mrf.mxu1 }
  0xf1   :  { %v636_v1 = vpop.f32.mrf.mxu0  ;;  %v468_v5 = vadd.f32 %v662_v60, %v634_v59 }
  0xf2   :  { %v664_v2 = vpop.f32.mrf.mxu1  ;;  %v637_v3 = vadd.f32 %v636_v1, %v635_v61 }
  0xf3   :  { %v665_v4 = vadd.f32 %v664_v2, %v663_v62 }
  0xf4   :  { %v682_v6 = vpop.f32.mrf.mxu0 }
  0xf5   :  { %v517_v9 = vadd.f32 %v682_v6, %v468_v5  ;;  %v471_v13 = vadd.f32 %v665_v4, %v637_v3 }
  0xf6   :  { %v508_v11 = vpop.f32.mrf.mxu0 }
  0xf7   :  { %525 = vst [vmem:[%s918_s2 + $0x10] sm:$0xff] %v517_v9  ;;  %v509_v12 = vadd.f32 %v508_v11, %v460_v10  ;;  %v539_v22 = vmul.f32 %v517_v9, %v517_v9 }
  0xf8   :  { %v683_v14 = vpop.f32.mrf.mxu0 }
  0xf9   :  { %523 = vst [vmem:[%s918_s2] sm:$0xff] %v509_v12  ;;  %v520_v15 = vadd.f32 %v683_v14, %v471_v13  ;;  %v537_v19 = vmul.f32 %v509_v12, %v509_v12 }
  0xfa   :  { %v511_v17 = vpop.f32.mrf.mxu0 }
  0xfb   :  { %526 = vst [vmem:[%s918_s2 + $0x18] sm:$0xff] %v520_v15  ;;  %v512_v18 = vadd.f32 %v511_v17, %v463_v16  ;;  %v540_v25 = vmul.f32 %v520_v15, %v520_v15 }
  0xfd   :  { %524 = vst [vmem:[%s918_s2 + $0x8] sm:$0xff] %v512_v18  ;;  %v528_v20 = vadd.f32 %v512_v18, %v509_v12  ;;  %v538_v21 = vmul.f32 %v512_v18, %v512_v18 }
  0xff   :  { %v529_v23 = vadd.f32 %v528_v20, %v517_v9  ;;  %v541_v24 = vadd.f32 %v538_v21, %v537_v19 }
 0x101   :  { %v530_v26 = vadd.f32 %v529_v23, %v520_v15  ;;  %v542_v27 = vadd.f32 %v541_v24, %v539_v22 }
 0x103   :  { %v531_v28 = vrot.slane %v530_v26, 4  ;;  %v543_v29 = vadd.f32 %v542_v27, %v540_v25 }
 0x105   :  { %v532_v30 = vadd.f32 %v531_v28, %v530_v26  ;;  %v544_v31 = vrot.slane %v543_v29, 4 }
 0x107   :  { %v533_v32 = vrot.slane %v532_v30, 2  ;;  %v545_v33 = vadd.f32 %v544_v31, %v543_v29 }
 0x109   :  { %v534_v34 = vadd.f32 %v533_v32, %v532_v30  ;;  %v546_v35 = vrot.slane %v545_v33, 2 }
 0x10b   :  { %v535_v36 = vrot.slane %v534_v34, 1  ;;  %v547_v37 = vadd.f32 %v546_v35, %v545_v33 }
 0x10d   :  { %v548_v38 = vrot.slane %v547_v37, 1  ;;  %v536_v40 = vadd.f32 %v535_v36, %v534_v34 }
 0x10f   :  { %v549_v41 = vadd.f32 %v548_v38, %v547_v37 }
 0x111   :  { %v551_v42 = vsel %vm550_vm1, %v536_v40, %v549_v41 }
 0x112   :  { %v552_v43 = vadd.f32 %v551_v42, %v527_v39 }
 0x114   :  { %553 = vst [vmem:[%s917_s3] sm:$0x3] %v552_v43 }

// kernel: stem_v4_res2_forward.30
= control target key start
LH: loop header
LB: loop body
LE: loop exit
PB: predicated region body
PF: predicated region fallthrough
CT: control target
= control target key end

     0   :  { %s104_s0 = inlined_call_operand.vmem [shape: f32[32,128], index: 0, kind: input, shape index: {}]   ;;  %s105_s1 = inlined_call_operand.vmem [shape: f32[1,128], index: 1, kind: input, shape index: {}]   ;;  %s106_s2 = inlined_call_operand.vmem [shape: f32[1,128], index: 2, kind: input, shape index: {}]   ;;  %s107_s3 = inlined_call_operand.vmem [shape: f32[32,128], index: 3, kind: output, shape index: {}]  }
   0x1   :  { %v14_v0 = vld [vmem:[%s104_s0] sm:$0xff]  ;;  %v15_v4 = vld [vmem:[%s104_s0 + $0x8] sm:$0xff]  ;;  %v16_v5 = vld [vmem:[%s104_s0 + $0x10] sm:$0xff] }
   0x2   :  { %v52_v1 = vld [vmem:[%s105_s1] ss:$0 sm:$0xff]  ;;  %v17_v6 = vld [vmem:[%s104_s0 + $0x18] sm:$0xff] }
   0x3   :  { %v53_v2 = vld [vmem:[%s106_s2] ss:$0 sm:$0xff]  ;;  %v25_v3 = vmul.f32 %v52_v1, %v14_v0  ;;  %v26_v7 = vmul.f32 %v52_v1, %v15_v4  ;;  %v27_v8 = vmul.f32 %v52_v1, %v16_v5  ;;  %v28_v9 = vmul.f32 %v52_v1, %v17_v6 }
   0x5   :  { %v36_v10 = vadd.f32 %v53_v2, %v25_v3  ;;  %v37_v11 = vadd.f32 %v53_v2, %v26_v7  ;;  %v38_v12 = vadd.f32 %v53_v2, %v27_v8  ;;  %v39_v13 = vadd.f32 %v53_v2, %v28_v9 }
   0x7   :  { %v40_v14 = vmax.f32 %v36_v10, 0.0  ;;  %v41_v15 = vmax.f32 %v37_v11, 0.0  ;;  %v42_v16 = vmax.f32 %v38_v12, 0.0  ;;  %v43_v17 = vmax.f32 %v39_v13, 0.0 }
   0x9   :  { %44 = vst [vmem:[%s107_s3] sm:$0xff] %v40_v14  ;;  %45 = vst [vmem:[%s107_s3 + $0x8] sm:$0xff] %v41_v15 }
   0xa   :  { %46 = vst [vmem:[%s107_s3 + $0x10] sm:$0xff] %v42_v16  ;;  %47 = vst [vmem:[%s107_s3 + $0x18] sm:$0xff] %v43_v17 }

// kernel: stem_v4_res2_forward.31
= control target key start
LH: loop header
LB: loop body
LE: loop exit
PB: predicated region body
PF: predicated region fallthrough
CT: control target
= control target key end

     0   :  { %v726_v0 = vmov 0   ;;  %vm350_vm0 = vcmask 523264   ;;  %v727_v51 = vmov 0.0   ;;  %vm557_vm1 = vcmask 1040384   ;;  %s939_s1 = inlined_call_operand.vmem [shape: bf16[448,128], index: 1, kind: input, shape index: {}]   ;;  %s940_s0 = inlined_call_operand.vmem [shape: bf16[72,448], index: 0, kind: input, shape index: {}]   ;;  %s941_s3 = inlined_call_operand.vmem [shape: f32[2,128], index: 3, kind: output, shape index: {1}]   ;;  %s942_s2 = inlined_call_operand.vmem [shape: f32[72,128], index: 2, kind: output, shape index: {0}]  }
   0x1   :  { %438 = vmatprep.subr.bf16.mxu1 %v726_v0  ;;  %v670_v1 = vld [vmem:[%s939_s1 + $0xb8] sm:$0xff]   ;;  %v671_v2 = vld [vmem:[%s939_s1 + $0xb0] sm:$0xff]   ;;  %v674_v5 = vld [vmem:[%s939_s1 + $0xa8] sm:$0xff]   ;;  %18 = vst [vmem:[%s941_s3] sm:$0x3] %v727_v51 }
   0x2   :  { %439 = vmatpush1.bf16.msra.mxu1 %v670_v1  ;;  %v672_v3 = vld [vmem:[%s939_s1 + $0x78] sm:$0xff]   ;;  %v675_v6 = vld [vmem:[%s939_s1 + $0x70] sm:$0xff]   ;;  %v678_v8 = vld [vmem:[%s939_s1 + $0x68] sm:$0xff]  }
   0x3   :  { %440 = vmatprep.subr.bf16.mxu1 %v726_v0  ;;  %v673_v4 = vld [vmem:[%s939_s1 + $0x38] sm:$0xff]   ;;  %622 = vmatprep.subr.bf16.mxu0 %v672_v3  ;;  %v676_v7 = vld [vmem:[%s939_s1 + $0x30] sm:$0xff]   ;;  %v679_v9 = vld [vmem:[%s939_s1 + $0x28] sm:$0xff]  }
   0x4   :  { %623 = vmatpush3.bf16.msra.mxu0 %v673_v4  ;;  %v677_v10 = vld [vmem:[%s939_s1 + $0xa0] sm:$0xff]   ;;  %v680_v12 = vld [vmem:[%s939_s1 + $0x98] sm:$0xff]   ;;  %v683_v15 = vld [vmem:[%s939_s1 + $0x90] sm:$0xff]  }
   0x5   :  { %624 = vmatprep.subr.bf16.mxu0 %v675_v6  ;;  %v681_v11 = vld [vmem:[%s939_s1 + $0x60] sm:$0xff]   ;;  %v684_v14 = vld [vmem:[%s939_s1 + $0x58] sm:$0xff]   ;;  %v687_v17 = vld [vmem:[%s939_s1 + $0x50] sm:$0xff]  }
   0x6   :  { %441 = vmatpush1.bf16.msra.mxu1 %v671_v2  ;;  %v682_v13 = vld [vmem:[%s939_s1 + $0x20] sm:$0xff]   ;;  %v685_v16 = vld [vmem:[%s939_s1 + $0x18] sm:$0xff]   ;;  %v686_v18 = vld [vmem:[%s939_s1 + $0x88] sm:$0xff]  }
   0x7   :  { %442 = vmatprep.subr.bf16.mxu1 %v726_v0  ;;  %v688_v19 = vld [vmem:[%s939_s1 + $0x10] sm:$0xff]   ;;  %v690_v20 = vld [vmem:[%s939_s1 + $0x48] sm:$0xff]   ;;  %v689_v21 = vld [vmem:[%s939_s1 + $0x80] sm:$0xff]  }
   0x8   :  { %625 = vmatpush3.bf16.msra.mxu0 %v676_v7  ;;  %v691_v22 = vld [vmem:[%s939_s1 + $0x8] sm:$0xff]   ;;  %v693_v23 = vld [vmem:[%s939_s1 + $0x40] sm:$0xff]   ;;  %v692_v26 = vld [vmem:[%s939_s1 + $0xd8] sm:$0xff]  }
   0x9   :  { %626 = vmatprep.subr.bf16.mxu0 %v678_v8  ;;  %v697_v24 = vld [vmem:[%s940_s0 + $0x4] ss:$16 sps:$4 sm:$0xff]   ;;  %v706_v27 = vld [vmem:[%s940_s0 + $0xc] ss:$16 sps:$4 sm:$0xff]   ;;  %v695_v28 = vld [vmem:[%s940_s0] ss:$16 sps:$4 sm:$0xff]  }
   0xa   :  { %443 = vmatpush1.bf16.msra.mxu1 %v674_v5  ;;  %398 = vmatprep.mubr.bf16.mxu0 %v697_v24  ;;  %v694_v25 = vld [vmem:[%s939_s1] sm:$0xff]   ;;  %v698_v30 = vld [vmem:[%s939_s1 + $0xd0] sm:$0xff]   ;;  %v699_v31 = vld [vmem:[%s939_s1 + $0xc8] sm:$0xff]  }
   0xb   :  { %444 = vmatprep.subr.bf16.mxu1 %v726_v0  ;;  %v700_v29 = vld [vmem:[%s940_s0 + $0x24] ss:$16 sps:$4 sm:$0xff]   ;;  %617 = vmatprep.mubr.msk.bf16.mxu1 %vm350_vm0, %v706_v27  ;;  %v703_v32 = vld [vmem:[%s940_s0 + $0x20] ss:$16 sps:$4 sm:$0xff]   ;;  %v704_v35 = vld [vmem:[%s940_s0 + $0x8] ss:$16 sps:$4 sm:$0xff]  }
   0xc   :  { %627 = vmatpush3.bf16.msra.mxu0 %v679_v9  ;;  %v707_v33 = vld [vmem:[%s940_s0 + $0x44] ss:$16 sps:$4 sm:$0xff]   ;;  %v710_v36 = vld [vmem:[%s940_s0 + $0x2c] ss:$16 sps:$4 sm:$0xff]   ;;  %v709_v37 = vld [vmem:[%s940_s0 + $0x40] ss:$16 sps:$4 sm:$0xff]  }
   0xd   :  { %628 = vmatprep.subr.bf16.mxu0 %v681_v11  ;;  %v702_v34 = vld [vmem:[%s939_s1 + $0xc0] sm:$0xff]   ;;  %v712_v39 = vld [vmem:[%s940_s0 + $0x28] ss:$16 sps:$4 sm:$0xff]   ;;  %v716_v40 = vld [vmem:[%s940_s0 + $0x4c] ss:$16 sps:$4 sm:$0xff]  }
   0xe   :  { %445 = vmatpush1.bf16.msra.mxu1 %v677_v10  ;;  %v713_v38 = vld [vmem:[%s940_s0 + $0x64] ss:$16 sps:$4 sm:$0xff]   ;;  %v715_v42 = vld [vmem:[%s940_s0 + $0x60] ss:$16 sps:$4 sm:$0xff]   ;;  %v718_v44 = vld [vmem:[%s940_s0 + $0x48] ss:$16 sps:$4 sm:$0xff]  }
   0xf   :  { %446 = vmatprep.subr.bf16.mxu1 %v726_v0  ;;  %v35_v41 = vld [vmem:[%s940_s0 + $0x80] sm:$0xff]  ;;  %v721_v45 = vld [vmem:[%s940_s0 + $0x6c] ss:$16 sps:$4 sm:$0xff]   ;;  %v723_v48 = vld [vmem:[%s940_s0 + $0x68] ss:$16 sps:$4 sm:$0xff]  }
  0x10   :  { %629 = vmatpush3.bf16.msra.mxu0 %v682_v13  ;;  %v586_v43 = vcombine.high %v35_v41, %v35_v41  ;;  %v585_v46 = vcombine.low %v35_v41, %v35_v41  ;;  %v36_v47 = vld [vmem:[%s940_s0 + $0x88] sm:$0xff] }
  0x11   :  { %630 = vmatprep.subr.bf16.mxu0 %v684_v14  ;;  %v588_v49 = vcombine.high %v36_v47, %v36_v47  ;;  %v587_v50 = vcombine.low %v36_v47, %v36_v47 }
  0x12   :  { %447 = vmatpush1.bf16.msra.mxu1 %v680_v12 }
  0x13   :  { %448 = vmatprep.subr.bf16.mxu1 %v726_v0 }
  0x14   :  { %631 = vmatpush3.bf16.msra.mxu0 %v685_v16 }
  0x15   :  { %632 = vmatprep.subr.bf16.mxu0 %v687_v17 }
  0x16   :  { %449 = vmatpush1.bf16.msra.mxu1 %v683_v15 }
  0x17   :  { %450 = vmatprep.subr.bf16.mxu1 %v726_v0 }
  0x18   :  { %633 = vmatpush3.bf16.msra.mxu0 %v688_v19 }
  0x19   :  { %634 = vmatprep.subr.bf16.mxu0 %v690_v20 }
  0x1a   :  { %451 = vmatpush1.bf16.msra.mxu1 %v686_v18 }
  0x1b   :  { %452 = vmatprep.subr.bf16.mxu1 %v726_v0 }
  0x1c   :  { %635 = vmatpush3.bf16.msra.mxu0 %v691_v22 }
  0x1d   :  { %636 = vmatprep.subr.bf16.mxu0 %v693_v23 }
  0x1e   :  { %453 = vmatpush1.bf16.msra.mxu1 %v689_v21 }
  0x1f   :  { %462 = vmatprep.subr.bf16.mxu1 %v726_v0 }
  0x20   :  { %637 = vmatpush3.bf16.msra.mxu0 %v694_v25 }
  0x22   :  { %463 = vmatpush2.bf16.msra.mxu1 %v692_v26 }
  0x23   :  { %464 = vmatprep.subr.bf16.mxu1 %v726_v0  ;;  %399 = vmatmul.mubr.bf16.vlgmr.msra.gmra.mxu0 %v695_v28 }
  0x24   :  { %406 = vmatprep.mubr.bf16.mxu0 %v700_v29 }
  0x26   :  { %465 = vmatpush2.bf16.msra.mxu1 %v698_v30 }
  0x27   :  { %466 = vmatprep.subr.bf16.mxu1 %v726_v0 }
  0x2a   :  { %467 = vmatpush2.bf16.msra.mxu1 %v699_v31 }
  0x2b   :  { %468 = vmatprep.subr.bf16.mxu1 %v726_v0  ;;  %407 = vmatmul.mubr.bf16.gmra.mxu0 %v703_v32 }
  0x2c   :  { %414 = vmatprep.mubr.bf16.mxu0 %v707_v33 }
  0x2e   :  { %469 = vmatpush2.bf16.msra.mxu1 %v702_v34 }
  0x31   :  { %471 = vmatmul.mubr.bf16.vlgmr.msra.gmra.mxu1 %v704_v35 }
  0x32   :  { %618 = vmatprep.mubr.msk.bf16.mxu1 %vm350_vm0, %v710_v36 }
  0x33   :  { %415 = vmatmul.mubr.bf16.gmra.mxu0 %v709_v37 }
  0x34   :  { %422 = vmatprep.mubr.bf16.mxu0 %v713_v38 }
  0x39   :  { %479 = vmatmul.mubr.bf16.gmra.mxu1 %v712_v39 }
  0x3a   :  { %619 = vmatprep.mubr.msk.bf16.mxu1 %vm350_vm0, %v716_v40 }
  0x3b   :  { %423 = vmatmul.mubr.bf16.gmra.mxu0 %v715_v42 }
  0x3c   :  { %430 = vmatprep.mubr.bf16.mxu0 %v586_v43 }
  0x41   :  { %487 = vmatmul.mubr.bf16.gmra.mxu1 %v718_v44 }
  0x42   :  { %620 = vmatprep.mubr.msk.bf16.mxu1 %vm350_vm0, %v721_v45 }
  0x43   :  { %431 = vmatmul.mubr.bf16.gmra.mxu0 %v585_v46 }
  0x49   :  { %495 = vmatmul.mubr.bf16.gmra.mxu1 %v723_v48 }
  0x4a   :  { %621 = vmatprep.mubr.msk.bf16.mxu1 %vm350_vm0, %v588_v49 }
  0x51   :  { %503 = vmatmul.mubr.bf16.gmra.mxu1 %v587_v50 }
  0xe3   :  { %v638_v52 = vpop.f32.mrf.mxu0 }
  0xe5   :  { %v639_v53 = vpop.f32.mrf.mxu0 }
  0xe6   :  { %v640_v58 = vadd.f32 %v639_v53, %v638_v52 }
  0xe7   :  { %v641_v54 = vpop.f32.mrf.mxu0 }
  0xe9   :  { %v642_v55 = vpop.f32.mrf.mxu0 }
  0xea   :  { %v643_v0 = vadd.f32 %v642_v55, %v641_v54 }
  0xeb   :  { %v644_v56 = vpop.f32.mrf.mxu0 }
  0xed   :  { %v645_v57 = vpop.f32.mrf.mxu0 }
  0xee   :  { %v646_v6 = vadd.f32 %v645_v57, %v644_v56 }
  0xef   :  { %v647_v59 = vpop.f32.mrf.mxu0 }
  0xf1   :  { %v472_v60 = vpop.f32.mrf.mxu1  ;;  %v648_v62 = vpop.f32.mrf.mxu0 }
  0xf2   :  { %v473_v61 = vadd.f32 %v640_v58, %v472_v60  ;;  %v649_v12 = vadd.f32 %v648_v62, %v647_v59 }
  0xf3   :  { %v474_v63 = vpop.f32.mrf.mxu1  ;;  %v650_v1 = vpop.f32.mrf.mxu0 }
  0xf4   :  { %510 = vst [vmem:[%s942_s2] sm:$0xff] %v473_v61  ;;  %v534_v28 = vmul.f32 %v473_v61, %v473_v61 }
  0xf5   :  { %v475_v2 = vpop.f32.mrf.mxu1  ;;  %v651_v4 = vpop.f32.mrf.mxu0 }
  0xf6   :  { %v476_v3 = vadd.f32 %v643_v0, %v475_v2  ;;  %v652_v18 = vadd.f32 %v651_v4, %v650_v1 }
  0xf7   :  { %v477_v5 = vpop.f32.mrf.mxu1  ;;  %v653_v7 = vpop.f32.mrf.mxu0 }
  0xf8   :  { %511 = vst [vmem:[%s942_s2 + $0x8] sm:$0xff] %v476_v3  ;;  %v535_v24 = vmul.f32 %v476_v3, %v476_v3  ;;  %v520_v29 = vadd.f32 %v476_v3, %v473_v61 }
  0xf9   :  { %v480_v8 = vpop.f32.mrf.mxu1  ;;  %v654_v10 = vpop.f32.mrf.mxu0 }
  0xfa   :  { %v481_v9 = vadd.f32 %v646_v6, %v480_v8  ;;  %v655_v25 = vadd.f32 %v654_v10, %v653_v7  ;;  %v543_v34 = vadd.f32 %v535_v24, %v534_v28 }
  0xfb   :  { %v482_v11 = vpop.f32.mrf.mxu1  ;;  %v656_v13 = vpop.f32.mrf.mxu0 }
  0xfc   :  { %512 = vst [vmem:[%s942_s2 + $0x10] sm:$0xff] %v481_v9  ;;  %v536_v30 = vmul.f32 %v481_v9, %v481_v9  ;;  %v521_v35 = vadd.f32 %v520_v29, %v481_v9 }
  0xfd   :  { %v483_v14 = vpop.f32.mrf.mxu1  ;;  %v657_v16 = vpop.f32.mrf.mxu0 }
  0xfe   :  { %v484_v15 = vadd.f32 %v649_v12, %v483_v14  ;;  %v658_v37 = vadd.f32 %v657_v16, %v656_v13  ;;  %v544_v40 = vadd.f32 %v543_v34, %v536_v30 }
  0xff   :  { %v485_v17 = vpop.f32.mrf.mxu1  ;;  %v659_v19 = vpop.f32.mrf.mxu0 }
 0x100   :  { %513 = vst [vmem:[%s942_s2 + $0x18] sm:$0xff] %v484_v15  ;;  %v537_v36 = vmul.f32 %v484_v15, %v484_v15  ;;  %v522_v41 = vadd.f32 %v521_v35, %v484_v15  ;;  %v519_v17 = vld [vmem:[%s941_s3] sm:$0x3] }
 0x101   :  { %v488_v20 = vpop.f32.mrf.mxu1  ;;  %v660_v22 = vpop.f32.mrf.mxu0 }
 0x102   :  { %v489_v21 = vadd.f32 %v652_v18, %v488_v20  ;;  %v545_v46 = vadd.f32 %v544_v40, %v537_v36  ;;  %v661_v48 = vadd.f32 %v660_v22, %v659_v19 }
 0x103   :  { %v490_v23 = vpop.f32.mrf.mxu1  ;;  %v662_v26 = vpop.f32.mrf.mxu0 }
 0x104   :  { %514 = vst [vmem:[%s942_s2 + $0x20] sm:$0xff] %v489_v21  ;;  %v538_v42 = vmul.f32 %v489_v21, %v489_v21  ;;  %v523_v47 = vadd.f32 %v522_v41, %v489_v21 }
 0x105   :  { %v491_v27 = vpop.f32.mrf.mxu1  ;;  %v663_v32 = vpop.f32.mrf.mxu0 }
 0x106   :  { %v492_v31 = vadd.f32 %v655_v25, %v491_v27  ;;  %v546_v51 = vadd.f32 %v545_v46, %v538_v42  ;;  %v664_v57 = vadd.f32 %v663_v32, %v662_v26 }
 0x107   :  { %v493_v33 = vpop.f32.mrf.mxu1  ;;  %v665_v38 = vpop.f32.mrf.mxu0 }
 0x108   :  { %515 = vst [vmem:[%s942_s2 + $0x28] sm:$0xff] %v492_v31  ;;  %v539_v49 = vmul.f32 %v492_v31, %v492_v31  ;;  %v524_v52 = vadd.f32 %v523_v47, %v492_v31 }
 0x109   :  { %v496_v39 = vpop.f32.mrf.mxu1  ;;  %v666_v44 = vpop.f32.mrf.mxu0 }
 0x10a   :  { %v497_v43 = vadd.f32 %v658_v37, %v496_v39  ;;  %v547_v56 = vadd.f32 %v546_v51, %v539_v49 }
 0x10b   :  { %v498_v45 = vpop.f32.mrf.mxu1 }
 0x10c   :  { %516 = vst [vmem:[%s942_s2 + $0x30] sm:$0xff] %v497_v43  ;;  %v540_v53 = vmul.f32 %v497_v43, %v497_v43  ;;  %v525_v58 = vadd.f32 %v524_v52, %v497_v43 }
 0x10d   :  { %v499_v50 = vpop.f32.mrf.mxu1 }
 0x10e   :  { %v500_v54 = vadd.f32 %v661_v48, %v499_v50  ;;  %v548_v61 = vadd.f32 %v547_v56, %v540_v53 }
 0x10f   :  { %v501_v55 = vpop.f32.mrf.mxu1 }
 0x110   :  { %517 = vst [vmem:[%s942_s2 + $0x38] sm:$0xff] %v500_v54  ;;  %v541_v59 = vmul.f32 %v500_v54, %v500_v54  ;;  %v526_v62 = vadd.f32 %v525_v58, %v500_v54 }
 0x111   :  { %v504_v60 = vpop.f32.mrf.mxu1 }
 0x112   :  { %v505_v63 = vadd.f32 %v664_v57, %v504_v60  ;;  %v549_v1 = vadd.f32 %v548_v61, %v541_v59 }
 0x113   :  { %v506_v0 = vpop.f32.mrf.mxu1 }
 0x114   :  { %518 = vst [vmem:[%s942_s2 + $0x40] sm:$0xff] %v505_v63  ;;  %v527_v2 = vadd.f32 %v526_v62, %v505_v63  ;;  %v542_v3 = vmul.f32 %v505_v63, %v505_v63 }
 0x115   :  { %v507_v4 = vpop.f32.mrf.mxu1 }
 0x116   :  { %v528_v5 = vrot.slane %v527_v2, 4  ;;  %v550_v6 = vadd.f32 %v549_v1, %v542_v3 }
 0x117   :  { %v508_v7 = vpop.f32.mrf.mxu1 }
 0x118   :  { %v529_v8 = vadd.f32 %v528_v5, %v527_v2  ;;  %v551_v9 = vrot.slane %v550_v6, 4 }
 0x11a   :  { %v530_v10 = vrot.slane %v529_v8, 2  ;;  %v552_v11 = vadd.f32 %v551_v9, %v550_v6 }
 0x11c   :  { %v531_v12 = vadd.f32 %v530_v10, %v529_v8  ;;  %v553_v13 = vrot.slane %v552_v11, 2 }
 0x11e   :  { %v532_v14 = vrot.slane %v531_v12, 1  ;;  %v554_v15 = vadd.f32 %v553_v13, %v552_v11 }
 0x120   :  { %v555_v16 = vrot.slane %v554_v15, 1  ;;  %v533_v18 = vadd.f32 %v532_v14, %v531_v12 }
 0x122   :  { %v556_v19 = vadd.f32 %v555_v16, %v554_v15 }
 0x124   :  { %v558_v20 = vsel %vm557_vm1, %v533_v18, %v556_v19 }
 0x125   :  { %v559_v21 = vadd.f32 %v558_v20, %v519_v17 }
 0x127   :  { %560 = vst [vmem:[%s941_s3] sm:$0x3] %v559_v21 }

// kernel: stem_v4_res2_forward.37
= control target key start
LH: loop header
LB: loop body
LE: loop exit
PB: predicated region body
PF: predicated region fallthrough
CT: control target
= control target key end

     0   :  { %s369_s6 = smov 0   ;;  %s442_s0 = inlined_call_operand.vmem [shape: f32[2,6,6,192], index: 0, kind: input, shape index: {}]   ;;  %s443_s1 = inlined_call_operand.vmem [shape: f32[2,4,4,192], index: 1, kind: output, shape index: {}]  }
   0x1 LB: > { %s331_s7 = sadd.s32 4294967295, %s357_s6   ;;  %p335_p0 = scmp.ge.s32.totalorder %s357_s6, 1  ;;  %s357_s6 = sphi %s369_s6, %s11_s6  }
   0x2   : > { %p87_p1 = scmp.lt.s32.totalorder %s357_s6, 3 }
   0x4   : > { %p88_p2 = pnand %p335_p0, %p87_p1 }
   0x5   : > { %p107_p3 = scmp.lt.s32.totalorder (!%p88_p2), %s331_s7, 1 }
   0x6   : > { %91 = sbr.rel (%p88_p2) target bundleno = 46 (0x2e), region = 24 }
   0xb   : > { %s447_s7 = smov (!%p107_p3, %s331_s7), 1  ;;  %vm269_vm0 = vcmask 1043456   ;;  %vm270_vm1 = vcmask 523268  }
   0xc   : > { %s342_s8 = smul.u32 96, %s447_s7  ;;  %s341_s12 = sshll.u32 %s447_s7, 5  ;;  %vm427_vm2 = vmor %vm270_vm1, %vm269_vm0 }
   0xd   : > { %s116_s15 = scalar_lea.vmem %s443_s1, %s341_s12 }
   0xe   : > { %s383_s11 = scalar_lea.vmem %s442_s0, %s342_s8 }
   0xf   : > { %v117_v0 = vld [vmem:[%s383_s11] sm:$0x3f]  ;;  %v118_v1 = vld [vmem:[%s383_s11 + $0x8] sm:$0x3f]  ;;  %v119_v2 = vld [vmem:[%s383_s11 + $0x10] sm:$0x3f] }
  0x10   : > { %v120_v3 = vld [vmem:[%s383_s11 + $0x18] sm:$0x3f]  ;;  %v390_v4 = vld [vmem:[%s383_s11 + $0x20] sm:$0x3f]  ;;  %v393_v5 = vld [vmem:[%s383_s11 + $0x28] sm:$0x3f] }
  0x11   : > { %v137_v6 = vrot.slane %v117_v0, 1  ;;  %v138_v7 = vrot.slane %v118_v1, 1  ;;  %v139_v8 = vrot.slane %v119_v2, 1  ;;  %v140_v9 = vrot.slane %v120_v3, 1  ;;  %v123_v18 = vld [vmem:[%s383_s11 + $0x30] sm:$0x3f] }
  0x12   : > { %v141_v10 = vrot.slane %v390_v4, 1  ;;  %v142_v11 = vrot.slane %v393_v5, 1  ;;  %v161_v12 = vrot.slane %v117_v0, 2  ;;  %v162_v13 = vrot.slane %v118_v1, 2  ;;  %v124_v19 = vld [vmem:[%s383_s11 + $0x38] sm:$0x3f] }
  0x13   : > { %v153_v14 = vmax.f32 %v117_v0, %v137_v6  ;;  %v154_v15 = vmax.f32 %v118_v1, %v138_v7  ;;  %v155_v16 = vmax.f32 %v119_v2, %v139_v8  ;;  %v156_v17 = vmax.f32 %v120_v3, %v140_v9  ;;  %v125_v44 = vld [vmem:[%s383_s11 + $0x40] sm:$0x3f]  ;;  %v126_v45 = vld [vmem:[%s383_s11 + $0x48] sm:$0x3f] }
  0x14   : > { %v157_v20 = vmax.f32 %v390_v4, %v141_v10  ;;  %v158_v21 = vmax.f32 %v393_v5, %v142_v11  ;;  %v163_v22 = vrot.slane %v119_v2, 2  ;;  %v164_v23 = vrot.slane %v120_v3, 2 }
  0x15   : > { %v402_v24 = vrot.slane %v390_v4, 2  ;;  %v405_v25 = vrot.slane %v393_v5, 2  ;;  %v177_v26 = vmax.f32 %v153_v14, %v161_v12  ;;  %v178_v27 = vmax.f32 %v154_v15, %v162_v13 }
  0x16   : > { %v179_v28 = vmax.f32 %v155_v16, %v163_v22  ;;  %v180_v29 = vmax.f32 %v156_v17, %v164_v23  ;;  %v143_v30 = vrot.slane %v123_v18, 1  ;;  %v144_v31 = vrot.slane %v124_v19, 1  ;;  %v128_v17 = vld [vmem:[%s383_s11 + $0x58] sm:$0x3f] }
  0x17   : > { %v181_v32 = vmax.f32 %v157_v20, %v402_v24  ;;  %v182_v33 = vmax.f32 %v158_v21, %v405_v25  ;;  %v185_v34 = vmax.f32 %v177_v26, %v119_v2  ;;  %v186_v35 = vmax.f32 %v178_v27, %v120_v3 }
  0x18   : > { %v159_v36 = vmax.f32 %v123_v18, %v143_v30  ;;  %v160_v37 = vmax.f32 %v124_v19, %v144_v31  ;;  %v167_v38 = vrot.slane %v123_v18, 2  ;;  %v168_v39 = vrot.slane %v124_v19, 2 }
  0x19   : > { %v199_v40 = vmax.f32 %v185_v34, %v139_v8  ;;  %v200_v41 = vmax.f32 %v186_v35, %v140_v9  ;;  %v187_v42 = vmax.f32 %v179_v28, %v390_v4  ;;  %v188_v43 = vmax.f32 %v180_v29, %v393_v5 }
  0x1a   : > { %v183_v46 = vmax.f32 %v159_v36, %v167_v38  ;;  %v184_v47 = vmax.f32 %v160_v37, %v168_v39  ;;  %v189_v48 = vmax.f32 %v181_v32, %v123_v18  ;;  %v190_v49 = vmax.f32 %v182_v33, %v124_v19 }
  0x1b   : > { %v211_v50 = vmax.f32 %v199_v40, %v163_v22  ;;  %v212_v51 = vmax.f32 %v200_v41, %v164_v23  ;;  %v201_v52 = vmax.f32 %v187_v42, %v141_v10  ;;  %v202_v53 = vmax.f32 %v188_v43, %v142_v11 }
  0x1c   : > { %v191_v54 = vmax.f32 %v183_v46, %v125_v44  ;;  %v192_v55 = vmax.f32 %v184_v47, %v126_v45  ;;  %v195_v56 = vrot.slane %v125_v44, 1  ;;  %v196_v57 = vrot.slane %v126_v45, 1 }
  0x1d   : > { %v219_v58 = vmax.f32 %v211_v50, %v390_v4  ;;  %v220_v59 = vmax.f32 %v212_v51, %v393_v5  ;;  %v213_v60 = vmax.f32 %v201_v52, %v402_v24  ;;  %v214_v61 = vmax.f32 %v202_v53, %v405_v25  ;;  %v127_v5 = vld [vmem:[%s383_s11 + $0x50] sm:$0x3f] }
  0x1e   : > { %v203_v62 = vmax.f32 %v189_v48, %v143_v30  ;;  %v204_v63 = vmax.f32 %v190_v49, %v144_v31  ;;  %v205_v0 = vmax.f32 %v191_v54, %v195_v56  ;;  %v206_v1 = vmax.f32 %v192_v55, %v196_v57 }
  0x1f   : > { %v233_v2 = vmax.f32 %v219_v58, %v141_v10  ;;  %v234_v3 = vmax.f32 %v220_v59, %v142_v11  ;;  %v221_v6 = vmax.f32 %v213_v60, %v123_v18  ;;  %v222_v7 = vmax.f32 %v214_v61, %v124_v19 }
  0x20   : > { %v207_v8 = vrot.slane %v125_v44, 2  ;;  %v208_v9 = vrot.slane %v126_v45, 2  ;;  %v215_v4 = vmax.f32 %v203_v62, %v167_v38  ;;  %v216_v12 = vmax.f32 %v204_v63, %v168_v39 }
  0x21   : > { %v245_v13 = vmax.f32 %v233_v2, %v402_v24  ;;  %v246_v14 = vmax.f32 %v234_v3, %v405_v25  ;;  %v235_v15 = vmax.f32 %v221_v6, %v143_v30  ;;  %v236_v16 = vmax.f32 %v222_v7, %v144_v31 }
  0x22   : > { %v217_v11 = vmax.f32 %v205_v0, %v207_v8  ;;  %v218_v18 = vmax.f32 %v206_v1, %v208_v9  ;;  %v223_v19 = vmax.f32 %v215_v4, %v125_v44  ;;  %v224_v20 = vmax.f32 %v216_v12, %v126_v45 }
  0x23   : > { %v261_v21 = vcombine.low %v245_v13, %v246_v14  ;;  %v247_v22 = vmax.f32 %v235_v15, %v167_v38  ;;  %v248_v23 = vmax.f32 %v236_v16, %v168_v39  ;;  %v229_v24 = vrot.slane %v127_v5, 1 }
  0x24   : > { %v237_v25 = vmax.f32 %v223_v19, %v195_v56  ;;  %v238_v26 = vmax.f32 %v224_v20, %v196_v57  ;;  %v225_v27 = vmax.f32 %v217_v11, %v127_v5  ;;  %v226_v28 = vmax.f32 %v218_v18, %v128_v17 }
  0x25   : > { %272 = vst.msk [vmem:[%s116_s15] sm:$0xff] %vm427_vm2, %v261_v21  ;;  %v262_v29 = vcombine.low %v247_v22, %v248_v23  ;;  %v230_v30 = vrot.slane %v128_v17, 1  ;;  %v241_v31 = vrot.slane %v127_v5, 2  ;;  %v242_v32 = vrot.slane %v128_v17, 2 }
  0x26   : > { %v249_v33 = vmax.f32 %v237_v25, %v207_v8  ;;  %v250_v34 = vmax.f32 %v238_v26, %v208_v9  ;;  %v239_v35 = vmax.f32 %v225_v27, %v229_v24 }
  0x27   : > { %273 = vst.msk [vmem:[%s116_s15 + $0x8] sm:$0xff] %vm427_vm2, %v262_v29  ;;  %v240_v36 = vmax.f32 %v226_v28, %v230_v30 }
  0x28   : > { %v263_v37 = vcombine.low %v249_v33, %v250_v34  ;;  %v251_v38 = vmax.f32 %v239_v35, %v241_v31 }
  0x29   : > { %v252_v39 = vmax.f32 %v240_v36, %v242_v32 }
  0x2a   : > { %274 = vst.msk [vmem:[%s116_s15 + $0x10] sm:$0xff] %vm427_vm2, %v263_v37 }
  0x2b   : > { %v264_v40 = vcombine.low %v251_v38, %v252_v39 }
  0x2d   : > { %275 = vst.msk [vmem:[%s116_s15 + $0x18] sm:$0xff] %vm427_vm2, %v264_v40 }
  0x2e PF: > { %s11_s6 = sadd.s32 1, %s357_s6  }
  0x2f   : > { %p8_p4 = scmp.ge.s32.totalorder %s11_s6, 4  }
  0x31   :  { %10 = sbr.rel (!%p8_p4) target bundleno = 1 (0x1), region = 54 }

// kernel: stem_v4_res2_forward.39
= control target key start
LH: loop header
LB: loop body
LE: loop exit
PB: predicated region body
PF: predicated region fallthrough
CT: control target
= control target key end

     0   :  { %v24_v0 = vlaneseq  ;;  %vm71_vm0 = vcmask 523264   ;;  %s161_s1 = inlined_call_operand.vmem [shape: f32[1,192], index: 1, kind: input, shape index: {}]   ;;  %s162_s2 = inlined_call_operand.vmem [shape: f32[1,192], index: 2, kind: input, shape index: {}]   ;;  %s163_s0 = inlined_call_operand.vmem [shape: f32[32,192], index: 0, kind: input, shape index: {}]   ;;  %s164_s3 = inlined_call_operand.vmem [shape: f32[32,192], index: 3, kind: output, shape index: {}]  }
   0x1   :  { %v22_v2 = vld [vmem:[%s161_s1] sm:$0x3]  ;;  %v15_v7 = vld [vmem:[%s163_s0 + $0x8] sm:$0xff]  ;;  %v16_v8 = vld [vmem:[%s163_s0 + $0x10] sm:$0xff] }
   0x2   :  { %v25_v1 = vshrl.u32 %v24_v0, 7  ;;  %v42_v3 = vld [vmem:[%s162_s2] sm:$0x3]  ;;  %v17_v9 = vld [vmem:[%s163_s0 + $0x18] sm:$0xff]  ;;  %v19_v15 = vld [vmem:[%s163_s0 + $0x28] sm:$0xff] }
   0x3   :  { %v14_v4 = vld [vmem:[%s163_s0] sm:$0xff]  ;;  %v20_v16 = vld [vmem:[%s163_s0 + $0x30] sm:$0xff]  ;;  %v21_v17 = vld [vmem:[%s163_s0 + $0x38] sm:$0xff] }
   0x4   :  { %v26_v5 = vsub.s32 0, %v25_v1  ;;  %v30_v6 = vsub.s32 1, %v25_v1  ;;  %v18_v10 = vld [vmem:[%s163_s0 + $0x20] sm:$0xff] }
   0x6   :  { %v27_v11 = vrot.slane %v22_v2, %v26_v5  ;;  %v31_v12 = vrot.slane %v22_v2, %v30_v6  ;;  %v47_v13 = vrot.slane %v42_v3, %v26_v5  ;;  %v51_v14 = vrot.slane %v42_v3, %v30_v6 }
   0x8   :  { %v34_v18 = vmul.f32 %v27_v11, %v14_v4  ;;  %v35_v19 = vmul.f32 %v31_v12, %v15_v7  ;;  %v36_v20 = vmul.f32 %v27_v11, %v16_v8  ;;  %v37_v21 = vmul.f32 %v31_v12, %v17_v9 }
   0x9   :  { %v38_v22 = vmul.f32 %v27_v11, %v18_v10  ;;  %v39_v23 = vmul.f32 %v31_v12, %v19_v15  ;;  %v40_v24 = vmul.f32 %v27_v11, %v20_v16  ;;  %v41_v25 = vmul.f32 %v31_v12, %v21_v17 }
   0xa   :  { %v54_v26 = vadd.f32 %v47_v13, %v34_v18  ;;  %v55_v27 = vadd.f32 %v51_v14, %v35_v19  ;;  %v56_v28 = vadd.f32 %v47_v13, %v36_v20  ;;  %v57_v29 = vadd.f32 %v51_v14, %v37_v21 }
   0xb   :  { %v58_v30 = vadd.f32 %v47_v13, %v38_v22  ;;  %v59_v31 = vadd.f32 %v51_v14, %v39_v23  ;;  %v60_v32 = vadd.f32 %v47_v13, %v40_v24  ;;  %v61_v33 = vadd.f32 %v51_v14, %v41_v25 }
   0xc   :  { %v62_v34 = vmax.f32 %v54_v26, 0.0  ;;  %v63_v35 = vmax.f32 %v55_v27, 0.0  ;;  %v64_v36 = vmax.f32 %v56_v28, 0.0  ;;  %v65_v37 = vmax.f32 %v57_v29, 0.0 }
   0xd   :  { %v66_v38 = vmax.f32 %v58_v30, 0.0  ;;  %v67_v39 = vmax.f32 %v59_v31, 0.0  ;;  %v68_v40 = vmax.f32 %v60_v32, 0.0  ;;  %v69_v41 = vmax.f32 %v61_v33, 0.0 }
   0xe   :  { %70 = vst [vmem:[%s164_s3] sm:$0xff] %v62_v34  ;;  %72 = vst.msk [vmem:[%s164_s3 + $0x8] sm:$0xff] %vm71_vm0, %v63_v35 }
   0xf   :  { %73 = vst [vmem:[%s164_s3 + $0x10] sm:$0xff] %v64_v36  ;;  %74 = vst.msk [vmem:[%s164_s3 + $0x18] sm:$0xff] %vm71_vm0, %v65_v37 }
  0x10   :  { %75 = vst [vmem:[%s164_s3 + $0x20] sm:$0xff] %v66_v38  ;;  %76 = vst.msk [vmem:[%s164_s3 + $0x28] sm:$0xff] %vm71_vm0, %v67_v39 }
  0x11   :  { %77 = vst [vmem:[%s164_s3 + $0x30] sm:$0xff] %v68_v40  ;;  %78 = vst.msk [vmem:[%s164_s3 + $0x38] sm:$0xff] %vm71_vm0, %v69_v41 }

// kernel: stem_v4_res2_forward.38
= control target key start
LH: loop header
LB: loop body
LE: loop exit
PB: predicated region body
PF: predicated region fallthrough
CT: control target
= control target key end

     0   :  { %vm1484_vm0 = vcmask 523264   ;;  %vm18_vm1 = vcmask 1041408   ;;  %vm19_vm2 = vcmask 519170   ;;  %vm1923_vm4 = vcmask 1040384   ;;  %s3397_s1 = inlined_call_operand.vmem [shape: bf16[1728,192], index: 1, kind: input, shape index: {}]   ;;  %s3398_s0 = inlined_call_operand.vmem [shape: bf16[32,1728], index: 0, kind: input, shape index: {}]   ;;  %s3399_s3 = inlined_call_operand.vmem [shape: f32[2,192], index: 3, kind: output, shape index: {1}]   ;;  %s3400_s2 = inlined_call_operand.vmem [shape: f32[32,192], index: 2, kind: output, shape index: {0}]  }
   0x1   :  { %v2222_v0 = vld [vmem:[%s3397_s1 + $0x74] ss:$8 sps:$4 sm:$0xff]   ;;  %v2226_v2 = vld [vmem:[%s3397_s1 + $0x70] ss:$8 sps:$4 sm:$0xff]   ;;  %v2228_v4 = vld [vmem:[%s3397_s1 + $0x64] ss:$8 sps:$4 sm:$0xff]  }
   0x2   :  { %v2224_v1 = vld [vmem:[%s3397_s1 + $0x174] ss:$8 sps:$4 sm:$0xff]   ;;  %1491 = vmatprep.subr.bf16.mxu0 %v2222_v0  ;;  %v2227_v3 = vld [vmem:[%s3397_s1 + $0x170] ss:$8 sps:$4 sm:$0xff]   ;;  %v2230_v5 = vld [vmem:[%s3397_s1 + $0x164] ss:$8 sps:$4 sm:$0xff]  }
   0x3   :  { %1544 = vmatprep.subr.bf16.mxu1 %v2224_v1  ;;  %1492 = vmatpush1.bf16.msra.mxu0 %v2226_v2  ;;  %v2232_v6 = vld [vmem:[%s3397_s1 + $0x60] ss:$8 sps:$4 sm:$0xff]   ;;  %v2234_v8 = vld [vmem:[%s3397_s1 + $0x54] ss:$8 sps:$4 sm:$0xff]   ;;  %v2238_v10 = vld [vmem:[%s3397_s1 + $0x50] ss:$8 sps:$4 sm:$0xff]  }
   0x4   :  { %1545 = vmatpush1.bf16.msra.mxu1 %v2227_v3  ;;  %1493 = vmatprep.subr.bf16.mxu0 %v2228_v4  ;;  %v2233_v7 = vld [vmem:[%s3397_s1 + $0x160] ss:$8 sps:$4 sm:$0xff]   ;;  %v2236_v9 = vld [vmem:[%s3397_s1 + $0x154] ss:$8 sps:$4 sm:$0xff]   ;;  %v2239_v11 = vld [vmem:[%s3397_s1 + $0x150] ss:$8 sps:$4 sm:$0xff]  }
   0x5   :  { %1546 = vmatprep.subr.bf16.mxu1 %v2230_v5  ;;  %v2240_v12 = vld [vmem:[%s3397_s1 + $0x44] ss:$8 sps:$4 sm:$0xff]   ;;  %v2244_v14 = vld [vmem:[%s3397_s1 + $0x40] ss:$8 sps:$4 sm:$0xff]   ;;  %v2246_v16 = vld [vmem:[%s3397_s1 + $0x34] ss:$8 sps:$4 sm:$0xff]  }
   0x6   :  { %v2242_v13 = vld [vmem:[%s3397_s1 + $0x144] ss:$8 sps:$4 sm:$0xff]   ;;  %v2245_v15 = vld [vmem:[%s3397_s1 + $0x140] ss:$8 sps:$4 sm:$0xff]   ;;  %v2248_v17 = vld [vmem:[%s3397_s1 + $0x134] ss:$8 sps:$4 sm:$0xff]  }
   0x7   :  { %1494 = vmatpush1.bf16.msra.mxu0 %v2232_v6  ;;  %v2250_v18 = vld [vmem:[%s3397_s1 + $0x30] ss:$8 sps:$4 sm:$0xff]   ;;  %v2252_v20 = vld [vmem:[%s3397_s1 + $0x24] ss:$8 sps:$4 sm:$0xff]   ;;  %v2256_v22 = vld [vmem:[%s3397_s1 + $0x20] ss:$8 sps:$4 sm:$0xff]  }
   0x8   :  { %1547 = vmatpush1.bf16.msra.mxu1 %v2233_v7  ;;  %1495 = vmatprep.subr.bf16.mxu0 %v2234_v8  ;;  %v2251_v19 = vld [vmem:[%s3397_s1 + $0x130] ss:$8 sps:$4 sm:$0xff]   ;;  %v2254_v21 = vld [vmem:[%s3397_s1 + $0x124] ss:$8 sps:$4 sm:$0xff]   ;;  %v2257_v23 = vld [vmem:[%s3397_s1 + $0x120] ss:$8 sps:$4 sm:$0xff]  }
   0x9   :  { %1548 = vmatprep.subr.bf16.mxu1 %v2236_v9  ;;  %v2258_v24 = vld [vmem:[%s3397_s1 + $0x14] ss:$8 sps:$4 sm:$0xff]   ;;  %v2262_v26 = vld [vmem:[%s3397_s1 + $0x10] ss:$8 sps:$4 sm:$0xff]   ;;  %v2264_v28 = vld [vmem:[%s3397_s1 + $0x4] ss:$8 sps:$4 sm:$0xff]  }
   0xa   :  { %v2260_v25 = vld [vmem:[%s3397_s1 + $0x114] ss:$8 sps:$4 sm:$0xff]   ;;  %v2263_v27 = vld [vmem:[%s3397_s1 + $0x110] ss:$8 sps:$4 sm:$0xff]   ;;  %v2266_v29 = vld [vmem:[%s3397_s1 + $0x104] ss:$8 sps:$4 sm:$0xff]  }
   0xb   :  { %1496 = vmatpush1.bf16.msra.mxu0 %v2238_v10  ;;  %v2268_v30 = vld [vmem:[%s3397_s1] ss:$8 sps:$4 sm:$0xff]   ;;  %v2270_v32 = vld [vmem:[%s3397_s1 + $0xf4] ss:$8 sps:$4 sm:$0xff]   ;;  %v2274_v34 = vld [vmem:[%s3397_s1 + $0xf0] ss:$8 sps:$4 sm:$0xff]  }
   0xc   :  { %1549 = vmatpush1.bf16.msra.mxu1 %v2239_v11  ;;  %1497 = vmatprep.subr.bf16.mxu0 %v2240_v12  ;;  %v2269_v31 = vld [vmem:[%s3397_s1 + $0x100] ss:$8 sps:$4 sm:$0xff]   ;;  %v2272_v33 = vld [vmem:[%s3397_s1 + $0x1f4] ss:$8 sps:$4 sm:$0xff]   ;;  %v2275_v35 = vld [vmem:[%s3397_s1 + $0x1f0] ss:$8 sps:$4 sm:$0xff]  }
   0xd   :  { %1550 = vmatprep.subr.bf16.mxu1 %v2242_v13  ;;  %v2276_v36 = vld [vmem:[%s3397_s1 + $0xe4] ss:$8 sps:$4 sm:$0xff]   ;;  %v2280_v38 = vld [vmem:[%s3397_s1 + $0xe0] ss:$8 sps:$4 sm:$0xff]   ;;  %v2282_v40 = vld [vmem:[%s3397_s1 + $0xd4] ss:$8 sps:$4 sm:$0xff]  }
   0xe   :  { %v2278_v37 = vld [vmem:[%s3397_s1 + $0x1e4] ss:$8 sps:$4 sm:$0xff]   ;;  %v2281_v39 = vld [vmem:[%s3397_s1 + $0x1e0] ss:$8 sps:$4 sm:$0xff]   ;;  %v2284_v41 = vld [vmem:[%s3397_s1 + $0x1d4] ss:$8 sps:$4 sm:$0xff]  }
   0xf   :  { %1498 = vmatpush1.bf16.msra.mxu0 %v2244_v14  ;;  %v2286_v42 = vld [vmem:[%s3397_s1 + $0xd0] ss:$8 sps:$4 sm:$0xff]   ;;  %v2288_v44 = vld [vmem:[%s3397_s1 + $0xc4] ss:$8 sps:$4 sm:$0xff]   ;;  %v2292_v46 = vld [vmem:[%s3397_s1 + $0xc0] ss:$8 sps:$4 sm:$0xff]  }
  0x10   :  { %1551 = vmatpush1.bf16.msra.mxu1 %v2245_v15  ;;  %1499 = vmatprep.subr.bf16.mxu0 %v2246_v16  ;;  %v2287_v43 = vld [vmem:[%s3397_s1 + $0x1d0] ss:$8 sps:$4 sm:$0xff]   ;;  %v2290_v45 = vld [vmem:[%s3397_s1 + $0x1c4] ss:$8 sps:$4 sm:$0xff]   ;;  %v2293_v47 = vld [vmem:[%s3397_s1 + $0x1c0] ss:$8 sps:$4 sm:$0xff]  }
  0x11   :  { %1552 = vmatprep.subr.bf16.mxu1 %v2248_v17  ;;  %v2294_v48 = vld [vmem:[%s3397_s1 + $0xb4] ss:$8 sps:$4 sm:$0xff]   ;;  %v2323_v51 = vld [vmem:[%s3398_s0 + $0xc] ss:$56 sps:$4 sm:$0xff]   ;;  %v2298_v52 = vld [vmem:[%s3397_s1 + $0xb0] ss:$8 sps:$4 sm:$0xff]  }
  0x12   :  { %v2320_v49 = vld [vmem:[%s3398_s0 + $0x4] ss:$56 sps:$4 sm:$0xff]   ;;  %v2299_v53 = vld [vmem:[%s3397_s1 + $0x1b0] ss:$8 sps:$4 sm:$0xff]   ;;  %1576 = vmatprep.mubr.bf16.mxu1 %v2323_v51  ;;  %v2304_v56 = vld [vmem:[%s3397_s1 + $0xa0] ss:$8 sps:$4 sm:$0xff]  }
  0x13   :  { %1500 = vmatpush1.bf16.msra.mxu0 %v2250_v18  ;;  %v2296_v50 = vld [vmem:[%s3397_s1 + $0x1b4] ss:$8 sps:$4 sm:$0xff]   ;;  %1523 = vmatprep.mubr.bf16.mxu0 %v2320_v49  ;;  %v2300_v54 = vld [vmem:[%s3397_s1 + $0xa4] ss:$8 sps:$4 sm:$0xff]   ;;  %v2305_v57 = vld [vmem:[%s3397_s1 + $0x1a0] ss:$8 sps:$4 sm:$0xff]  }
  0x14   :  { %1553 = vmatpush1.bf16.msra.mxu1 %v2251_v19  ;;  %1501 = vmatprep.subr.bf16.mxu0 %v2252_v20  ;;  %v2302_v55 = vld [vmem:[%s3397_s1 + $0x1a4] ss:$8 sps:$4 sm:$0xff]   ;;  %v2306_v58 = vld [vmem:[%s3397_s1 + $0x94] ss:$8 sps:$4 sm:$0xff]   ;;  %v2310_v60 = vld [vmem:[%s3397_s1 + $0x90] ss:$8 sps:$4 sm:$0xff]  }
  0x15   :  { %1554 = vmatprep.subr.bf16.mxu1 %v2254_v21  ;;  %v2308_v59 = vld [vmem:[%s3397_s1 + $0x194] ss:$8 sps:$4 sm:$0xff]   ;;  %v2311_v61 = vld [vmem:[%s3397_s1 + $0x190] ss:$8 sps:$4 sm:$0xff]   ;;  %v2312_v62 = vld [vmem:[%s3397_s1 + $0x84] ss:$8 sps:$4 sm:$0xff]  }
  0x16   :  { %v2314_v63 = vld [vmem:[%s3397_s1 + $0x184] ss:$8 sps:$4 sm:$0xff]   ;;  %v2316_v0 = vld [vmem:[%s3397_s1 + $0x80] ss:$8 sps:$4 sm:$0xff]   ;;  %v2326_v2 = vld [vmem:[%s3397_s1 + $0x274] ss:$8 sps:$4 sm:$0xff]  }
  0x17   :  { %1502 = vmatpush1.bf16.msra.mxu0 %v2256_v22  ;;  %v2317_v1 = vld [vmem:[%s3397_s1 + $0x180] ss:$8 sps:$4 sm:$0xff]   ;;  %v2329_v3 = vld [vmem:[%s3397_s1 + $0x374] ss:$8 sps:$4 sm:$0xff]   ;;  %v2324_v6 = vld [vmem:[%s3397_s1 + $0x270] ss:$8 sps:$4 sm:$0xff]  }
  0x18   :  { %1555 = vmatpush1.bf16.msra.mxu1 %v2257_v23  ;;  %1503 = vmatprep.subr.bf16.mxu0 %v2258_v24  ;;  %v2318_v4 = vld [vmem:[%s3398_s0] ss:$56 sps:$4 sm:$0xff]   ;;  %v2332_v8 = vld [vmem:[%s3397_s1 + $0x264] ss:$8 sps:$4 sm:$0xff]   ;;  %v2338_v12 = vld [vmem:[%s3397_s1 + $0x254] ss:$8 sps:$4 sm:$0xff]  }
  0x19   :  { %1556 = vmatprep.subr.bf16.mxu1 %v2260_v25  ;;  %v2321_v5 = vld [vmem:[%s3398_s0 + $0x8] ss:$56 sps:$4 sm:$0xff]   ;;  %v2327_v7 = vld [vmem:[%s3397_s1 + $0x370] ss:$8 sps:$4 sm:$0xff]   ;;  %v2335_v9 = vld [vmem:[%s3397_s1 + $0x364] ss:$8 sps:$4 sm:$0xff]  }
  0x1a   :  { %v2330_v10 = vld [vmem:[%s3397_s1 + $0x260] ss:$8 sps:$4 sm:$0xff]   ;;  %v2341_v13 = vld [vmem:[%s3397_s1 + $0x354] ss:$8 sps:$4 sm:$0xff]   ;;  %v2336_v14 = vld [vmem:[%s3397_s1 + $0x250] ss:$8 sps:$4 sm:$0xff]  }
  0x1b   :  { %1504 = vmatpush1.bf16.msra.mxu0 %v2262_v26  ;;  %v2333_v11 = vld [vmem:[%s3397_s1 + $0x360] ss:$8 sps:$4 sm:$0xff]   ;;  %v2339_v15 = vld [vmem:[%s3397_s1 + $0x350] ss:$8 sps:$4 sm:$0xff]   ;;  %v2344_v16 = vld [vmem:[%s3397_s1 + $0x244] ss:$8 sps:$4 sm:$0xff]  }
  0x1c   :  { %1557 = vmatpush1.bf16.msra.mxu1 %v2263_v27  ;;  %1505 = vmatprep.subr.bf16.mxu0 %v2264_v28  ;;  %v2347_v17 = vld [vmem:[%s3397_s1 + $0x344] ss:$8 sps:$4 sm:$0xff]   ;;  %v2342_v18 = vld [vmem:[%s3397_s1 + $0x240] ss:$8 sps:$4 sm:$0xff]   ;;  %v2350_v20 = vld [vmem:[%s3397_s1 + $0x234] ss:$8 sps:$4 sm:$0xff]  }
  0x1d   :  { %1558 = vmatprep.subr.bf16.mxu1 %v2266_v29  ;;  %v2345_v19 = vld [vmem:[%s3397_s1 + $0x340] ss:$8 sps:$4 sm:$0xff]   ;;  %v2353_v21 = vld [vmem:[%s3397_s1 + $0x334] ss:$8 sps:$4 sm:$0xff]   ;;  %v2348_v22 = vld [vmem:[%s3397_s1 + $0x230] ss:$8 sps:$4 sm:$0xff]  }
  0x1e   :  { %v2351_v23 = vld [vmem:[%s3397_s1 + $0x330] ss:$8 sps:$4 sm:$0xff]   ;;  %v2356_v24 = vld [vmem:[%s3397_s1 + $0x224] ss:$8 sps:$4 sm:$0xff]   ;;  %v2404_v27 = vld [vmem:[%s3398_s0 + $0x7c] ss:$56 sps:$4 sm:$0xff]  }
  0x1f   :  { %1506 = vmatpush1.bf16.msra.mxu0 %v2268_v30  ;;  %v2359_v25 = vld [vmem:[%s3397_s1 + $0x324] ss:$8 sps:$4 sm:$0xff]   ;;  %v2406_v28 = vld [vmem:[%s3398_s0 + $0x70] ss:$56 sps:$4 sm:$0xff]   ;;  %v2389_v51 = vld [vmem:[%s3397_s1 + $0x3d4] ss:$8 sps:$4 sm:$0xff]  }
  0x20   :  { %1559 = vmatpush1.bf16.msra.mxu1 %v2269_v31  ;;  %1507 = vmatprep.subr.bf16.mxu0 %v2270_v32  ;;  %v2402_v26 = vld [vmem:[%s3398_s0 + $0x74] ss:$56 sps:$4 sm:$0xff]   ;;  %v2407_v29 = vld [vmem:[%s3398_s0 + $0x78] ss:$56 sps:$4 sm:$0xff]   ;;  %v2354_v30 = vld [vmem:[%s3397_s1 + $0x220] ss:$8 sps:$4 sm:$0xff]  }
  0x21   :  { %1560 = vmatprep.subr.bf16.mxu1 %v2272_v33  ;;  %v2357_v31 = vld [vmem:[%s3397_s1 + $0x320] ss:$8 sps:$4 sm:$0xff]   ;;  %v2362_v32 = vld [vmem:[%s3397_s1 + $0x214] ss:$8 sps:$4 sm:$0xff]   ;;  %vm3344_vm3 = vmor %vm19_vm2, %vm18_vm1 }
  0x22   :  { %v2365_v33 = vld [vmem:[%s3397_s1 + $0x314] ss:$8 sps:$4 sm:$0xff]   ;;  %v2381_v49 = vld [vmem:[%s3397_s1 + $0x3e0] ss:$8 sps:$4 sm:$0xff]  }
  0x23   :  { %1508 = vmatpush2.bf16.msra.mxu0 %v2274_v34  ;;  %v2360_v34 = vld [vmem:[%s3397_s1 + $0x210] ss:$8 sps:$4 sm:$0xff]  }
  0x24   :  { %1561 = vmatpush2.bf16.msra.mxu1 %v2275_v35  ;;  %1509 = vmatprep.subr.bf16.mxu0 %v2276_v36  ;;  %v2363_v35 = vld [vmem:[%s3397_s1 + $0x310] ss:$8 sps:$4 sm:$0xff]   ;;  %v2368_v36 = vld [vmem:[%s3397_s1 + $0x204] ss:$8 sps:$4 sm:$0xff]  }
  0x25   :  { %1562 = vmatprep.subr.bf16.mxu1 %v2278_v37  ;;  %v2371_v37 = vld [vmem:[%s3397_s1 + $0x304] ss:$8 sps:$4 sm:$0xff]  }
  0x27   :  { %1510 = vmatpush2.bf16.msra.mxu0 %v2280_v38  ;;  %v2366_v38 = vld [vmem:[%s3397_s1 + $0x200] ss:$8 sps:$4 sm:$0xff]  }
  0x28   :  { %1563 = vmatpush2.bf16.msra.mxu1 %v2281_v39  ;;  %1511 = vmatprep.subr.bf16.mxu0 %v2282_v40  ;;  %v2369_v39 = vld [vmem:[%s3397_s1 + $0x300] ss:$8 sps:$4 sm:$0xff]   ;;  %v2374_v40 = vld [vmem:[%s3397_s1 + $0x2f4] ss:$8 sps:$4 sm:$0xff]  }
  0x29   :  { %1564 = vmatprep.subr.bf16.mxu1 %v2284_v41  ;;  %v2428_v41 = vld [vmem:[%s3398_s0 + $0x14] ss:$56 sps:$4 sm:$0xff]  }
  0x2b   :  { %1512 = vmatpush2.bf16.msra.mxu0 %v2286_v42  ;;  %v2377_v42 = vld [vmem:[%s3397_s1 + $0x3f4] ss:$8 sps:$4 sm:$0xff]  }
  0x2c   :  { %1565 = vmatpush2.bf16.msra.mxu1 %v2287_v43  ;;  %1513 = vmatprep.subr.bf16.mxu0 %v2288_v44  ;;  %v2431_v43 = vld [vmem:[%s3398_s0 + $0x1c] ss:$56 sps:$4 sm:$0xff]   ;;  %v2372_v44 = vld [vmem:[%s3397_s1 + $0x2f0] ss:$8 sps:$4 sm:$0xff]  }
  0x2d   :  { %1566 = vmatprep.subr.bf16.mxu1 %v2290_v45  ;;  %v2375_v45 = vld [vmem:[%s3397_s1 + $0x3f0] ss:$8 sps:$4 sm:$0xff]  }
  0x2f   :  { %1514 = vmatpush2.bf16.msra.mxu0 %v2292_v46  ;;  %v2380_v46 = vld [vmem:[%s3397_s1 + $0x2e4] ss:$8 sps:$4 sm:$0xff]  }
  0x30   :  { %1567 = vmatpush2.bf16.msra.mxu1 %v2293_v47  ;;  %1515 = vmatprep.subr.bf16.mxu0 %v2294_v48  ;;  %v2383_v47 = vld [vmem:[%s3397_s1 + $0x3e4] ss:$8 sps:$4 sm:$0xff]   ;;  %v2378_v48 = vld [vmem:[%s3397_s1 + $0x2e0] ss:$8 sps:$4 sm:$0xff]  }
  0x31   :  { %1568 = vmatprep.subr.bf16.mxu1 %v2296_v50  ;;  %v2386_v50 = vld [vmem:[%s3397_s1 + $0x2d4] ss:$8 sps:$4 sm:$0xff]  }
  0x33   :  { %1516 = vmatpush2.bf16.msra.mxu0 %v2298_v52  ;;  %v2384_v52 = vld [vmem:[%s3397_s1 + $0x2d0] ss:$8 sps:$4 sm:$0xff]  }
  0x34   :  { %1569 = vmatpush2.bf16.msra.mxu1 %v2299_v53  ;;  %1517 = vmatprep.subr.bf16.mxu0 %v2300_v54  ;;  %v2387_v53 = vld [vmem:[%s3397_s1 + $0x3d0] ss:$8 sps:$4 sm:$0xff]   ;;  %v2392_v54 = vld [vmem:[%s3397_s1 + $0x2c4] ss:$8 sps:$4 sm:$0xff]  }
  0x35   :  { %1570 = vmatprep.subr.bf16.mxu1 %v2302_v55  ;;  %v2395_v55 = vld [vmem:[%s3397_s1 + $0x3c4] ss:$8 sps:$4 sm:$0xff]  }
  0x37   :  { %1518 = vmatpush2.bf16.msra.mxu0 %v2304_v56  ;;  %v2390_v56 = vld [vmem:[%s3397_s1 + $0x2c0] ss:$8 sps:$4 sm:$0xff]  }
  0x38   :  { %1571 = vmatpush2.bf16.msra.mxu1 %v2305_v57  ;;  %1519 = vmatprep.subr.bf16.mxu0 %v2306_v58  ;;  %v2393_v57 = vld [vmem:[%s3397_s1 + $0x3c0] ss:$8 sps:$4 sm:$0xff]   ;;  %v2398_v58 = vld [vmem:[%s3397_s1 + $0x2b4] ss:$8 sps:$4 sm:$0xff]  }
  0x39   :  { %1572 = vmatprep.subr.bf16.mxu1 %v2308_v59  ;;  %v2401_v59 = vld [vmem:[%s3397_s1 + $0x3b4] ss:$8 sps:$4 sm:$0xff]  }
  0x3b   :  { %1520 = vmatpush2.bf16.msra.mxu0 %v2310_v60  ;;  %v2396_v60 = vld [vmem:[%s3397_s1 + $0x2b0] ss:$8 sps:$4 sm:$0xff]  }
  0x3c   :  { %1573 = vmatpush2.bf16.msra.mxu1 %v2311_v61  ;;  %1521 = vmatprep.subr.bf16.mxu0 %v2312_v62  ;;  %v2399_v61 = vld [vmem:[%s3397_s1 + $0x3b0] ss:$8 sps:$4 sm:$0xff]   ;;  %v2410_v62 = vld [vmem:[%s3397_s1 + $0x2a4] ss:$8 sps:$4 sm:$0xff]  }
  0x3d   :  { %1574 = vmatprep.subr.bf16.mxu1 %v2314_v63  ;;  %v2413_v63 = vld [vmem:[%s3397_s1 + $0x3a4] ss:$8 sps:$4 sm:$0xff]  }
  0x3f   :  { %1522 = vmatpush2.bf16.msra.mxu0 %v2316_v0  ;;  %v2408_v0 = vld [vmem:[%s3397_s1 + $0x2a0] ss:$8 sps:$4 sm:$0xff]  }
  0x40   :  { %1575 = vmatpush2.bf16.msra.mxu1 %v2317_v1  ;;  %1597 = vmatprep.subr.bf16.mxu0 %v2326_v2  ;;  %v2411_v1 = vld [vmem:[%s3397_s1 + $0x3a0] ss:$8 sps:$4 sm:$0xff]   ;;  %v2416_v2 = vld [vmem:[%s3397_s1 + $0x294] ss:$8 sps:$4 sm:$0xff]  }
  0x41   :  { %1650 = vmatprep.subr.bf16.mxu1 %v2329_v3  ;;  %v2419_v3 = vld [vmem:[%s3397_s1 + $0x394] ss:$8 sps:$4 sm:$0xff]  }
  0x42   :  { %1524 = vmatmul.mubr.bf16.vlgmr.msra.gmra.mxu0 %v2318_v4  ;;  %v2414_v4 = vld [vmem:[%s3397_s1 + $0x290] ss:$8 sps:$4 sm:$0xff]  }
  0x43   :  { %1577 = vmatmul.mubr.bf16.vlgmr.msra.gmra.mxu1 %v2321_v5  ;;  %1598 = vmatpush1.bf16.msra.mxu0 %v2324_v6  ;;  %v2417_v5 = vld [vmem:[%s3397_s1 + $0x390] ss:$8 sps:$4 sm:$0xff]   ;;  %v2422_v6 = vld [vmem:[%s3397_s1 + $0x284] ss:$8 sps:$4 sm:$0xff]  }
  0x44   :  { %1651 = vmatpush1.bf16.msra.mxu1 %v2327_v7  ;;  %1599 = vmatprep.subr.bf16.mxu0 %v2332_v8  ;;  %v2425_v7 = vld [vmem:[%s3397_s1 + $0x384] ss:$8 sps:$4 sm:$0xff]   ;;  %v2420_v8 = vld [vmem:[%s3397_s1 + $0x280] ss:$8 sps:$4 sm:$0xff]  }
  0x45   :  { %1652 = vmatprep.subr.bf16.mxu1 %v2335_v9  ;;  %1533 = vmatprep.mubr.bf16.mxu0 %v2402_v26  ;;  %v2423_v9 = vld [vmem:[%s3397_s1 + $0x380] ss:$8 sps:$4 sm:$0xff]   ;;  %v2450_v26 = vld [vmem:[%s3397_s1 + $0x550] ss:$8 sps:$4 sm:$0xff]  }
  0x46   :  { %1586 = vmatprep.mubr.bf16.mxu1 %v2404_v27  ;;  %v2455_v27 = vld [vmem:[%s3398_s0 + $0x88] ss:$56 sps:$4 sm:$0xff]  }
  0x47   :  { %1600 = vmatpush1.bf16.msra.mxu0 %v2330_v10  ;;  %v2434_v10 = vld [vmem:[%s3397_s1 + $0x474] ss:$8 sps:$4 sm:$0xff]  }
  0x48   :  { %1653 = vmatpush1.bf16.msra.mxu1 %v2333_v11  ;;  %1601 = vmatprep.subr.bf16.mxu0 %v2338_v12  ;;  %v2437_v11 = vld [vmem:[%s3397_s1 + $0x574] ss:$8 sps:$4 sm:$0xff]   ;;  %v2426_v12 = vld [vmem:[%s3398_s0 + $0x10] ss:$56 sps:$4 sm:$0xff]  }
  0x49   :  { %1654 = vmatprep.subr.bf16.mxu1 %v2341_v13  ;;  %v2429_v13 = vld [vmem:[%s3398_s0 + $0x18] ss:$56 sps:$4 sm:$0xff]  }
  0x4a   :  { %1534 = vmatmul.mubr.bf16.gmra.mxu0 %v2406_v28  ;;  %v2458_v28 = vld [vmem:[%s3397_s1 + $0x444] ss:$8 sps:$4 sm:$0xff]  }
  0x4b   :  { %1602 = vmatpush1.bf16.msra.mxu0 %v2336_v14  ;;  %1587 = vmatmul.mubr.bf16.gmra.mxu1 %v2407_v29  ;;  %v2432_v14 = vld [vmem:[%s3397_s1 + $0x470] ss:$8 sps:$4 sm:$0xff]   ;;  %v2461_v29 = vld [vmem:[%s3397_s1 + $0x544] ss:$8 sps:$4 sm:$0xff]  }
  0x4c   :  { %1655 = vmatpush1.bf16.msra.mxu1 %v2339_v15  ;;  %1603 = vmatprep.subr.bf16.mxu0 %v2344_v16  ;;  %v2435_v15 = vld [vmem:[%s3397_s1 + $0x570] ss:$8 sps:$4 sm:$0xff]   ;;  %v2440_v16 = vld [vmem:[%s3397_s1 + $0x464] ss:$8 sps:$4 sm:$0xff]  }
  0x4d   :  { %1656 = vmatprep.subr.bf16.mxu1 %v2347_v17  ;;  %1629 = vmatprep.mubr.bf16.mxu0 %v2428_v41  ;;  %v2443_v17 = vld [vmem:[%s3397_s1 + $0x564] ss:$8 sps:$4 sm:$0xff]   ;;  %v2471_v41 = vld [vmem:[%s3397_s1 + $0x520] ss:$8 sps:$4 sm:$0xff]  }
  0x4e   :  { %1682 = vmatprep.mubr.bf16.mxu1 %v2431_v43  ;;  %v2479_v43 = vld [vmem:[%s3397_s1 + $0x514] ss:$8 sps:$4 sm:$0xff]  }
  0x4f   :  { %1604 = vmatpush1.bf16.msra.mxu0 %v2342_v18  ;;  %v2444_v18 = vld [vmem:[%s3398_s0 + $0x84] ss:$56 sps:$4 sm:$0xff]  }
  0x50   :  { %1657 = vmatpush1.bf16.msra.mxu1 %v2345_v19  ;;  %1605 = vmatprep.subr.bf16.mxu0 %v2350_v20  ;;  %v2453_v19 = vld [vmem:[%s3398_s0 + $0x8c] ss:$56 sps:$4 sm:$0xff]   ;;  %v2438_v20 = vld [vmem:[%s3397_s1 + $0x460] ss:$8 sps:$4 sm:$0xff]  }
  0x51   :  { %1658 = vmatprep.subr.bf16.mxu1 %v2353_v21  ;;  %v2441_v21 = vld [vmem:[%s3397_s1 + $0x560] ss:$8 sps:$4 sm:$0xff]  }
  0x53   :  { %1606 = vmatpush1.bf16.msra.mxu0 %v2348_v22  ;;  %v2449_v22 = vld [vmem:[%s3397_s1 + $0x454] ss:$8 sps:$4 sm:$0xff]  }
  0x54   :  { %1659 = vmatpush1.bf16.msra.mxu1 %v2351_v23  ;;  %1607 = vmatprep.subr.bf16.mxu0 %v2356_v24  ;;  %v2452_v23 = vld [vmem:[%s3397_s1 + $0x554] ss:$8 sps:$4 sm:$0xff]   ;;  %v2446_v24 = vld [vmem:[%s3398_s0 + $0x80] ss:$56 sps:$4 sm:$0xff]  }
  0x55   :  { %1660 = vmatprep.subr.bf16.mxu1 %v2359_v25  ;;  %v2447_v25 = vld [vmem:[%s3397_s1 + $0x450] ss:$8 sps:$4 sm:$0xff]  }
  0x57   :  { %1608 = vmatpush1.bf16.msra.mxu0 %v2354_v30  ;;  %v2456_v30 = vld [vmem:[%s3397_s1 + $0x440] ss:$8 sps:$4 sm:$0xff]  }
  0x58   :  { %1661 = vmatpush1.bf16.msra.mxu1 %v2357_v31  ;;  %1609 = vmatprep.subr.bf16.mxu0 %v2362_v32  ;;  %v2459_v31 = vld [vmem:[%s3397_s1 + $0x540] ss:$8 sps:$4 sm:$0xff]   ;;  %v2464_v32 = vld [vmem:[%s3397_s1 + $0x434] ss:$8 sps:$4 sm:$0xff]  }
  0x59   :  { %1662 = vmatprep.subr.bf16.mxu1 %v2365_v33  ;;  %v2536_v33 = vld [vmem:[%s3398_s0 + $0x24] ss:$56 sps:$4 sm:$0xff]  }
  0x5b   :  { %1610 = vmatpush1.bf16.msra.mxu0 %v2360_v34  ;;  %v2467_v34 = vld [vmem:[%s3397_s1 + $0x534] ss:$8 sps:$4 sm:$0xff]  }
  0x5c   :  { %1663 = vmatpush1.bf16.msra.mxu1 %v2363_v35  ;;  %1611 = vmatprep.subr.bf16.mxu0 %v2368_v36  ;;  %v2539_v35 = vld [vmem:[%s3398_s0 + $0x2c] ss:$56 sps:$4 sm:$0xff]   ;;  %v2462_v36 = vld [vmem:[%s3397_s1 + $0x430] ss:$8 sps:$4 sm:$0xff]  }
  0x5d   :  { %1664 = vmatprep.subr.bf16.mxu1 %v2371_v37  ;;  %v2465_v37 = vld [vmem:[%s3397_s1 + $0x530] ss:$8 sps:$4 sm:$0xff]  }
  0x5f   :  { %1612 = vmatpush1.bf16.msra.mxu0 %v2366_v38  ;;  %v2470_v38 = vld [vmem:[%s3397_s1 + $0x424] ss:$8 sps:$4 sm:$0xff]  }
  0x60   :  { %1665 = vmatpush1.bf16.msra.mxu1 %v2369_v39  ;;  %1613 = vmatprep.subr.bf16.mxu0 %v2374_v40  ;;  %v2473_v39 = vld [vmem:[%s3397_s1 + $0x524] ss:$8 sps:$4 sm:$0xff]   ;;  %v2468_v40 = vld [vmem:[%s3397_s1 + $0x420] ss:$8 sps:$4 sm:$0xff]  }
  0x61   :  { %1666 = vmatprep.subr.bf16.mxu1 %v2377_v42  ;;  %v2476_v42 = vld [vmem:[%s3397_s1 + $0x414] ss:$8 sps:$4 sm:$0xff]  }
  0x63   :  { %1614 = vmatpush2.bf16.msra.mxu0 %v2372_v44  ;;  %v2474_v44 = vld [vmem:[%s3397_s1 + $0x410] ss:$8 sps:$4 sm:$0xff]  }
  0x64   :  { %1667 = vmatpush2.bf16.msra.mxu1 %v2375_v45  ;;  %1615 = vmatprep.subr.bf16.mxu0 %v2380_v46  ;;  %v2477_v45 = vld [vmem:[%s3397_s1 + $0x510] ss:$8 sps:$4 sm:$0xff]   ;;  %v2482_v46 = vld [vmem:[%s3397_s1 + $0x404] ss:$8 sps:$4 sm:$0xff]  }
  0x65   :  { %1668 = vmatprep.subr.bf16.mxu1 %v2383_v47  ;;  %v2485_v47 = vld [vmem:[%s3397_s1 + $0x504] ss:$8 sps:$4 sm:$0xff]  }
  0x67   :  { %1616 = vmatpush2.bf16.msra.mxu0 %v2378_v48  ;;  %v2480_v48 = vld [vmem:[%s3397_s1 + $0x400] ss:$8 sps:$4 sm:$0xff]  }
  0x68   :  { %1669 = vmatpush2.bf16.msra.mxu1 %v2381_v49  ;;  %1617 = vmatprep.subr.bf16.mxu0 %v2386_v50  ;;  %v2483_v49 = vld [vmem:[%s3397_s1 + $0x500] ss:$8 sps:$4 sm:$0xff]   ;;  %v2488_v50 = vld [vmem:[%s3397_s1 + $0x4f4] ss:$8 sps:$4 sm:$0xff]  }
  0x69   :  { %1670 = vmatprep.subr.bf16.mxu1 %v2389_v51  ;;  %v2491_v51 = vld [vmem:[%s3397_s1 + $0x5f4] ss:$8 sps:$4 sm:$0xff]  }
  0x6b   :  { %1618 = vmatpush2.bf16.msra.mxu0 %v2384_v52  ;;  %v2486_v52 = vld [vmem:[%s3397_s1 + $0x4f0] ss:$8 sps:$4 sm:$0xff]  }
  0x6c   :  { %1671 = vmatpush2.bf16.msra.mxu1 %v2387_v53  ;;  %1619 = vmatprep.subr.bf16.mxu0 %v2392_v54  ;;  %v2489_v53 = vld [vmem:[%s3397_s1 + $0x5f0] ss:$8 sps:$4 sm:$0xff]   ;;  %v2494_v54 = vld [vmem:[%s3397_s1 + $0x4e4] ss:$8 sps:$4 sm:$0xff]  }
  0x6d   :  { %1672 = vmatprep.subr.bf16.mxu1 %v2395_v55  ;;  %v2497_v55 = vld [vmem:[%s3397_s1 + $0x5e4] ss:$8 sps:$4 sm:$0xff]  }
  0x6f   :  { %1620 = vmatpush2.bf16.msra.mxu0 %v2390_v56  ;;  %v2492_v56 = vld [vmem:[%s3397_s1 + $0x4e0] ss:$8 sps:$4 sm:$0xff]  }
  0x70   :  { %1673 = vmatpush2.bf16.msra.mxu1 %v2393_v57  ;;  %1621 = vmatprep.subr.bf16.mxu0 %v2398_v58  ;;  %v2495_v57 = vld [vmem:[%s3397_s1 + $0x5e0] ss:$8 sps:$4 sm:$0xff]   ;;  %v2500_v58 = vld [vmem:[%s3397_s1 + $0x4d4] ss:$8 sps:$4 sm:$0xff]  }
  0x71   :  { %1674 = vmatprep.subr.bf16.mxu1 %v2401_v59  ;;  %v2503_v59 = vld [vmem:[%s3397_s1 + $0x5d4] ss:$8 sps:$4 sm:$0xff]  }
  0x73   :  { %1622 = vmatpush2.bf16.msra.mxu0 %v2396_v60  ;;  %v2498_v60 = vld [vmem:[%s3397_s1 + $0x4d0] ss:$8 sps:$4 sm:$0xff]  }
  0x74   :  { %1675 = vmatpush2.bf16.msra.mxu1 %v2399_v61  ;;  %1623 = vmatprep.subr.bf16.mxu0 %v2410_v62  ;;  %v2501_v61 = vld [vmem:[%s3397_s1 + $0x5d0] ss:$8 sps:$4 sm:$0xff]   ;;  %v2506_v62 = vld [vmem:[%s3397_s1 + $0x4c4] ss:$8 sps:$4 sm:$0xff]  }
  0x75   :  { %1676 = vmatprep.subr.bf16.mxu1 %v2413_v63  ;;  %v2509_v63 = vld [vmem:[%s3397_s1 + $0x5c4] ss:$8 sps:$4 sm:$0xff]  }
  0x77   :  { %1624 = vmatpush2.bf16.msra.mxu0 %v2408_v0  ;;  %v2504_v0 = vld [vmem:[%s3397_s1 + $0x4c0] ss:$8 sps:$4 sm:$0xff]  }
  0x78   :  { %1677 = vmatpush2.bf16.msra.mxu1 %v2411_v1  ;;  %1625 = vmatprep.subr.bf16.mxu0 %v2416_v2  ;;  %v2507_v1 = vld [vmem:[%s3397_s1 + $0x5c0] ss:$8 sps:$4 sm:$0xff]   ;;  %v2512_v2 = vld [vmem:[%s3397_s1 + $0x4b4] ss:$8 sps:$4 sm:$0xff]  }
  0x79   :  { %1678 = vmatprep.subr.bf16.mxu1 %v2419_v3  ;;  %v2515_v3 = vld [vmem:[%s3397_s1 + $0x5b4] ss:$8 sps:$4 sm:$0xff]  }
  0x7b   :  { %1626 = vmatpush2.bf16.msra.mxu0 %v2414_v4  ;;  %v2510_v4 = vld [vmem:[%s3397_s1 + $0x4b0] ss:$8 sps:$4 sm:$0xff]  }
  0x7c   :  { %1679 = vmatpush2.bf16.msra.mxu1 %v2417_v5  ;;  %1627 = vmatprep.subr.bf16.mxu0 %v2422_v6  ;;  %v2513_v5 = vld [vmem:[%s3397_s1 + $0x5b0] ss:$8 sps:$4 sm:$0xff]   ;;  %v2518_v6 = vld [vmem:[%s3397_s1 + $0x4a4] ss:$8 sps:$4 sm:$0xff]  }
  0x7d   :  { %1680 = vmatprep.subr.bf16.mxu1 %v2425_v7  ;;  %v2521_v7 = vld [vmem:[%s3397_s1 + $0x5a4] ss:$8 sps:$4 sm:$0xff]  }
  0x7f   :  { %1628 = vmatpush2.bf16.msra.mxu0 %v2420_v8  ;;  %v2516_v8 = vld [vmem:[%s3397_s1 + $0x4a0] ss:$8 sps:$4 sm:$0xff]  }
  0x80   :  { %1681 = vmatpush2.bf16.msra.mxu1 %v2423_v9  ;;  %1703 = vmatprep.subr.bf16.mxu0 %v2434_v10  ;;  %v2519_v9 = vld [vmem:[%s3397_s1 + $0x5a0] ss:$8 sps:$4 sm:$0xff]   ;;  %v2524_v10 = vld [vmem:[%s3397_s1 + $0x494] ss:$8 sps:$4 sm:$0xff]  }
  0x81   :  { %1756 = vmatprep.subr.bf16.mxu1 %v2437_v11  ;;  %v2527_v11 = vld [vmem:[%s3397_s1 + $0x594] ss:$8 sps:$4 sm:$0xff]  }
  0x82   :  { %1630 = vmatmul.mubr.bf16.vlgmr.msra.gmra.mxu0 %v2426_v12  ;;  %v2522_v12 = vld [vmem:[%s3397_s1 + $0x490] ss:$8 sps:$4 sm:$0xff]  }
  0x83   :  { %1683 = vmatmul.mubr.bf16.vlgmr.msra.gmra.mxu1 %v2429_v13  ;;  %1704 = vmatpush1.bf16.msra.mxu0 %v2432_v14  ;;  %v2525_v13 = vld [vmem:[%s3397_s1 + $0x590] ss:$8 sps:$4 sm:$0xff]   ;;  %v2530_v14 = vld [vmem:[%s3397_s1 + $0x484] ss:$8 sps:$4 sm:$0xff]  }
  0x84   :  { %1757 = vmatpush1.bf16.msra.mxu1 %v2435_v15  ;;  %1705 = vmatprep.subr.bf16.mxu0 %v2440_v16  ;;  %v2533_v15 = vld [vmem:[%s3397_s1 + $0x584] ss:$8 sps:$4 sm:$0xff]   ;;  %v2528_v16 = vld [vmem:[%s3397_s1 + $0x480] ss:$8 sps:$4 sm:$0xff]  }
  0x85   :  { %1758 = vmatprep.subr.bf16.mxu1 %v2443_v17  ;;  %1639 = vmatprep.mubr.bf16.mxu0 %v2444_v18  ;;  %v2531_v17 = vld [vmem:[%s3397_s1 + $0x580] ss:$8 sps:$4 sm:$0xff]   ;;  %v2542_v18 = vld [vmem:[%s3397_s1 + $0x674] ss:$8 sps:$4 sm:$0xff]  }
  0x86   :  { %1692 = vmatprep.mubr.bf16.mxu1 %v2453_v19  ;;  %v2534_v19 = vld [vmem:[%s3398_s0 + $0x20] ss:$56 sps:$4 sm:$0xff]  }
  0x87   :  { %1706 = vmatpush1.bf16.msra.mxu0 %v2438_v20  ;;  %v2537_v20 = vld [vmem:[%s3398_s0 + $0x28] ss:$56 sps:$4 sm:$0xff]  }
  0x88   :  { %1759 = vmatpush1.bf16.msra.mxu1 %v2441_v21  ;;  %1707 = vmatprep.subr.bf16.mxu0 %v2449_v22  ;;  %v2540_v21 = vld [vmem:[%s3397_s1 + $0x670] ss:$8 sps:$4 sm:$0xff]   ;;  %v2545_v22 = vld [vmem:[%s3397_s1 + $0x664] ss:$8 sps:$4 sm:$0xff]  }
  0x89   :  { %1760 = vmatprep.subr.bf16.mxu1 %v2452_v23  ;;  %v2546_v23 = vld [vmem:[%s3398_s0 + $0x94] ss:$56 sps:$4 sm:$0xff]  }
  0x8a   :  { %1640 = vmatmul.mubr.bf16.gmra.mxu0 %v2446_v24  ;;  %v2552_v24 = vld [vmem:[%s3398_s0 + $0x9c] ss:$56 sps:$4 sm:$0xff]  }
  0x8b   :  { %1693 = vmatmul.mubr.bf16.gmra.mxu1 %v2455_v27  ;;  %1708 = vmatpush1.bf16.msra.mxu0 %v2447_v25  ;;  %v2543_v25 = vld [vmem:[%s3397_s1 + $0x660] ss:$8 sps:$4 sm:$0xff]  }
  0x8c   :  { %1761 = vmatpush1.bf16.msra.mxu1 %v2450_v26  ;;  %1709 = vmatprep.subr.bf16.mxu0 %v2458_v28  ;;  %v2551_v26 = vld [vmem:[%s3397_s1 + $0x654] ss:$8 sps:$4 sm:$0xff]   ;;  %v2548_v27 = vld [vmem:[%s3398_s0 + $0x90] ss:$56 sps:$4 sm:$0xff]  }
  0x8d   :  { %1762 = vmatprep.subr.bf16.mxu1 %v2461_v29  ;;  %1735 = vmatprep.mubr.bf16.mxu0 %v2536_v33  ;;  %v2554_v28 = vld [vmem:[%s3398_s0 + $0x98] ss:$56 sps:$4 sm:$0xff]   ;;  %v2555_v33 = vld [vmem:[%s3397_s1 + $0x640] ss:$8 sps:$4 sm:$0xff]  }
  0x8e   :  { %1788 = vmatprep.mubr.bf16.mxu1 %v2539_v35  ;;  %v2549_v29 = vld [vmem:[%s3397_s1 + $0x650] ss:$8 sps:$4 sm:$0xff]  }
  0x8f   :  { %1710 = vmatpush1.bf16.msra.mxu0 %v2456_v30  ;;  %v2557_v30 = vld [vmem:[%s3397_s1 + $0x644] ss:$8 sps:$4 sm:$0xff]   ;;  %v2558_v35 = vld [vmem:[%s3397_s1 + $0x630] ss:$8 sps:$4 sm:$0xff]  }
  0x90   :  { %1763 = vmatpush1.bf16.msra.mxu1 %v2459_v31  ;;  %1711 = vmatprep.subr.bf16.mxu0 %v2464_v32  ;;  %v2584_v31 = vld [vmem:[%s3398_s0 + $0x34] ss:$56 sps:$4 sm:$0xff]   ;;  %v2587_v32 = vld [vmem:[%s3398_s0 + $0xa4] ss:$56 sps:$4 sm:$0xff]  }
  0x91   :  { %1764 = vmatprep.subr.bf16.mxu1 %v2467_v34  ;;  %v2560_v34 = vld [vmem:[%s3397_s1 + $0x634] ss:$8 sps:$4 sm:$0xff]  }
  0x93   :  { %1712 = vmatpush1.bf16.msra.mxu0 %v2462_v36  ;;  %v2563_v36 = vld [vmem:[%s3397_s1 + $0x624] ss:$8 sps:$4 sm:$0xff]  }
  0x94   :  { %1765 = vmatpush1.bf16.msra.mxu1 %v2465_v37  ;;  %1713 = vmatprep.subr.bf16.mxu0 %v2470_v38  ;;  %v2561_v37 = vld [vmem:[%s3397_s1 + $0x620] ss:$8 sps:$4 sm:$0xff]   ;;  %v2566_v38 = vld [vmem:[%s3397_s1 + $0x614] ss:$8 sps:$4 sm:$0xff]  }
  0x95   :  { %1766 = vmatprep.subr.bf16.mxu1 %v2473_v39  ;;  %v2564_v39 = vld [vmem:[%s3397_s1 + $0x610] ss:$8 sps:$4 sm:$0xff]  }
  0x97   :  { %1714 = vmatpush1.bf16.msra.mxu0 %v2468_v40  ;;  %v2569_v40 = vld [vmem:[%s3397_s1 + $0x604] ss:$8 sps:$4 sm:$0xff]  }
  0x98   :  { %1767 = vmatpush1.bf16.msra.mxu1 %v2471_v41  ;;  %1715 = vmatprep.subr.bf16.mxu0 %v2476_v42  ;;  %v2567_v41 = vld [vmem:[%s3397_s1 + $0x600] ss:$8 sps:$4 sm:$0xff]   ;;  %v2572_v42 = vld [vmem:[%s3397_s1 + $0x6b4] ss:$8 sps:$4 sm:$0xff]  }
  0x99   :  { %1768 = vmatprep.subr.bf16.mxu1 %v2479_v43  ;;  %v2570_v43 = vld [vmem:[%s3397_s1 + $0x6b0] ss:$8 sps:$4 sm:$0xff]  }
  0x9b   :  { %1716 = vmatpush1.bf16.msra.mxu0 %v2474_v44  ;;  %v2575_v44 = vld [vmem:[%s3397_s1 + $0x6a4] ss:$8 sps:$4 sm:$0xff]  }
  0x9c   :  { %1769 = vmatpush1.bf16.msra.mxu1 %v2477_v45  ;;  %1717 = vmatprep.subr.bf16.mxu0 %v2482_v46  ;;  %v2573_v45 = vld [vmem:[%s3397_s1 + $0x6a0] ss:$8 sps:$4 sm:$0xff]   ;;  %v2578_v46 = vld [vmem:[%s3397_s1 + $0x694] ss:$8 sps:$4 sm:$0xff]  }
  0x9d   :  { %1770 = vmatprep.subr.bf16.mxu1 %v2485_v47  ;;  %v2576_v47 = vld [vmem:[%s3397_s1 + $0x690] ss:$8 sps:$4 sm:$0xff]  }
  0x9f   :  { %1718 = vmatpush1.bf16.msra.mxu0 %v2480_v48  ;;  %v2581_v48 = vld [vmem:[%s3397_s1 + $0x684] ss:$8 sps:$4 sm:$0xff]  }
  0xa0   :  { %1771 = vmatpush1.bf16.msra.mxu1 %v2483_v49  ;;  %1719 = vmatprep.subr.bf16.mxu0 %v2488_v50  ;;  %v2579_v49 = vld [vmem:[%s3397_s1 + $0x680] ss:$8 sps:$4 sm:$0xff]  }
  0xa1   :  { %1772 = vmatprep.subr.bf16.mxu1 %v2491_v51  ;;  %v2582_v50 = vld [vmem:[%s3398_s0 + $0x30] ss:$56 sps:$4 sm:$0xff]   ;;  %v2585_v51 = vld [vmem:[%s3398_s0 + $0xa0] ss:$56 sps:$4 sm:$0xff]  }
  0xa3   :  { %1720 = vmatpush2.bf16.msra.mxu0 %v2486_v52 }
  0xa4   :  { %1773 = vmatpush2.bf16.msra.mxu1 %v2489_v53  ;;  %1721 = vmatprep.subr.bf16.mxu0 %v2494_v54  ;;  %v2588_v53 = vmov 0.0  }
  0xa5   :  { %1774 = vmatprep.subr.bf16.mxu1 %v2497_v55  ;;  %21 = vst.msk [vmem:[%s3399_s3] sm:$0xf] %vm3344_vm3, %v2588_v53 }
  0xa7   :  { %1722 = vmatpush2.bf16.msra.mxu0 %v2492_v56 }
  0xa8   :  { %1775 = vmatpush2.bf16.msra.mxu1 %v2495_v57  ;;  %1723 = vmatprep.subr.bf16.mxu0 %v2500_v58 }
  0xa9   :  { %1776 = vmatprep.subr.bf16.mxu1 %v2503_v59 }
  0xab   :  { %1724 = vmatpush2.bf16.msra.mxu0 %v2498_v60 }
  0xac   :  { %1777 = vmatpush2.bf16.msra.mxu1 %v2501_v61  ;;  %1725 = vmatprep.subr.bf16.mxu0 %v2506_v62 }
  0xad   :  { %1778 = vmatprep.subr.bf16.mxu1 %v2509_v63 }
  0xaf   :  { %1726 = vmatpush2.bf16.msra.mxu0 %v2504_v0 }
  0xb0   :  { %1779 = vmatpush2.bf16.msra.mxu1 %v2507_v1  ;;  %1727 = vmatprep.subr.bf16.mxu0 %v2512_v2 }
  0xb1   :  { %1780 = vmatprep.subr.bf16.mxu1 %v2515_v3 }
  0xb3   :  { %1728 = vmatpush2.bf16.msra.mxu0 %v2510_v4 }
  0xb4   :  { %1781 = vmatpush2.bf16.msra.mxu1 %v2513_v5  ;;  %1729 = vmatprep.subr.bf16.mxu0 %v2518_v6 }
  0xb5   :  { %1782 = vmatprep.subr.bf16.mxu1 %v2521_v7 }
  0xb7   :  { %1730 = vmatpush2.bf16.msra.mxu0 %v2516_v8 }
  0xb8   :  { %1783 = vmatpush2.bf16.msra.mxu1 %v2519_v9  ;;  %1731 = vmatprep.subr.bf16.mxu0 %v2524_v10 }
  0xb9   :  { %1784 = vmatprep.subr.bf16.mxu1 %v2527_v11 }
  0xbb   :  { %1732 = vmatpush2.bf16.msra.mxu0 %v2522_v12 }
  0xbc   :  { %1785 = vmatpush2.bf16.msra.mxu1 %v2525_v13  ;;  %1733 = vmatprep.subr.bf16.mxu0 %v2530_v14 }
  0xbd   :  { %1786 = vmatprep.subr.bf16.mxu1 %v2533_v15 }
  0xbf   :  { %1734 = vmatpush2.bf16.msra.mxu0 %v2528_v16 }
  0xc0   :  { %1787 = vmatpush2.bf16.msra.mxu1 %v2531_v17  ;;  %1809 = vmatprep.subr.bf16.mxu0 %v2542_v18 }
  0xc1   :  { %2196 = vmatprep.subr.bf16.mxu1 %v2542_v18 }
  0xc2   :  { %1736 = vmatmul.mubr.bf16.vlgmr.msra.gmra.mxu0 %v2534_v19 }
  0xc3   :  { %1789 = vmatmul.mubr.bf16.vlgmr.msra.gmra.mxu1 %v2537_v20  ;;  %1810 = vmatpush1.bf16.msra.mxu0 %v2540_v21 }
  0xc4   :  { %2208 = vmatpush1.bf16.msra.mxu1 %v2540_v21  ;;  %1811 = vmatprep.subr.bf16.mxu0 %v2545_v22 }
  0xc5   :  { %2197 = vmatprep.subr.bf16.mxu1 %v2545_v22  ;;  %1745 = vmatprep.mubr.bf16.mxu0 %v2546_v23 }
  0xc6   :  { %1798 = vmatprep.mubr.bf16.mxu1 %v2552_v24 }
  0xc7   :  { %1812 = vmatpush1.bf16.msra.mxu0 %v2543_v25 }
  0xc8   :  { %2209 = vmatpush1.bf16.msra.mxu1 %v2543_v25  ;;  %1813 = vmatprep.subr.bf16.mxu0 %v2551_v26 }
  0xc9   :  { %2198 = vmatprep.subr.bf16.mxu1 %v2551_v26 }
  0xca   :  { %1746 = vmatmul.mubr.bf16.gmra.mxu0 %v2548_v27 }
  0xcb   :  { %1799 = vmatmul.mubr.bf16.gmra.mxu1 %v2554_v28  ;;  %1814 = vmatpush1.bf16.msra.mxu0 %v2549_v29 }
  0xcc   :  { %2210 = vmatpush1.bf16.msra.mxu1 %v2549_v29  ;;  %1815 = vmatprep.subr.bf16.mxu0 %v2557_v30 }
  0xcd   :  { %2199 = vmatprep.subr.bf16.mxu1 %v2557_v30  ;;  %2194 = vmatprep.mubr.msk.bf16.mxu0 %vm1484_vm0, %v2584_v31 }
  0xce   :  { %2195 = vmatprep.mubr.msk.bf16.mxu1 %vm1484_vm0, %v2587_v32 }
  0xcf   :  { %1816 = vmatpush1.bf16.msra.mxu0 %v2555_v33 }
  0xd0   :  { %2211 = vmatpush1.bf16.msra.mxu1 %v2555_v33  ;;  %1817 = vmatprep.subr.bf16.mxu0 %v2560_v34 }
  0xd1   :  { %2200 = vmatprep.subr.bf16.mxu1 %v2560_v34 }
  0xd3   :  { %1818 = vmatpush1.bf16.msra.mxu0 %v2558_v35 }
  0xd4   :  { %2212 = vmatpush1.bf16.msra.mxu1 %v2558_v35  ;;  %1819 = vmatprep.subr.bf16.mxu0 %v2563_v36 }
  0xd5   :  { %2201 = vmatprep.subr.bf16.mxu1 %v2563_v36 }
  0xd7   :  { %1820 = vmatpush1.bf16.msra.mxu0 %v2561_v37 }
  0xd8   :  { %2213 = vmatpush1.bf16.msra.mxu1 %v2561_v37  ;;  %1821 = vmatprep.subr.bf16.mxu0 %v2566_v38 }
  0xd9   :  { %2202 = vmatprep.subr.bf16.mxu1 %v2566_v38 }
  0xdb   :  { %1822 = vmatpush1.bf16.msra.mxu0 %v2564_v39 }
  0xdc   :  { %2214 = vmatpush1.bf16.msra.mxu1 %v2564_v39  ;;  %1823 = vmatprep.subr.bf16.mxu0 %v2569_v40 }
  0xdd   :  { %2203 = vmatprep.subr.bf16.mxu1 %v2569_v40 }
  0xdf   :  { %1824 = vmatpush1.bf16.msra.mxu0 %v2567_v41 }
  0xe0   :  { %2215 = vmatpush1.bf16.msra.mxu1 %v2567_v41  ;;  %1833 = vmatprep.subr.bf16.mxu0 %v2572_v42 }
  0xe1   :  { %2204 = vmatprep.subr.bf16.mxu1 %v2572_v42 }
  0xe3   :  { %1834 = vmatpush2.bf16.msra.mxu0 %v2570_v43 }
  0xe4   :  { %2216 = vmatpush2.bf16.msra.mxu1 %v2570_v43  ;;  %1835 = vmatprep.subr.bf16.mxu0 %v2575_v44 }
  0xe5   :  { %2205 = vmatprep.subr.bf16.mxu1 %v2575_v44 }
  0xe7   :  { %1836 = vmatpush2.bf16.msra.mxu0 %v2573_v45 }
  0xe8   :  { %2217 = vmatpush2.bf16.msra.mxu1 %v2573_v45  ;;  %1837 = vmatprep.subr.bf16.mxu0 %v2578_v46 }
  0xe9   :  { %2206 = vmatprep.subr.bf16.mxu1 %v2578_v46 }
  0xeb   :  { %1838 = vmatpush2.bf16.msra.mxu0 %v2576_v47 }
  0xec   :  { %2218 = vmatpush2.bf16.msra.mxu1 %v2576_v47  ;;  %1839 = vmatprep.subr.bf16.mxu0 %v2581_v48 }
  0xed   :  { %2207 = vmatprep.subr.bf16.mxu1 %v2581_v48 }
  0xef   :  { %1840 = vmatpush2.bf16.msra.mxu0 %v2579_v49 }
  0xf0   :  { %2219 = vmatpush2.bf16.msra.mxu1 %v2579_v49 }
  0xf2   :  { %1842 = vmatmul.mubr.bf16.vlgmr.msra.gmra.mxu0 %v2582_v50 }
  0xf3   :  { %1852 = vmatmul.mubr.bf16.vlgmr.msra.gmra.mxu1 %v2585_v51 }
 0x102   :  { %v1525_v54 = vpop.f32.mrf.mxu0 }
 0x103   :  { %v1578_v55 = vpop.f32.mrf.mxu1 }
 0x104   :  { %v1527_v56 = vpop.f32.mrf.mxu0  ;;  %v1579_v32 = vadd.f32 %v1578_v55, %v1525_v54 }
 0x105   :  { %v1580_v57 = vpop.f32.mrf.mxu1 }
 0x106   :  { %v1529_v58 = vpop.f32.mrf.mxu0  ;;  %v1581_v34 = vadd.f32 %v1580_v57, %v1527_v56 }
 0x107   :  { %v1582_v59 = vpop.f32.mrf.mxu1 }
 0x108   :  { %v1531_v60 = vpop.f32.mrf.mxu0  ;;  %v1583_v42 = vadd.f32 %v1582_v59, %v1529_v58 }
 0x109   :  { %v1584_v62 = vpop.f32.mrf.mxu1 }
 0x10a   :  { %v1535_v61 = vpop.f32.mrf.mxu0  ;;  %v1585_v43 = vadd.f32 %v1584_v62, %v1531_v60 }
 0x10b   :  { %v1588_v63 = vpop.f32.mrf.mxu1 }
 0x10c   :  { %v1537_v0 = vpop.f32.mrf.mxu0  ;;  %v1589_v33 = vadd.f32 %v1588_v63, %v1535_v61 }
 0x10d   :  { %v1590_v1 = vpop.f32.mrf.mxu1 }
 0x10e   :  { %v1539_v2 = vpop.f32.mrf.mxu0  ;;  %v1591_v35 = vadd.f32 %v1590_v1, %v1537_v0 }
 0x10f   :  { %v1592_v3 = vpop.f32.mrf.mxu1 }
 0x110   :  { %v1541_v4 = vpop.f32.mrf.mxu0  ;;  %v1593_v44 = vadd.f32 %v1592_v3, %v1539_v2 }
 0x111   :  { %v1594_v6 = vpop.f32.mrf.mxu1 }
 0x112   :  { %v1595_v45 = vadd.f32 %v1594_v6, %v1541_v4 }
 0x142   :  { %v1631_v5 = vpop.f32.mrf.mxu0 }
 0x143   :  { %v1684_v7 = vpop.f32.mrf.mxu1  ;;  %v1632_v36 = vadd.f32 %v1631_v5, %v1579_v32 }
 0x144   :  { %v1633_v8 = vpop.f32.mrf.mxu0 }
 0x145   :  { %v1686_v9 = vpop.f32.mrf.mxu1  ;;  %v1634_v38 = vadd.f32 %v1633_v8, %v1581_v34  ;;  %v1685_v46 = vadd.f32 %v1684_v7, %v1632_v36 }
 0x146   :  { %v1635_v10 = vpop.f32.mrf.mxu0 }
 0x147   :  { %v1688_v11 = vpop.f32.mrf.mxu1  ;;  %v1687_v48 = vadd.f32 %v1686_v9, %v1634_v38  ;;  %v1636_v49 = vadd.f32 %v1635_v10, %v1583_v42 }
 0x148   :  { %v1637_v12 = vpop.f32.mrf.mxu0 }
 0x149   :  { %v1690_v13 = vpop.f32.mrf.mxu1  ;;  %v1638_v50 = vadd.f32 %v1637_v12, %v1585_v43  ;;  %v1689_v1 = vadd.f32 %v1688_v11, %v1636_v49 }
 0x14a   :  { %v1641_v14 = vpop.f32.mrf.mxu0 }
 0x14b   :  { %v1694_v15 = vpop.f32.mrf.mxu1  ;;  %v1642_v37 = vadd.f32 %v1641_v14, %v1589_v33  ;;  %v1691_v5 = vadd.f32 %v1690_v13, %v1638_v50 }
 0x14c   :  { %v1643_v16 = vpop.f32.mrf.mxu0 }
 0x14d   :  { %v1696_v17 = vpop.f32.mrf.mxu1  ;;  %v1644_v41 = vadd.f32 %v1643_v16, %v1591_v35  ;;  %v1695_v47 = vadd.f32 %v1694_v15, %v1642_v37 }
 0x14e   :  { %v1645_v18 = vpop.f32.mrf.mxu0 }
 0x14f   :  { %v1698_v19 = vpop.f32.mrf.mxu1  ;;  %v1646_v51 = vadd.f32 %v1645_v18, %v1593_v44  ;;  %v1697_v55 = vadd.f32 %v1696_v17, %v1644_v41 }
 0x150   :  { %v1647_v20 = vpop.f32.mrf.mxu0 }
 0x151   :  { %v1700_v21 = vpop.f32.mrf.mxu1  ;;  %v1648_v56 = vadd.f32 %v1647_v20, %v1595_v45  ;;  %v1699_v58 = vadd.f32 %v1698_v19, %v1646_v51 }
 0x153   :  { %v1701_v62 = vadd.f32 %v1700_v21, %v1648_v56 }
 0x182   :  { %v1737_v22 = vpop.f32.mrf.mxu0 }
 0x183   :  { %v1790_v23 = vpop.f32.mrf.mxu1  ;;  %v1738_v57 = vadd.f32 %v1737_v22, %v1685_v46 }
 0x184   :  { %v1739_v24 = vpop.f32.mrf.mxu0 }
 0x185   :  { %v1792_v25 = vpop.f32.mrf.mxu1  ;;  %v1740_v63 = vadd.f32 %v1739_v24, %v1687_v48  ;;  %v1791_v2 = vadd.f32 %v1790_v23, %v1738_v57 }
 0x186   :  { %v1741_v26 = vpop.f32.mrf.mxu0 }
 0x187   :  { %v1794_v27 = vpop.f32.mrf.mxu1  ;;  %v1793_v4 = vadd.f32 %v1792_v25, %v1740_v63  ;;  %v1742_v6 = vadd.f32 %v1741_v26, %v1689_v1 }
 0x188   :  { %v1743_v28 = vpop.f32.mrf.mxu0 }
 0x189   :  { %v1796_v29 = vpop.f32.mrf.mxu1  ;;  %v1744_v7 = vadd.f32 %v1743_v28, %v1691_v5  ;;  %v1795_v19 = vadd.f32 %v1794_v27, %v1742_v6 }
 0x18a   :  { %v1747_v30 = vpop.f32.mrf.mxu0 }
 0x18b   :  { %v1800_v31 = vpop.f32.mrf.mxu1  ;;  %v1748_v61 = vadd.f32 %v1747_v30, %v1695_v47  ;;  %v1797_v23 = vadd.f32 %v1796_v29, %v1744_v7 }
 0x18c   :  { %v1749_v39 = vpop.f32.mrf.mxu0 }
 0x18d   :  { %v1802_v40 = vpop.f32.mrf.mxu1  ;;  %v1750_v0 = vadd.f32 %v1749_v39, %v1697_v55  ;;  %v1801_v3 = vadd.f32 %v1800_v31, %v1748_v61 }
 0x18e   :  { %v1751_v53 = vpop.f32.mrf.mxu0 }
 0x18f   :  { %v1804_v54 = vpop.f32.mrf.mxu1  ;;  %v1752_v8 = vadd.f32 %v1751_v53, %v1699_v58  ;;  %v1803_v12 = vadd.f32 %v1802_v40, %v1750_v0 }
 0x190   :  { %v1753_v59 = vpop.f32.mrf.mxu0 }
 0x191   :  { %v1806_v60 = vpop.f32.mrf.mxu1  ;;  %v1754_v14 = vadd.f32 %v1753_v59, %v1701_v62  ;;  %v1805_v20 = vadd.f32 %v1804_v54, %v1752_v8  ;;  %v2589_v8 = vmov 1983009808  }
 0x193   :  { %v1807_v24 = vadd.f32 %v1806_v60, %v1754_v14 }
 0x1b2   :  { %v1843_v9 = vpop.f32.mrf.mxu0 }
 0x1b3   :  { %v1853_v10 = vpop.f32.mrf.mxu1  ;;  %v1844_v15 = vadd.f32 %v1843_v9, %v1791_v2  ;;  %v1930_v9 = vunpack.c.l.s4 %v2589_v8 }
 0x1b4   :  { %v1854_v16 = vadd.f32 %v1853_v10, %v1801_v3  ;;  %v1845_v17 = vpop.f32.mrf.mxu0  ;;  %v1932_v10 = vlaneseq }
 0x1b5   :  { %v1855_v18 = vpop.f32.mrf.mxu1  ;;  %1862 = vst [vmem:[%s3400_s2] sm:$0xff] %v1844_v15  ;;  %v1846_v11 = vadd.f32 %v1845_v17, %v1793_v4  ;;  %v1893_v33 = vmul.f32 %v1844_v15, %v1844_v15 }
 0x1b6   :  { %1866 = vst [vmem:[%s3400_s2 + $0x20] sm:$0xff] %v1854_v16  ;;  %v1856_v13 = vadd.f32 %v1855_v18, %v1803_v12  ;;  %v1847_v21 = vpop.f32.mrf.mxu0  ;;  %v1897_v29 = vmul.f32 %v1854_v16, %v1854_v16 }
 0x1b7   :  { %v1857_v22 = vpop.f32.mrf.mxu1  ;;  %1863 = vst.msk [vmem:[%s3400_s2 + $0x8] sm:$0xff] %vm1484_vm0, %v1846_v11  ;;  %v1848_v25 = vadd.f32 %v1847_v21, %v1795_v19  ;;  %v1894_v27 = vmul.f32 %v1846_v11, %v1846_v11  ;;  %v1880_v36 = vsel %vm1484_vm0, %v1846_v11, 0.0  ;;  %v1933_v19 = vshrl.u32 %v1932_v10, 7 }
 0x1b8   :  { %1867 = vst.msk [vmem:[%s3400_s2 + $0x28] sm:$0xff] %vm1484_vm0, %v1856_v13  ;;  %v1858_v26 = vadd.f32 %v1857_v22, %v1805_v20  ;;  %v1849_v28 = vpop.f32.mrf.mxu0  ;;  %v1898_v37 = vmul.f32 %v1856_v13, %v1856_v13  ;;  %v1883_v40 = vsel %vm1484_vm0, %v1856_v13, 0.0  ;;  %v1931_v13 = vunpack.c.0.s8 %v1930_v9 }
 0x1b9   :  { %v1859_v30 = vpop.f32.mrf.mxu1  ;;  %v1850_v31 = vadd.f32 %v1849_v28, %v1797_v23  ;;  %1864 = vst [vmem:[%s3400_s2 + $0x10] sm:$0xff] %v1848_v25  ;;  %v1871_v34 = vadd.f32 %v1848_v25, %v1844_v15  ;;  %v1895_v35 = vmul.f32 %v1848_v25, %v1848_v25  ;;  %v1910_v44 = vsel %vm1484_vm0, %v1894_v27, 0.0  ;;  %v1870_v27 = vld [vmem:[%s3399_s3] sm:$0xf] }
 0x1ba   :  { %v1860_v32 = vadd.f32 %v1859_v30, %v1807_v24  ;;  %1868 = vst [vmem:[%s3400_s2 + $0x30] sm:$0xff] %v1858_v26  ;;  %v1899_v45 = vmul.f32 %v1858_v26, %v1858_v26  ;;  %v1913_v53 = vsel %vm1484_vm0, %v1898_v37, 0.0  ;;  %v1934_v25 = vsub.s32 %v1931_v13, %v1933_v19 }
 0x1bb   :  { %1865 = vst.msk [vmem:[%s3400_s2 + $0x18] sm:$0xff] %vm1484_vm0, %v1850_v31  ;;  %v1881_v38 = vsel %vm1484_vm0, %v1850_v31, 0.0  ;;  %v1896_v39 = vmul.f32 %v1850_v31, %v1850_v31  ;;  %v1901_v41 = vadd.f32 %v1895_v35, %v1893_v33  ;;  %v1872_v42 = vadd.f32 %v1871_v34, %v1854_v16 }
 0x1bc   :  { %1869 = vst.msk [vmem:[%s3400_s2 + $0x38] sm:$0xff] %vm1484_vm0, %v1860_v32  ;;  %v1882_v43 = vadd.f32 %v1881_v38, %v1880_v36  ;;  %v1900_v47 = vmul.f32 %v1860_v32, %v1860_v32  ;;  %v1885_v54 = vsel %vm1484_vm0, %v1860_v32, 0.0 }
 0x1bd   :  { %v1911_v46 = vsel %vm1484_vm0, %v1896_v39, 0.0  ;;  %v1873_v48 = vadd.f32 %v1872_v42, %v1858_v26  ;;  %v1902_v49 = vadd.f32 %v1901_v41, %v1897_v29 }
 0x1be   :  { %v1912_v50 = vadd.f32 %v1911_v46, %v1910_v44  ;;  %v1884_v51 = vadd.f32 %v1883_v40, %v1882_v43  ;;  %v1915_v63 = vsel %vm1484_vm0, %v1900_v47, 0.0 }
 0x1bf   :  { %v1874_v55 = vrot.slane %v1873_v48, 4  ;;  %v1903_v56 = vadd.f32 %v1902_v49, %v1899_v45 }
 0x1c0   :  { %v1886_v57 = vadd.f32 %v1885_v54, %v1884_v51  ;;  %v1914_v61 = vadd.f32 %v1913_v53, %v1912_v50 }
 0x1c1   :  { %v1875_v0 = vadd.f32 %v1874_v55, %v1873_v48  ;;  %v1904_v1 = vrot.slane %v1903_v56, 4 }
 0x1c2   :  { %v1887_v5 = vrot.slane %v1886_v57, 4  ;;  %v1916_v58 = vadd.f32 %v1915_v63, %v1914_v61 }
 0x1c3   :  { %v1876_v59 = vrot.slane %v1875_v0, 2  ;;  %v1905_v60 = vadd.f32 %v1904_v1, %v1903_v56 }
 0x1c4   :  { %v1888_v62 = vadd.f32 %v1887_v5, %v1886_v57  ;;  %v1917_v2 = vrot.slane %v1916_v58, 4 }
 0x1c5   :  { %v1877_v3 = vadd.f32 %v1876_v59, %v1875_v0  ;;  %v1906_v4 = vrot.slane %v1905_v60, 2 }
 0x1c6   :  { %v1889_v6 = vrot.slane %v1888_v62, 2  ;;  %v1918_v7 = vadd.f32 %v1917_v2, %v1916_v58 }
 0x1c7   :  { %v1907_v12 = vadd.f32 %v1906_v4, %v1905_v60  ;;  %v1878_v16 = vrot.slane %v1877_v3, 1 }
 0x1c8   :  { %v1890_v14 = vadd.f32 %v1889_v6, %v1888_v62  ;;  %v1919_v15 = vrot.slane %v1918_v7, 2 }
 0x1c9   :  { %v1908_v17 = vrot.slane %v1907_v12, 1  ;;  %v1879_v22 = vadd.f32 %v1878_v16, %v1877_v3 }
 0x1ca   :  { %v1891_v18 = vrot.slane %v1890_v14, 1  ;;  %v1920_v11 = vadd.f32 %v1919_v15, %v1918_v7 }
 0x1cb   :  { %v1909_v20 = vadd.f32 %v1908_v17, %v1907_v12 }
 0x1cc   :  { %v1921_v21 = vrot.slane %v1920_v11, 1  ;;  %v1892_v23 = vadd.f32 %v1891_v18, %v1890_v14 }
 0x1cd   :  { %v1924_v26 = vsel %vm1923_vm4, %v1879_v22, %v1909_v20 }
 0x1ce   :  { %v1922_v24 = vadd.f32 %v1921_v21, %v1920_v11 }
 0x1d0   :  { %v1925_v28 = vsel %vm1923_vm4, %v1892_v23, %v1922_v24 }
 0x1d1   :  { %v1928_v30 = vcombine.low %v1924_v26, %v1925_v28 }
 0x1d3   :  { %v1935_v31 = vrot.slane %v1928_v30, %v1934_v25 }
 0x1d5   :  { %v1937_v32 = vadd.f32 %v1935_v31, %v1870_v27 }
 0x1d7   :  { %1941 = vst.msk [vmem:[%s3399_s3] sm:$0xf] %vm3344_vm3, %v1937_v32 }

</bundles_post_ra>
